<compile_context>
chip_gen: v6e
topology: v6e:2x2x1
jax: 0.10.0
libtpu: 0.0.40
codegen_flags: <defaults>
</compile_context>

<pallas_src>
import functools

import jax
import jax.numpy as jnp
from jax.experimental import pallas as pl
from jax.experimental.pallas import tpu as pltpu

A_ACT = 1.7159       # LeCun scaled-tanh amplitude
S_ACT = 2.0 / 3.0    # LeCun scaled-tanh slope
NC_PAD = 128         # lane-dense padded class dimension for the output store


def _act(x):
    return A_ACT * jnp.tanh(S_ACT * x)


# ---------------------------------------------------------------------------
# Fused kernel: one grid step processes a tile of TB images end-to-end.
# Shapes below are quoted for TB = 8, n_classes padded to NC_PAD = 128.
# ---------------------------------------------------------------------------
def _lenet5_kernel(x_ref,                     # (TB*32, 32)   f32  rows=(n,h), lanes=w
                   rhs1_ref, b1_ref,          # (5, 32, 168) bf16, (1, 168) f32
                   ph1_ref, pw1_ref,          # (TB*14, TB*32-4), (168, 84) f32
                   rhs3_ref, b3_ref,          # (5, 84, 160) bf16, (1, 160) f32
                   ph2_ref, pw2_ref,          # (TB*5, TB*14-4), (160, 80) f32
                   w5_ref, selr_ref, b5_ref,  # (5, 80, 120), (TB, TB*5-4), (1, 120) f32
                   w6_ref, b6_ref,            # (120, 84), (1, 84) f32
                   w7_ref, b7_ref,            # (84, NC_PAD), (1, NC_PAD) f32
                   out_ref,                   # (TB, NC_PAD) f32
                   p1_ref, p3_ref):           # VMEM scratch (TB*14, 84), (TB*5, 80) f32
    f32 = jnp.float32
    bf16 = jnp.bfloat16

    # ---- C1: 5x5 conv 1->6, 32x32 -> 28x28, + scaled tanh -----------------
    # Width-Toeplitz GEMM per kernel row dy.  Rows of the result canvas are
    # (n*32 + oh); rows with oh >= 28 hold garbage that straddles image
    # boundaries and is never selected by the pooling matrix.
    r1 = x_ref.shape[0] - 4                               # TB*32 - 4
    xb = x_ref[...].astype(bf16)                          # cast once, slice 5x
    acc1 = jnp.zeros((r1, rhs1_ref.shape[2]), f32)
    for dy in range(5):
        acc1 += jnp.dot(xb[dy:dy + r1, :], rhs1_ref[dy],
                        preferred_element_type=f32)
    a1 = _act(acc1 + b1_ref[...])                         # (TB*32-4, 168)

    # ---- S2: 2x2 avg pool, folded in as two constant matmuls --------------
    p1_ref[...] = jnp.dot(
        jnp.dot(ph1_ref[...], a1, preferred_element_type=f32),
        pw1_ref[...], preferred_element_type=f32)         # (TB*14, 84)

    # ---- C3: 5x5 conv 6->16, 14x14 -> 10x10, + scaled tanh ----------------
    r3 = p1_ref.shape[0] - 4                              # TB*14 - 4
    p1b = p1_ref[...].astype(bf16)                        # cast once, slice 5x
    acc3 = jnp.zeros((r3, rhs3_ref.shape[2]), f32)
    for dy in range(5):
        acc3 += jnp.dot(p1b[dy:dy + r3, :], rhs3_ref[dy],
                        preferred_element_type=f32)
    a3 = _act(acc3 + b3_ref[...])                         # (TB*14-4, 160)

    # ---- S4: 2x2 avg pool ---------------------------------------------------
    p3_ref[...] = jnp.dot(
        jnp.dot(ph2_ref[...], a3, preferred_element_type=f32),
        pw2_ref[...], preferred_element_type=f32)         # (TB*5, 80)

    # ---- C5: 5x5 conv 16->120 on a 5x5 map (-> 1x1), + scaled tanh ---------
    r5 = p3_ref.shape[0] - 4                              # TB*5 - 4
    acc5 = jnp.zeros((r5, w5_ref.shape[2]), f32)
    for dy in range(5):
        acc5 += jnp.dot(p3_ref[dy:dy + r5, :], w5_ref[dy],
                        preferred_element_type=f32)
    c5 = jnp.dot(selr_ref[...], acc5, preferred_element_type=f32)   # (TB, 120)
    a5 = _act(c5 + b5_ref[...])

    # ---- F6 + F7: chained fully-connected layers (stay in VMEM) ------------
    a6 = _act(jnp.dot(a5, w6_ref[...], preferred_element_type=f32) + b6_ref[...])
    out = jnp.dot(a6, w7_ref[...], preferred_element_type=f32) + b7_ref[...]
    out_ref[...] = out.astype(out_ref.dtype)              # (TB, 128) unmasked vst


# ---------------------------------------------------------------------------
# One-time weight packing (pure JAX, tiny): GEMM-ready operands for the kernel
# ---------------------------------------------------------------------------
def _width_toeplitz(w, in_w):
    """w: (Cout, Cin, KH, KW) -> (KH, in_w*Cin, out_w*Cout).

    Row order of each slice = (iw, ci), col order = (ow, co), so a conv over
    the width dimension becomes one plain 2-D GEMM per kernel-row offset dy.
    """
    cout, cin, kh, kw = w.shape
    out_w = in_w - kw + 1
    iw = jnp.arange(in_w)[:, None]
    ow = jnp.arange(out_w)[None, :]
    dx = iw - ow                                        # (in_w, out_w)
    valid = (dx >= 0) & (dx < kw)
    dx = jnp.clip(dx, 0, kw - 1)
    wt = jnp.transpose(w, (2, 3, 1, 0))                 # (kh, kw, cin, cout)
    g = wt[:, dx, :, :]                                 # (kh, in_w, out_w, cin, cout)
    g = g * valid[None, :, :, None, None].astype(w.dtype)
    g = jnp.transpose(g, (0, 1, 3, 2, 4))               # (kh, in_w, cin, out_w, cout)
    return g.reshape(kh, in_w * cin, out_w * cout)


def _pool_left(tb, in_h, out_h, in_rows):
    """(tb*out_h, in_rows) constant matrix averaging adjacent canvas rows."""
    ro = jnp.arange(tb * out_h)
    ri = jnp.arange(in_rows)[None, :]
    base = (in_h * (ro // out_h) + 2 * (ro % out_h))[:, None]
    m = (ri == base) | (ri == base + 1)
    return 0.5 * m.astype(jnp.float32)


def _pool_right(in_w, out_w, ch):
    """(in_w*ch, out_w*ch) constant matrix averaging adjacent cols / channel."""
    ow = jnp.arange(in_w)[:, None]
    ow2 = jnp.arange(out_w)[None, :]
    m = ((ow == 2 * ow2) | (ow == 2 * ow2 + 1)).astype(jnp.float32)
    eye = jnp.eye(ch, dtype=jnp.float32)
    full = m[:, None, :, None] * eye[None, :, None, :]   # (in_w, ch, out_w, ch)
    return 0.5 * full.reshape(in_w * ch, out_w * ch)


def pack_params(params, block_n=8):
    """Pack PyTorch-layout params once into VMEM-resident kernel operands."""
    f32, bf16 = jnp.float32, jnp.bfloat16
    tb = block_n
    nc = params["f7_w"].shape[0]
    # Lane-dense classifier head: pad (84, nc) -> (84, NC_PAD) with zeros so
    # the kernel's final store is a full 128-lane vreg row per image.
    w7 = jnp.zeros((84, NC_PAD), f32).at[:, :nc].set(params["f7_w"].T.astype(f32))
    b7 = jnp.zeros((1, NC_PAD), f32).at[:, :nc].set(params["f7_b"][None, :].astype(f32))
    packed = {
        "rhs1": _width_toeplitz(params["c1_w"], 32).astype(bf16),   # (5, 32, 168)
        "b1": jnp.tile(params["c1_b"], 28)[None, :].astype(f32),    # (1, 168)
        "ph1": _pool_left(tb, 32, 14, tb * 32 - 4),                 # (TB*14, TB*32-4)
        "pw1": _pool_right(28, 14, 6),                              # (168, 84)
        "rhs3": _width_toeplitz(params["c3_w"], 14).astype(bf16),   # (5, 84, 160)
        "b3": jnp.tile(params["c3_b"], 10)[None, :].astype(f32),    # (1, 160)
        "ph2": _pool_left(tb, 14, 5, tb * 14 - 4),                  # (TB*5, TB*14-4)
        "pw2": _pool_right(10, 5, 16),                              # (160, 80)
        "w5": jnp.transpose(params["c5_w"], (2, 3, 1, 0))
                 .reshape(5, 5 * 16, 120).astype(f32),              # (5, 80, 120)
        "selr": (jnp.arange(tb * 5 - 4)[None, :] ==
                 (5 * jnp.arange(tb))[:, None]).astype(f32),        # (TB, TB*5-4)
        "b5": params["c5_b"][None, :].astype(f32),                  # (1, 120)
        "w6": params["f6_w"].T.astype(f32),                         # (120, 84)
        "b6": params["f6_b"][None, :].astype(f32),                  # (1, 84)
        "w7": w7,                                                   # (84, 128)
        "b7": b7,                                                   # (1, 128)
    }
    return packed, tb, nc


# ---------------------------------------------------------------------------
# Forward pass
# ---------------------------------------------------------------------------
def lenet5_forward(packed, x, *, block_n=8, n_classes=10):
    N, C, H, W = x.shape
    assert (C, H, W) == (1, 32, 32), f"Expected (1, 32, 32), got {(C, H, W)}"
    tb = block_n
    n_pad = ((N + tb - 1) // tb) * tb
    x2d = x.reshape(N * 32, 32)
    if n_pad != N:                                  # pad batch to a tile multiple
        x2d = jnp.pad(x2d, ((0, (n_pad - N) * 32), (0, 0)))

    p = packed

    def full(a):
        return pl.BlockSpec(a.shape, lambda i, nd=a.ndim: (0,) * nd)

    out = pl.pallas_call(
        _lenet5_kernel,
        out_shape=jax.ShapeDtypeStruct((n_pad, NC_PAD), jnp.float32),
        grid=(n_pad // tb,),
        in_specs=[
            pl.BlockSpec((tb * 32, 32), lambda i: (i, 0)),
            full(p["rhs1"]), full(p["b1"]), full(p["ph1"]), full(p["pw1"]),
            full(p["rhs3"]), full(p["b3"]), full(p["ph2"]), full(p["pw2"]),
            full(p["w5"]), full(p["selr"]), full(p["b5"]),
            full(p["w6"]), full(p["b6"]), full(p["w7"]), full(p["b7"]),
        ],
        out_specs=pl.BlockSpec((tb, NC_PAD), lambda i: (i, 0)),
        scratch_shapes=[
            pltpu.VMEM((tb * 14, 84), jnp.float32),   # pooled C1 activations
            pltpu.VMEM((tb * 5, 80), jnp.float32),    # pooled C3 activations
        ],
        compiler_params=pltpu.CompilerParams(
            dimension_semantics=("parallel",),
            vmem_limit_bytes=32 * 1024 * 1024,
        ),
    )(x2d, p["rhs1"], p["b1"], p["ph1"], p["pw1"], p["rhs3"], p["b3"],
      p["ph2"], p["pw2"], p["w5"], p["selr"], p["b5"], p["w6"], p["b6"],
      p["w7"], p["b7"])
    return out[:N, :n_classes]


# ---------------------------------------------------------------------------
# Deterministic parameter init (shapes from LeNet5.__init__)
# ---------------------------------------------------------------------------
def init_params(key, n_classes=10):
    ks = jax.random.split(key, 10)

    def w(k, shape, fan_in):
        return jax.random.normal(k, shape, jnp.float32) / jnp.sqrt(fan_in)

    return {
        "c1_w": w(ks[0], (6, 1, 5, 5), 25.0),
        "c1_b": 0.01 * jax.random.normal(ks[1], (6,), jnp.float32),
        "c3_w": w(ks[2], (16, 6, 5, 5), 150.0),
        "c3_b": 0.01 * jax.random.normal(ks[3], (16,), jnp.float32),
        "c5_w": w(ks[4], (120, 16, 5, 5), 400.0),
        "c5_b": 0.01 * jax.random.normal(ks[5], (120,), jnp.float32),
        "f6_w": w(ks[6], (84, 120), 120.0),
        "f6_b": 0.01 * jax.random.normal(ks[7], (84,), jnp.float32),
        "f7_w": w(ks[8], (n_classes, 84), 84.0),
        "f7_b": 0.01 * jax.random.normal(ks[9], (n_classes,), jnp.float32),
    }


# Pure-JAX/XLA f32 reference used only as a smoke test for the fused kernel.
def _reference_forward(params, x):
    def conv(x, w, b):
        y = jax.lax.conv_general_dilated(
            x, w, window_strides=(1, 1), padding="VALID",
            dimension_numbers=("NCHW", "OIHW", "NCHW"))
        return y + b.reshape(1, -1, 1, 1)

    def pool(x):
        n, c, h, w = x.shape
        return x.reshape(n, c, h // 2, 2, w // 2, 2).mean(axis=(3, 5))

    x = pool(_act(conv(x, params["c1_w"], params["c1_b"])))
    x = pool(_act(conv(x, params["c3_w"], params["c3_b"])))
    x = _act(conv(x, params["c5_w"], params["c5_b"]))
    x = x.reshape(x.shape[0], -1)
    x = _act(x @ params["f6_w"].T + params["f6_b"])
    return x @ params["f7_w"].T + params["f7_b"]


if __name__ == "__main__":
    key = jax.random.PRNGKey(0)
    pkey, xkey = jax.random.split(key)
    params = init_params(pkey, n_classes=10)
    # The module asserts spatial shape (1, 32, 32); use a small batch of 2.
    x = jax.random.normal(xkey, (2, 1, 32, 32), jnp.float32)

    packed, tb, nc = pack_params(params, block_n=8)
    fwd = jax.jit(functools.partial(lenet5_forward, block_n=tb, n_classes=nc))

    out = jax.block_until_ready(fwd(packed, x))
    assert out.shape == (2, 10), out.shape
    assert bool(jnp.all(jnp.isfinite(out)))

    # Loose tolerance: the two big conv GEMMs run with bf16 operands.
    ref = _reference_forward(params, x)
    assert float(jnp.max(jnp.abs(out - ref))) < 0.25, "mismatch vs f32 reference"

    print("KERNEL_OK")
</pallas_src>

<mosaic_0001>
module attributes {stable_mosaic.version = 11 : i64} {
  func.func @_lenet5_kernel(%arg0: i32, %arg1: memref<256x32xf32, #tpu.memory_space<vmem>>, %arg2: memref<5x32x168xbf16, #tpu.memory_space<vmem>>, %arg3: memref<1x168xf32, #tpu.memory_space<vmem>>, %arg4: memref<112x252xf32, #tpu.memory_space<vmem>>, %arg5: memref<168x84xf32, #tpu.memory_space<vmem>>, %arg6: memref<5x84x160xbf16, #tpu.memory_space<vmem>>, %arg7: memref<1x160xf32, #tpu.memory_space<vmem>>, %arg8: memref<40x108xf32, #tpu.memory_space<vmem>>, %arg9: memref<160x80xf32, #tpu.memory_space<vmem>>, %arg10: memref<5x80x120xf32, #tpu.memory_space<vmem>>, %arg11: memref<8x36xf32, #tpu.memory_space<vmem>>, %arg12: memref<1x120xf32, #tpu.memory_space<vmem>>, %arg13: memref<120x84xf32, #tpu.memory_space<vmem>>, %arg14: memref<1x84xf32, #tpu.memory_space<vmem>>, %arg15: memref<84x128xf32, #tpu.memory_space<vmem>>, %arg16: memref<1x128xf32, #tpu.memory_space<vmem>>, %arg17: memref<8x128xf32, #tpu.memory_space<vmem>>, %arg18: memref<112x84xf32, #tpu.memory_space<vmem>>, %arg19: memref<40x80xf32, #tpu.memory_space<vmem>>) attributes {dimension_semantics = [#tpu.dimension_semantics<parallel>], iteration_bounds = array<i64: 1>, scalar_prefetch = 0 : i64, scratch_operands = 2 : i64, tpu.core_type = #tpu.core_type<tc>, window_params = [{transform_indices = @transform_0, window_bounds = array<i64: 256, 32>}, {pipeline_mode = #tpu.pipeline_mode<synchronous>, transform_indices = @transform_1, window_bounds = array<i64: 5, 32, 168>}, {pipeline_mode = #tpu.pipeline_mode<synchronous>, transform_indices = @transform_2, window_bounds = array<i64: 1, 168>}, {pipeline_mode = #tpu.pipeline_mode<synchronous>, transform_indices = @transform_3, window_bounds = array<i64: 112, 252>}, {pipeline_mode = #tpu.pipeline_mode<synchronous>, transform_indices = @transform_4, window_bounds = array<i64: 168, 84>}, {pipeline_mode = #tpu.pipeline_mode<synchronous>, transform_indices = @transform_5, window_bounds = array<i64: 5, 84, 160>}, {pipeline_mode = #tpu.pipeline_mode<synchronous>, transform_indices = @transform_6, window_bounds = array<i64: 1, 160>}, {pipeline_mode = #tpu.pipeline_mode<synchronous>, transform_indices = @transform_7, window_bounds = array<i64: 40, 108>}, {pipeline_mode = #tpu.pipeline_mode<synchronous>, transform_indices = @transform_8, window_bounds = array<i64: 160, 80>}, {pipeline_mode = #tpu.pipeline_mode<synchronous>, transform_indices = @transform_9, window_bounds = array<i64: 5, 80, 120>}, {pipeline_mode = #tpu.pipeline_mode<synchronous>, transform_indices = @transform_10, window_bounds = array<i64: 8, 36>}, {pipeline_mode = #tpu.pipeline_mode<synchronous>, transform_indices = @transform_11, window_bounds = array<i64: 1, 120>}, {pipeline_mode = #tpu.pipeline_mode<synchronous>, transform_indices = @transform_12, window_bounds = array<i64: 120, 84>}, {pipeline_mode = #tpu.pipeline_mode<synchronous>, transform_indices = @transform_13, window_bounds = array<i64: 1, 84>}, {pipeline_mode = #tpu.pipeline_mode<synchronous>, transform_indices = @transform_14, window_bounds = array<i64: 84, 128>}, {pipeline_mode = #tpu.pipeline_mode<synchronous>, transform_indices = @transform_15, window_bounds = array<i64: 1, 128>}, {transform_indices = @transform_16, window_bounds = array<i64: 8, 128>}]} {
    %c0 = arith.constant 0 : index
    %c0_0 = arith.constant 0 : index
    %0 = vector.load %arg1[%c0, %c0_0] : memref<256x32xf32, #tpu.memory_space<vmem>>, vector<256x32xf32>
    %1 = arith.truncf %0 : vector<256x32xf32> to vector<256x32xbf16>
    %cst = arith.constant 0.000000e+00 : f32
    %2 = vector.broadcast %cst : f32 to vector<252x168xf32>
    %3 = vector.extract_strided_slice %1 {offsets = [0, 0], sizes = [252, 32], strides = [1, 1]} : vector<256x32xbf16> to vector<252x32xbf16>
    %c0_1 = arith.constant 0 : index
    %c0_2 = arith.constant 0 : index
    %c0_3 = arith.constant 0 : index
    %4 = vector.load %arg2[%c0_1, %c0_2, %c0_3] : memref<5x32x168xbf16, #tpu.memory_space<vmem>>, vector<1x32x168xbf16>
    %5 = vector.shape_cast %4 : vector<1x32x168xbf16> to vector<32x168xbf16>
    %cst_4 = arith.constant dense<0.000000e+00> : vector<252x168xf32>
    %6 = tpu.matmul %3, %5, %cst_4 {dimension_numbers = #tpu.dot_dimension_numbers<[1], [0], [0], [1], [0, 0, 1, 1], [], []>} : vector<252x32xbf16>, vector<32x168xbf16>, vector<252x168xf32> -> vector<252x168xf32>
    %7 = arith.addf %2, %6 : vector<252x168xf32>
    %8 = vector.extract_strided_slice %1 {offsets = [1, 0], sizes = [252, 32], strides = [1, 1]} : vector<256x32xbf16> to vector<252x32xbf16>
    %c1 = arith.constant 1 : index
    %c0_5 = arith.constant 0 : index
    %c0_6 = arith.constant 0 : index
    %9 = vector.load %arg2[%c1, %c0_5, %c0_6] : memref<5x32x168xbf16, #tpu.memory_space<vmem>>, vector<1x32x168xbf16>
    %10 = vector.shape_cast %9 : vector<1x32x168xbf16> to vector<32x168xbf16>
    %cst_7 = arith.constant dense<0.000000e+00> : vector<252x168xf32>
    %11 = tpu.matmul %8, %10, %cst_7 {dimension_numbers = #tpu.dot_dimension_numbers<[1], [0], [0], [1], [0, 0, 1, 1], [], []>} : vector<252x32xbf16>, vector<32x168xbf16>, vector<252x168xf32> -> vector<252x168xf32>
    %12 = arith.addf %7, %11 : vector<252x168xf32>
    %13 = vector.extract_strided_slice %1 {offsets = [2, 0], sizes = [252, 32], strides = [1, 1]} : vector<256x32xbf16> to vector<252x32xbf16>
    %c2 = arith.constant 2 : index
    %c0_8 = arith.constant 0 : index
    %c0_9 = arith.constant 0 : index
    %14 = vector.load %arg2[%c2, %c0_8, %c0_9] : memref<5x32x168xbf16, #tpu.memory_space<vmem>>, vector<1x32x168xbf16>
    %15 = vector.shape_cast %14 : vector<1x32x168xbf16> to vector<32x168xbf16>
    %cst_10 = arith.constant dense<0.000000e+00> : vector<252x168xf32>
    %16 = tpu.matmul %13, %15, %cst_10 {dimension_numbers = #tpu.dot_dimension_numbers<[1], [0], [0], [1], [0, 0, 1, 1], [], []>} : vector<252x32xbf16>, vector<32x168xbf16>, vector<252x168xf32> -> vector<252x168xf32>
    %17 = arith.addf %12, %16 : vector<252x168xf32>
    %18 = vector.extract_strided_slice %1 {offsets = [3, 0], sizes = [252, 32], strides = [1, 1]} : vector<256x32xbf16> to vector<252x32xbf16>
    %c3 = arith.constant 3 : index
    %c0_11 = arith.constant 0 : index
    %c0_12 = arith.constant 0 : index
    %19 = vector.load %arg2[%c3, %c0_11, %c0_12] : memref<5x32x168xbf16, #tpu.memory_space<vmem>>, vector<1x32x168xbf16>
    %20 = vector.shape_cast %19 : vector<1x32x168xbf16> to vector<32x168xbf16>
    %cst_13 = arith.constant dense<0.000000e+00> : vector<252x168xf32>
    %21 = tpu.matmul %18, %20, %cst_13 {dimension_numbers = #tpu.dot_dimension_numbers<[1], [0], [0], [1], [0, 0, 1, 1], [], []>} : vector<252x32xbf16>, vector<32x168xbf16>, vector<252x168xf32> -> vector<252x168xf32>
    %22 = arith.addf %17, %21 : vector<252x168xf32>
    %23 = vector.extract_strided_slice %1 {offsets = [4, 0], sizes = [252, 32], strides = [1, 1]} : vector<256x32xbf16> to vector<252x32xbf16>
    %c4 = arith.constant 4 : index
    %c0_14 = arith.constant 0 : index
    %c0_15 = arith.constant 0 : index
    %24 = vector.load %arg2[%c4, %c0_14, %c0_15] : memref<5x32x168xbf16, #tpu.memory_space<vmem>>, vector<1x32x168xbf16>
    %25 = vector.shape_cast %24 : vector<1x32x168xbf16> to vector<32x168xbf16>
    %cst_16 = arith.constant dense<0.000000e+00> : vector<252x168xf32>
    %26 = tpu.matmul %23, %25, %cst_16 {dimension_numbers = #tpu.dot_dimension_numbers<[1], [0], [0], [1], [0, 0, 1, 1], [], []>} : vector<252x32xbf16>, vector<32x168xbf16>, vector<252x168xf32> -> vector<252x168xf32>
    %27 = arith.addf %22, %26 : vector<252x168xf32>
    %c0_17 = arith.constant 0 : index
    %c0_18 = arith.constant 0 : index
    %28 = vector.load %arg3[%c0_17, %c0_18] : memref<1x168xf32, #tpu.memory_space<vmem>>, vector<1x168xf32>
    %29 = vector.broadcast %28 : vector<1x168xf32> to vector<252x168xf32>
    %30 = arith.addf %27, %29 : vector<252x168xf32>
    %cst_19 = arith.constant 0.666666686 : f32
    %31 = vector.broadcast %cst_19 : f32 to vector<252x168xf32>
    %32 = arith.mulf %31, %30 : vector<252x168xf32>
    %33 = math.tanh %32 : vector<252x168xf32>
    %cst_20 = arith.constant 1.715900e+00 : f32
    %34 = vector.broadcast %cst_20 : f32 to vector<252x168xf32>
    %35 = arith.mulf %34, %33 : vector<252x168xf32>
    %c0_21 = arith.constant 0 : index
    %c0_22 = arith.constant 0 : index
    %36 = vector.load %arg4[%c0_21, %c0_22] : memref<112x252xf32, #tpu.memory_space<vmem>>, vector<112x252xf32>
    %cst_23 = arith.constant dense<0.000000e+00> : vector<112x168xf32>
    %37 = tpu.matmul %36, %35, %cst_23 {dimension_numbers = #tpu.dot_dimension_numbers<[1], [0], [0], [1], [0, 0, 1, 1], [], []>} : vector<112x252xf32>, vector<252x168xf32>, vector<112x168xf32> -> vector<112x168xf32>
    %c0_24 = arith.constant 0 : index
    %c0_25 = arith.constant 0 : index
    %38 = vector.load %arg5[%c0_24, %c0_25] : memref<168x84xf32, #tpu.memory_space<vmem>>, vector<168x84xf32>
    %cst_26 = arith.constant dense<0.000000e+00> : vector<112x84xf32>
    %39 = tpu.matmul %37, %38, %cst_26 {dimension_numbers = #tpu.dot_dimension_numbers<[1], [0], [0], [1], [0, 0, 1, 1], [], []>} : vector<112x168xf32>, vector<168x84xf32>, vector<112x84xf32> -> vector<112x84xf32>
    %c0_27 = arith.constant 0 : index
    %c0_28 = arith.constant 0 : index
    %40 = vector.load %arg18[%c0_27, %c0_28] : memref<112x84xf32, #tpu.memory_space<vmem>>, vector<112x84xf32>
    tpu.vector_store %arg18[%c0_27, %c0_28], %39 {strides = array<i32>} : memref<112x84xf32, #tpu.memory_space<vmem>>, vector<112x84xf32>,
    %c0_29 = arith.constant 0 : index
    %c0_30 = arith.constant 0 : index
    %41 = vector.load %arg18[%c0_29, %c0_30] : memref<112x84xf32, #tpu.memory_space<vmem>>, vector<112x84xf32>
    %42 = arith.truncf %41 : vector<112x84xf32> to vector<112x84xbf16>
    %cst_31 = arith.constant 0.000000e+00 : f32
    %43 = vector.broadcast %cst_31 : f32 to vector<108x160xf32>
    %44 = vector.extract_strided_slice %42 {offsets = [0, 0], sizes = [108, 84], strides = [1, 1]} : vector<112x84xbf16> to vector<108x84xbf16>
    %c0_32 = arith.constant 0 : index
    %c0_33 = arith.constant 0 : index
    %c0_34 = arith.constant 0 : index
    %45 = vector.load %arg6[%c0_32, %c0_33, %c0_34] : memref<5x84x160xbf16, #tpu.memory_space<vmem>>, vector<1x84x160xbf16>
    %46 = vector.shape_cast %45 : vector<1x84x160xbf16> to vector<84x160xbf16>
    %cst_35 = arith.constant dense<0.000000e+00> : vector<108x160xf32>
    %47 = tpu.matmul %44, %46, %cst_35 {dimension_numbers = #tpu.dot_dimension_numbers<[1], [0], [0], [1], [0, 0, 1, 1], [], []>} : vector<108x84xbf16>, vector<84x160xbf16>, vector<108x160xf32> -> vector<108x160xf32>
    %48 = arith.addf %43, %47 : vector<108x160xf32>
    %49 = vector.extract_strided_slice %42 {offsets = [1, 0], sizes = [108, 84], strides = [1, 1]} : vector<112x84xbf16> to vector<108x84xbf16>
    %c1_36 = arith.constant 1 : index
    %c0_37 = arith.constant 0 : index
    %c0_38 = arith.constant 0 : index
    %50 = vector.load %arg6[%c1_36, %c0_37, %c0_38] : memref<5x84x160xbf16, #tpu.memory_space<vmem>>, vector<1x84x160xbf16>
    %51 = vector.shape_cast %50 : vector<1x84x160xbf16> to vector<84x160xbf16>
    %cst_39 = arith.constant dense<0.000000e+00> : vector<108x160xf32>
    %52 = tpu.matmul %49, %51, %cst_39 {dimension_numbers = #tpu.dot_dimension_numbers<[1], [0], [0], [1], [0, 0, 1, 1], [], []>} : vector<108x84xbf16>, vector<84x160xbf16>, vector<108x160xf32> -> vector<108x160xf32>
    %53 = arith.addf %48, %52 : vector<108x160xf32>
    %54 = vector.extract_strided_slice %42 {offsets = [2, 0], sizes = [108, 84], strides = [1, 1]} : vector<112x84xbf16> to vector<108x84xbf16>
    %c2_40 = arith.constant 2 : index
    %c0_41 = arith.constant 0 : index
    %c0_42 = arith.constant 0 : index
    %55 = vector.load %arg6[%c2_40, %c0_41, %c0_42] : memref<5x84x160xbf16, #tpu.memory_space<vmem>>, vector<1x84x160xbf16>
    %56 = vector.shape_cast %55 : vector<1x84x160xbf16> to vector<84x160xbf16>
    %cst_43 = arith.constant dense<0.000000e+00> : vector<108x160xf32>
    %57 = tpu.matmul %54, %56, %cst_43 {dimension_numbers = #tpu.dot_dimension_numbers<[1], [0], [0], [1], [0, 0, 1, 1], [], []>} : vector<108x84xbf16>, vector<84x160xbf16>, vector<108x160xf32> -> vector<108x160xf32>
    %58 = arith.addf %53, %57 : vector<108x160xf32>
    %59 = vector.extract_strided_slice %42 {offsets = [3, 0], sizes = [108, 84], strides = [1, 1]} : vector<112x84xbf16> to vector<108x84xbf16>
    %c3_44 = arith.constant 3 : index
    %c0_45 = arith.constant 0 : index
    %c0_46 = arith.constant 0 : index
    %60 = vector.load %arg6[%c3_44, %c0_45, %c0_46] : memref<5x84x160xbf16, #tpu.memory_space<vmem>>, vector<1x84x160xbf16>
    %61 = vector.shape_cast %60 : vector<1x84x160xbf16> to vector<84x160xbf16>
    %cst_47 = arith.constant dense<0.000000e+00> : vector<108x160xf32>
    %62 = tpu.matmul %59, %61, %cst_47 {dimension_numbers = #tpu.dot_dimension_numbers<[1], [0], [0], [1], [0, 0, 1, 1], [], []>} : vector<108x84xbf16>, vector<84x160xbf16>, vector<108x160xf32> -> vector<108x160xf32>
    %63 = arith.addf %58, %62 : vector<108x160xf32>
    %64 = vector.extract_strided_slice %42 {offsets = [4, 0], sizes = [108, 84], strides = [1, 1]} : vector<112x84xbf16> to vector<108x84xbf16>
    %c4_48 = arith.constant 4 : index
    %c0_49 = arith.constant 0 : index
    %c0_50 = arith.constant 0 : index
    %65 = vector.load %arg6[%c4_48, %c0_49, %c0_50] : memref<5x84x160xbf16, #tpu.memory_space<vmem>>, vector<1x84x160xbf16>
    %66 = vector.shape_cast %65 : vector<1x84x160xbf16> to vector<84x160xbf16>
    %cst_51 = arith.constant dense<0.000000e+00> : vector<108x160xf32>
    %67 = tpu.matmul %64, %66, %cst_51 {dimension_numbers = #tpu.dot_dimension_numbers<[1], [0], [0], [1], [0, 0, 1, 1], [], []>} : vector<108x84xbf16>, vector<84x160xbf16>, vector<108x160xf32> -> vector<108x160xf32>
    %68 = arith.addf %63, %67 : vector<108x160xf32>
    %c0_52 = arith.constant 0 : index
    %c0_53 = arith.constant 0 : index
    %69 = vector.load %arg7[%c0_52, %c0_53] : memref<1x160xf32, #tpu.memory_space<vmem>>, vector<1x160xf32>
    %70 = vector.broadcast %69 : vector<1x160xf32> to vector<108x160xf32>
    %71 = arith.addf %68, %70 : vector<108x160xf32>
    %cst_54 = arith.constant 0.666666686 : f32
    %72 = vector.broadcast %cst_54 : f32 to vector<108x160xf32>
    %73 = arith.mulf %72, %71 : vector<108x160xf32>
    %74 = math.tanh %73 : vector<108x160xf32>
    %cst_55 = arith.constant 1.715900e+00 : f32
    %75 = vector.broadcast %cst_55 : f32 to vector<108x160xf32>
    %76 = arith.mulf %75, %74 : vector<108x160xf32>
    %c0_56 = arith.constant 0 : index
    %c0_57 = arith.constant 0 : index
    %77 = vector.load %arg8[%c0_56, %c0_57] : memref<40x108xf32, #tpu.memory_space<vmem>>, vector<40x108xf32>
    %cst_58 = arith.constant dense<0.000000e+00> : vector<40x160xf32>
    %78 = tpu.matmul %77, %76, %cst_58 {dimension_numbers = #tpu.dot_dimension_numbers<[1], [0], [0], [1], [0, 0, 1, 1], [], []>} : vector<40x108xf32>, vector<108x160xf32>, vector<40x160xf32> -> vector<40x160xf32>
    %c0_59 = arith.constant 0 : index
    %c0_60 = arith.constant 0 : index
    %79 = vector.load %arg9[%c0_59, %c0_60] : memref<160x80xf32, #tpu.memory_space<vmem>>, vector<160x80xf32>
    %cst_61 = arith.constant dense<0.000000e+00> : vector<40x80xf32>
    %80 = tpu.matmul %78, %79, %cst_61 {dimension_numbers = #tpu.dot_dimension_numbers<[1], [0], [0], [1], [0, 0, 1, 1], [], []>} : vector<40x160xf32>, vector<160x80xf32>, vector<40x80xf32> -> vector<40x80xf32>
    %c0_62 = arith.constant 0 : index
    %c0_63 = arith.constant 0 : index
    %81 = vector.load %arg19[%c0_62, %c0_63] : memref<40x80xf32, #tpu.memory_space<vmem>>, vector<40x80xf32>
    tpu.vector_store %arg19[%c0_62, %c0_63], %80 {strides = array<i32>} : memref<40x80xf32, #tpu.memory_space<vmem>>, vector<40x80xf32>,
    %cst_64 = arith.constant 0.000000e+00 : f32
    %82 = vector.broadcast %cst_64 : f32 to vector<36x120xf32>
    %c0_65 = arith.constant 0 : index
    %c0_66 = arith.constant 0 : index
    %83 = vector.load %arg19[%c0_65, %c0_66] : memref<40x80xf32, #tpu.memory_space<vmem>>, vector<36x80xf32>
    %c0_67 = arith.constant 0 : index
    %c0_68 = arith.constant 0 : index
    %c0_69 = arith.constant 0 : index
    %84 = vector.load %arg10[%c0_67, %c0_68, %c0_69] : memref<5x80x120xf32, #tpu.memory_space<vmem>>, vector<1x80x120xf32>
    %85 = vector.shape_cast %84 : vector<1x80x120xf32> to vector<80x120xf32>
    %cst_70 = arith.constant dense<0.000000e+00> : vector<36x120xf32>
    %86 = tpu.matmul %83, %85, %cst_70 {dimension_numbers = #tpu.dot_dimension_numbers<[1], [0], [0], [1], [0, 0, 1, 1], [], []>} : vector<36x80xf32>, vector<80x120xf32>, vector<36x120xf32> -> vector<36x120xf32>
    %87 = arith.addf %82, %86 : vector<36x120xf32>
    %c1_71 = arith.constant 1 : index
    %c0_72 = arith.constant 0 : index
    %88 = vector.load %arg19[%c1_71, %c0_72] : memref<40x80xf32, #tpu.memory_space<vmem>>, vector<36x80xf32>
    %c1_73 = arith.constant 1 : index
    %c0_74 = arith.constant 0 : index
    %c0_75 = arith.constant 0 : index
    %89 = vector.load %arg10[%c1_73, %c0_74, %c0_75] : memref<5x80x120xf32, #tpu.memory_space<vmem>>, vector<1x80x120xf32>
    %90 = vector.shape_cast %89 : vector<1x80x120xf32> to vector<80x120xf32>
    %cst_76 = arith.constant dense<0.000000e+00> : vector<36x120xf32>
    %91 = tpu.matmul %88, %90, %cst_76 {dimension_numbers = #tpu.dot_dimension_numbers<[1], [0], [0], [1], [0, 0, 1, 1], [], []>} : vector<36x80xf32>, vector<80x120xf32>, vector<36x120xf32> -> vector<36x120xf32>
    %92 = arith.addf %87, %91 : vector<36x120xf32>
    %c2_77 = arith.constant 2 : index
    %c0_78 = arith.constant 0 : index
    %93 = vector.load %arg19[%c2_77, %c0_78] : memref<40x80xf32, #tpu.memory_space<vmem>>, vector<36x80xf32>
    %c2_79 = arith.constant 2 : index
    %c0_80 = arith.constant 0 : index
    %c0_81 = arith.constant 0 : index
    %94 = vector.load %arg10[%c2_79, %c0_80, %c0_81] : memref<5x80x120xf32, #tpu.memory_space<vmem>>, vector<1x80x120xf32>
    %95 = vector.shape_cast %94 : vector<1x80x120xf32> to vector<80x120xf32>
    %cst_82 = arith.constant dense<0.000000e+00> : vector<36x120xf32>
    %96 = tpu.matmul %93, %95, %cst_82 {dimension_numbers = #tpu.dot_dimension_numbers<[1], [0], [0], [1], [0, 0, 1, 1], [], []>} : vector<36x80xf32>, vector<80x120xf32>, vector<36x120xf32> -> vector<36x120xf32>
    %97 = arith.addf %92, %96 : vector<36x120xf32>
    %c3_83 = arith.constant 3 : index
    %c0_84 = arith.constant 0 : index
    %98 = vector.load %arg19[%c3_83, %c0_84] : memref<40x80xf32, #tpu.memory_space<vmem>>, vector<36x80xf32>
    %c3_85 = arith.constant 3 : index
    %c0_86 = arith.constant 0 : index
    %c0_87 = arith.constant 0 : index
    %99 = vector.load %arg10[%c3_85, %c0_86, %c0_87] : memref<5x80x120xf32, #tpu.memory_space<vmem>>, vector<1x80x120xf32>
    %100 = vector.shape_cast %99 : vector<1x80x120xf32> to vector<80x120xf32>
    %cst_88 = arith.constant dense<0.000000e+00> : vector<36x120xf32>
    %101 = tpu.matmul %98, %100, %cst_88 {dimension_numbers = #tpu.dot_dimension_numbers<[1], [0], [0], [1], [0, 0, 1, 1], [], []>} : vector<36x80xf32>, vector<80x120xf32>, vector<36x120xf32> -> vector<36x120xf32>
    %102 = arith.addf %97, %101 : vector<36x120xf32>
    %c4_89 = arith.constant 4 : index
    %c0_90 = arith.constant 0 : index
    %103 = vector.load %arg19[%c4_89, %c0_90] : memref<40x80xf32, #tpu.memory_space<vmem>>, vector<36x80xf32>
    %c4_91 = arith.constant 4 : index
    %c0_92 = arith.constant 0 : index
    %c0_93 = arith.constant 0 : index
    %104 = vector.load %arg10[%c4_91, %c0_92, %c0_93] : memref<5x80x120xf32, #tpu.memory_space<vmem>>, vector<1x80x120xf32>
    %105 = vector.shape_cast %104 : vector<1x80x120xf32> to vector<80x120xf32>
    %cst_94 = arith.constant dense<0.000000e+00> : vector<36x120xf32>
    %106 = tpu.matmul %103, %105, %cst_94 {dimension_numbers = #tpu.dot_dimension_numbers<[1], [0], [0], [1], [0, 0, 1, 1], [], []>} : vector<36x80xf32>, vector<80x120xf32>, vector<36x120xf32> -> vector<36x120xf32>
    %107 = arith.addf %102, %106 : vector<36x120xf32>
    %c0_95 = arith.constant 0 : index
    %c0_96 = arith.constant 0 : index
    %108 = vector.load %arg11[%c0_95, %c0_96] : memref<8x36xf32, #tpu.memory_space<vmem>>, vector<8x36xf32>
    %cst_97 = arith.constant dense<0.000000e+00> : vector<8x120xf32>
    %109 = tpu.matmul %108, %107, %cst_97 {dimension_numbers = #tpu.dot_dimension_numbers<[1], [0], [0], [1], [0, 0, 1, 1], [], []>} : vector<8x36xf32>, vector<36x120xf32>, vector<8x120xf32> -> vector<8x120xf32>
    %c0_98 = arith.constant 0 : index
    %c0_99 = arith.constant 0 : index
    %110 = vector.load %arg12[%c0_98, %c0_99] : memref<1x120xf32, #tpu.memory_space<vmem>>, vector<1x120xf32>
    %111 = vector.broadcast %110 : vector<1x120xf32> to vector<8x120xf32>
    %112 = arith.addf %109, %111 : vector<8x120xf32>
    %cst_100 = arith.constant 0.666666686 : f32
    %113 = vector.broadcast %cst_100 : f32 to vector<8x120xf32>
    %114 = arith.mulf %113, %112 : vector<8x120xf32>
    %115 = math.tanh %114 : vector<8x120xf32>
    %cst_101 = arith.constant 1.715900e+00 : f32
    %116 = vector.broadcast %cst_101 : f32 to vector<8x120xf32>
    %117 = arith.mulf %116, %115 : vector<8x120xf32>
    %c0_102 = arith.constant 0 : index
    %c0_103 = arith.constant 0 : index
    %118 = vector.load %arg13[%c0_102, %c0_103] : memref<120x84xf32, #tpu.memory_space<vmem>>, vector<120x84xf32>
    %cst_104 = arith.constant dense<0.000000e+00> : vector<8x84xf32>
    %119 = tpu.matmul %117, %118, %cst_104 {dimension_numbers = #tpu.dot_dimension_numbers<[1], [0], [0], [1], [0, 0, 1, 1], [], []>} : vector<8x120xf32>, vector<120x84xf32>, vector<8x84xf32> -> vector<8x84xf32>
    %c0_105 = arith.constant 0 : index
    %c0_106 = arith.constant 0 : index
    %120 = vector.load %arg14[%c0_105, %c0_106] : memref<1x84xf32, #tpu.memory_space<vmem>>, vector<1x84xf32>
    %121 = vector.broadcast %120 : vector<1x84xf32> to vector<8x84xf32>
    %122 = arith.addf %119, %121 : vector<8x84xf32>
    %cst_107 = arith.constant 0.666666686 : f32
    %123 = vector.broadcast %cst_107 : f32 to vector<8x84xf32>
    %124 = arith.mulf %123, %122 : vector<8x84xf32>
    %125 = math.tanh %124 : vector<8x84xf32>
    %cst_108 = arith.constant 1.715900e+00 : f32
    %126 = vector.broadcast %cst_108 : f32 to vector<8x84xf32>
    %127 = arith.mulf %126, %125 : vector<8x84xf32>
    %c0_109 = arith.constant 0 : index
    %c0_110 = arith.constant 0 : index
    %128 = vector.load %arg15[%c0_109, %c0_110] : memref<84x128xf32, #tpu.memory_space<vmem>>, vector<84x128xf32>
    %cst_111 = arith.constant dense<0.000000e+00> : vector<8x128xf32>
    %129 = tpu.matmul %127, %128, %cst_111 {dimension_numbers = #tpu.dot_dimension_numbers<[1], [0], [0], [1], [0, 0, 1, 1], [], []>} : vector<8x84xf32>, vector<84x128xf32>, vector<8x128xf32> -> vector<8x128xf32>
    %c0_112 = arith.constant 0 : index
    %c0_113 = arith.constant 0 : index
    %130 = vector.load %arg16[%c0_112, %c0_113] : memref<1x128xf32, #tpu.memory_space<vmem>>, vector<1x128xf32>
    %131 = vector.broadcast %130 : vector<1x128xf32> to vector<8x128xf32>
    %132 = arith.addf %129, %131 : vector<8x128xf32>
    %c0_114 = arith.constant 0 : index
    %c0_115 = arith.constant 0 : index
    %133 = vector.load %arg17[%c0_114, %c0_115] : memref<8x128xf32, #tpu.memory_space<vmem>>, vector<8x128xf32>
    tpu.vector_store %arg17[%c0_114, %c0_115], %132 {strides = array<i32>} : memref<8x128xf32, #tpu.memory_space<vmem>>, vector<8x128xf32>,
    return
  }
  func.func @transform_0(%arg0: i32) -> (i32, i32) {
    %c0_i32 = arith.constant 0 : i32
    %c0_i32_0 = arith.constant 0 : i32
    return %arg0, %c0_i32 : i32, i32
  }
  func.func @transform_1(%arg0: i32) -> (i32, i32, i32) {
    %c0_i32 = arith.constant 0 : i32
    %c0_i32_0 = arith.constant 0 : i32
    %c0_i32_1 = arith.constant 0 : i32
    %c0_i32_2 = arith.constant 0 : i32
    return %c0_i32, %c0_i32_0, %c0_i32_1 : i32, i32, i32
  }
  func.func @transform_2(%arg0: i32) -> (i32, i32) {
    %c0_i32 = arith.constant 0 : i32
    %c0_i32_0 = arith.constant 0 : i32
    %c0_i32_1 = arith.constant 0 : i32
    return %c0_i32, %c0_i32_0 : i32, i32
  }
  func.func @transform_3(%arg0: i32) -> (i32, i32) {
    %c0_i32 = arith.constant 0 : i32
    %c0_i32_0 = arith.constant 0 : i32
    %c0_i32_1 = arith.constant 0 : i32
    return %c0_i32, %c0_i32_0 : i32, i32
  }
  func.func @transform_4(%arg0: i32) -> (i32, i32) {
    %c0_i32 = arith.constant 0 : i32
    %c0_i32_0 = arith.constant 0 : i32
    %c0_i32_1 = arith.constant 0 : i32
    return %c0_i32, %c0_i32_0 : i32, i32
  }
  func.func @transform_5(%arg0: i32) -> (i32, i32, i32) {
    %c0_i32 = arith.constant 0 : i32
    %c0_i32_0 = arith.constant 0 : i32
    %c0_i32_1 = arith.constant 0 : i32
    %c0_i32_2 = arith.constant 0 : i32
    return %c0_i32, %c0_i32_0, %c0_i32_1 : i32, i32, i32
  }
  func.func @transform_6(%arg0: i32) -> (i32, i32) {
    %c0_i32 = arith.constant 0 : i32
    %c0_i32_0 = arith.constant 0 : i32
    %c0_i32_1 = arith.constant 0 : i32
    return %c0_i32, %c0_i32_0 : i32, i32
  }
  func.func @transform_7(%arg0: i32) -> (i32, i32) {
    %c0_i32 = arith.constant 0 : i32
    %c0_i32_0 = arith.constant 0 : i32
    %c0_i32_1 = arith.constant 0 : i32
    return %c0_i32, %c0_i32_0 : i32, i32
  }
  func.func @transform_8(%arg0: i32) -> (i32, i32) {
    %c0_i32 = arith.constant 0 : i32
    %c0_i32_0 = arith.constant 0 : i32
    %c0_i32_1 = arith.constant 0 : i32
    return %c0_i32, %c0_i32_0 : i32, i32
  }
  func.func @transform_9(%arg0: i32) -> (i32, i32, i32) {
    %c0_i32 = arith.constant 0 : i32
    %c0_i32_0 = arith.constant 0 : i32
    %c0_i32_1 = arith.constant 0 : i32
    %c0_i32_2 = arith.constant 0 : i32
    return %c0_i32, %c0_i32_0, %c0_i32_1 : i32, i32, i32
  }
  func.func @transform_10(%arg0: i32) -> (i32, i32) {
    %c0_i32 = arith.constant 0 : i32
    %c0_i32_0 = arith.constant 0 : i32
    %c0_i32_1 = arith.constant 0 : i32
    return %c0_i32, %c0_i32_0 : i32, i32
  }
  func.func @transform_11(%arg0: i32) -> (i32, i32) {
    %c0_i32 = arith.constant 0 : i32
    %c0_i32_0 = arith.constant 0 : i32
    %c0_i32_1 = arith.constant 0 : i32
    return %c0_i32, %c0_i32_0 : i32, i32
  }
  func.func @transform_12(%arg0: i32) -> (i32, i32) {
    %c0_i32 = arith.constant 0 : i32
    %c0_i32_0 = arith.constant 0 : i32
    %c0_i32_1 = arith.constant 0 : i32
    return %c0_i32, %c0_i32_0 : i32, i32
  }
  func.func @transform_13(%arg0: i32) -> (i32, i32) {
    %c0_i32 = arith.constant 0 : i32
    %c0_i32_0 = arith.constant 0 : i32
    %c0_i32_1 = arith.constant 0 : i32
    return %c0_i32, %c0_i32_0 : i32, i32
  }
  func.func @transform_14(%arg0: i32) -> (i32, i32) {
    %c0_i32 = arith.constant 0 : i32
    %c0_i32_0 = arith.constant 0 : i32
    %c0_i32_1 = arith.constant 0 : i32
    return %c0_i32, %c0_i32_0 : i32, i32
  }
  func.func @transform_15(%arg0: i32) -> (i32, i32) {
    %c0_i32 = arith.constant 0 : i32
    %c0_i32_0 = arith.constant 0 : i32
    %c0_i32_1 = arith.constant 0 : i32
    return %c0_i32, %c0_i32_0 : i32, i32
  }
  func.func @transform_16(%arg0: i32) -> (i32, i32) {
    %c0_i32 = arith.constant 0 : i32
    %c0_i32_0 = arith.constant 0 : i32
    return %arg0, %c0_i32 : i32, i32
  }
}

</mosaic_0001>

<bundles_post_ra>
// kernel: lenet5_forward.1
= control target key start
LH: loop header
LB: loop body
LE: loop exit
PB: predicated region body
PF: predicated region fallthrough
CT: control target
= control target key end

     0   :  { %s9065_s0 = inlined_call_operand.vmem [shape: f32[256,32], index: 0, kind: input, shape index: {}]   ;;  %s9066_s1 = inlined_call_operand.vmem [shape: bf16[5,32,168], index: 1, kind: input, shape index: {}]   ;;  %s9067_s2 = inlined_call_operand.vmem [shape: f32[1,168], index: 2, kind: input, shape index: {}]   ;;  %s9068_s3 = inlined_call_operand.vmem [shape: f32[112,252], index: 3, kind: input, shape index: {}]   ;;  %s9069_s4 = inlined_call_operand.vmem [shape: f32[168,84], index: 4, kind: input, shape index: {}]   ;;  %s9070_s5 = inlined_call_operand.vmem [shape: bf16[5,84,160], index: 5, kind: input, shape index: {}]   ;;  %s9071_s6 = inlined_call_operand.vmem [shape: f32[1,160], index: 6, kind: input, shape index: {}]   ;;  %s9072_s7 = inlined_call_operand.hbm [shape: f32[40,108], index: 7, kind: input, shape index: {}]   ;;  %s9073_s8 = inlined_call_operand.hbm [shape: f32[160,80], index: 8, kind: input, shape index: {}]   ;;  %s9074_s9 = inlined_call_operand.vmem [shape: f32[5,80,120], index: 9, kind: input, shape index: {}]   ;;  %s9075_s10 = inlined_call_operand.vmem [shape: f32[8,36], index: 10, kind: input, shape index: {}]   ;;  %s9076_s11 = inlined_call_operand.vmem [shape: f32[1,120], index: 11, kind: input, shape index: {}]   ;;  %s9077_s12 = inlined_call_operand.vmem [shape: f32[120,84], index: 12, kind: input, shape index: {}]   ;;  %s9078_s13 = inlined_call_operand.vmem [shape: f32[1,84], index: 13, kind: input, shape index: {}]   ;;  %s9079_s14 = inlined_call_operand.hbm [shape: f32[84,128], index: 14, kind: input, shape index: {}]   ;;  %s9080_s15 = inlined_call_operand.vmem [shape: f32[1,128], index: 15, kind: input, shape index: {}]   ;;  %s9081_s16 = inlined_call_operand.vmem [shape: f32[8,128], index: 16, kind: output, shape index: {}]  }
   0x1   :  { %9090 = sst [smem:[#allocation103_spill]] %s9065_s0 }
   0x2   :  { %21 = vsyncpa [#allocation5], 0 }
   0x3   :  { %22 = vsyncpa [#allocation7], 0  ;;  %s6216_s21 = smov [#allocation6]   ;;  %s6217_s23 = smov [#allocation4]  }
   0x4   :  { %s54_s22 = sshll.u32 %s6216_s21, 4  ;;  %s42_s24 = sshll.u32 %s6217_s23, 4  ;;  %s55_s22 = int_to_ptr.vmem [resolvable:$true] %s54_s22  ;;  %s43_s24 = int_to_ptr.vmem [resolvable:$true] %s42_s24 }
   0x5   :  { %s6160_s25 = scalar_lea.vmem %s55_s22, 2560  ;;  %p6165_p1 = scmp.lt.s32.totalorder %s55_s22, %s55_s22 }
   0x6   :  { %p6161_p0 = scmp.ne.s32.totalorder %s55_s22, %s6160_s25  ;;  %p6166_p2 = scmp.lt.s32.totalorder %s6160_s25, %s6160_s25 }
   0x8   :  { %p6167_p3 = por %p6166_p2, %p6165_p1 }
   0xa   :  { %p6168_p4 = pnand %p6167_p3, %p6161_p0 }
   0xc   :  { %6171 = shalt.err (!%p6168_p4)
}
   0xd   :  { %s6218_s26 = smov 128   ;;  %s6219_s27 = smov 8  }
   0xe   :  { %60 = dma.hbm_to_vmem [thread:$0]  %s9073_s8, 2560, %s55_s22, [#allocation7], %s6218_s26, %s6218_s26, %s6219_s27  }
   0xf   :  { %s6180_s30 = scalar_lea.vmem %s43_s24, 640  ;;  %p6185_p6 = scmp.lt.s32.totalorder %s43_s24, %s43_s24 }
  0x10   :  { %p6181_p5 = scmp.ne.s32.totalorder %s43_s24, %s6180_s30  ;;  %p6186_p7 = scmp.lt.s32.totalorder %s6180_s30, %s6180_s30 }
  0x12   :  { %p6187_p8 = por %p6186_p7, %p6185_p6 }
  0x14   :  { %p6188_p9 = pnand %p6187_p8, %p6181_p5 }
  0x16   :  { %6191 = shalt.err (!%p6188_p9)
}
  0x17   :  { %48 = dma.hbm_to_vmem [thread:$0]  %s9072_s7, 640, %s43_s24, [#allocation5], %s6218_s26, %s6218_s26, %s6219_s27  }
  0x18   :  { %s6220_s18 = smov [#allocation8]  }
  0x19   :  { %s76_s19 = sshll.u32 %s6220_s18, 4  ;;  %s77_s19 = int_to_ptr.vmem [resolvable:$true] %s76_s19 }
  0x1a   :  { %s6200_s20 = scalar_lea.vmem %s77_s19, 1408  ;;  %p6205_p11 = scmp.lt.s32.totalorder %s77_s19, %s77_s19 }
  0x1b   :  { %p6201_p10 = scmp.ne.s32.totalorder %s77_s19, %s6200_s20  ;;  %p6206_p12 = scmp.lt.s32.totalorder %s6200_s20, %s6200_s20 }
  0x1d   :  { %p6207_p13 = por %p6206_p12, %p6205_p11 }
  0x1f   :  { %p6208_p0 = pnand %p6207_p13, %p6201_p10 }
  0x21   :  { %6211 = shalt.err (!%p6208_p0)
}
  0x22   :  { %82 = dma.hbm_to_vmem [thread:$0]  %s9079_s14, 1408, %s77_s19, [#allocation7], %s6218_s26, %s6218_s26, %s6219_s27  }
  0x23   :  { %6212 = dma.done.wait [#allocation5], 640  }
  0x24   :  { %6213 = vsyncadd [#allocation5], 4294966656 }
  0x25   :  { %6214 = dma.done.wait [#allocation7], 3968  }
  0x26   :  { %6215 = vsyncadd [#allocation7], 4294963328  ;;  %v9083_v0 = vmov 0   ;;  %v5850_v1 = vld [vmem:[%s9066_s1 + $0x34] ss:$8 sps:$4 sm:$0xff]   ;;  %s9091_s7 = sld [smem:[#allocation103_spill]] }
  0x27   :  { %381 = vmatprep.mubr.bf16.mxu0 %v9083_v0  ;;  %626 = vmatprep.mubr.bf16.mxu1 %v9083_v0  ;;  %v5852_v2 = vld [vmem:[%s9066_s1 + $0x14] ss:$8 sps:$4 sm:$0xff]   ;;  %v5854_v3 = vld [vmem:[%s9066_s1 + $0x30] ss:$8 sps:$4 sm:$0xff]   ;;  %v5856_v5 = vld [vmem:[%s9066_s1 + $0x24] ss:$8 sps:$4 sm:$0xff]  }
  0x28   :  { %361 = vmatprep.subr.bf16.mxu0 %v5850_v1  ;;  %v5855_v4 = vld [vmem:[%s9066_s1 + $0x10] ss:$8 sps:$4 sm:$0xff]   ;;  %606 = vmatprep.subr.bf16.mxu1 %v5852_v2  ;;  %v5858_v6 = vld [vmem:[%s9066_s1 + $0x4] ss:$8 sps:$4 sm:$0xff]   ;;  %v5860_v7 = vld [vmem:[%s9066_s1 + $0x20] ss:$8 sps:$4 sm:$0xff]  }
  0x29   :  { %362 = vmatpush1.bf16.msra.mxu0 %v5854_v3  ;;  %607 = vmatpush1.bf16.msra.mxu1 %v5855_v4  ;;  %v5861_v8 = vld [vmem:[%s9066_s1] ss:$8 sps:$4 sm:$0xff]   ;;  %vm300_vm0 = vcmask 261120   ;;  %vm152_vm1 = vsmask.f32 7424  ;;  %vm808_vm3 = vcmask 1046528  }
  0x2a   :  { %363 = vmatprep.subr.bf16.mxu0 %v5856_v5  ;;  %608 = vmatprep.subr.bf16.mxu1 %v5858_v6  ;;  %v5864_v23 = vld [vmem:[%s9066_s1 + $0x54] ss:$8 sps:$4 sm:$0xff]   ;;  %v5862_v27 = vld [vmem:[%s9066_s1 + $0x50] ss:$8 sps:$4 sm:$0xff]   ;;  %v5865_v34 = vld [vmem:[%s9066_s1 + $0x40] ss:$8 sps:$4 sm:$0xff]  }
  0x2b   :  { %v5867_v35 = vld [vmem:[%s9066_s1 + $0x44] ss:$8 sps:$4 sm:$0xff]   ;;  %v5868_v41 = vld [vmem:[%s9066_s1 + $0x70] ss:$8 sps:$4 sm:$0xff]   ;;  %v5870_v42 = vld [vmem:[%s9066_s1 + $0x74] ss:$8 sps:$4 sm:$0xff]  }
  0x2c   :  { %v95_v9 = vld [vmem:[%s9091_s7] sm:$0xff]  ;;  %v96_v10 = vld [vmem:[%s9091_s7 + $0x8] sm:$0xff]  ;;  %v97_v11 = vld [vmem:[%s9091_s7 + $0x10] sm:$0xff]  ;;  %vm1170_vm2 = vsmask.f32 6400  ;;  %vm1564_vm4 = vcmask 1045504  }
  0x2d   :  { %v98_v12 = vld [vmem:[%s9091_s7 + $0x18] sm:$0xff]  ;;  %v6356_v13 = vpack.c.bf16 %v96_v10, %v95_v9  ;;  %v99_v14 = vld [vmem:[%s9091_s7 + $0x20] sm:$0xff]  ;;  %v100_v16 = vld [vmem:[%s9091_s7 + $0x28] sm:$0xff]  ;;  %364 = vmatpush1.bf16.msra.mxu0 %v5860_v7  ;;  %609 = vmatpush1.bf16.msra.mxu1 %v5861_v8  ;;  %vm2217_vm5 = vcmask 1014784   ;;  %vm2260_vm6 = vcmask 1043456   ;;  %vm2805_vm7 = vcmask 1041408  }
  0x2e   :  { %v6361_v15 = vpack.c.bf16 %v98_v12, %v97_v11  ;;  %v6368_v19 = vpack.c.bf16 %v100_v16, %v99_v14  ;;  %v101_v28 = vld [vmem:[%s9091_s7 + $0x30] sm:$0xff]  ;;  %v102_v29 = vld [vmem:[%s9091_s7 + $0x38] sm:$0xff]  ;;  %920 = vmatprep.subr.bf16.mxu0 %v5864_v23  ;;  %v103_v39 = vld [vmem:[%s9091_s7 + $0x40] sm:$0xff]  ;;  %1314 = vmatprep.subr.bf16.mxu1 %v5870_v42  ;;  %vm2437_vm8 = vcmask 326656   ;;  %vm2615_vm9 = vcmask 687104  }
  0x2f   :  { %v154_v17 = vshrl.u32 %v6356_v13, 16  ;;  %v156_v18 = vshll.u32 %v6356_v13, 16  ;;  %v6393_v33 = vpack.c.bf16 %v102_v29, %v101_v28  ;;  %v104_v40 = vld [vmem:[%s9091_s7 + $0x48] sm:$0xff]  ;;  %v105_v48 = vld [vmem:[%s9091_s7 + $0x50] sm:$0xff]  ;;  %v106_v49 = vld [vmem:[%s9091_s7 + $0x58] sm:$0xff]  ;;  %vm3957_vm10 = vcmask 883712  }
  0x30   :  { %v161_v20 = vshll.u32 %v6361_v15, 16  ;;  %5140 = vmatmul.mubr.msk.bf16.vlgmr.msra.gmra.mxu1 %vm300_vm0, %v6356_v13  ;;  %v165_v25 = vshrl.u32 %v6361_v15, 16  ;;  %v169_v26 = vshll.u32 %v6368_v19, 16  ;;  %v173_v37 = vshrl.u32 %v6368_v19, 16  ;;  %v5871_v43 = vld [vmem:[%s9066_s1 + $0x60] ss:$8 sps:$4 sm:$0xff]  }
  0x31   :  { %v158_v21 = vrot.slane %v156_v18, 1  ;;  %636 = vmatprep.mubr.bf16.mxu1 %v9083_v0  ;;  %v177_v38 = vshll.u32 %v6393_v33, 16  ;;  %v5873_v44 = vld [vmem:[%s9066_s1 + $0x64] ss:$8 sps:$4 sm:$0xff]   ;;  %v6427_v47 = vpack.c.bf16 %v104_v40, %v103_v39  ;;  %1315 = vmatpush1.bf16.msra.mxu1 %v5868_v41  ;;  %v181_v51 = vshrl.u32 %v6393_v33, 16  ;;  %v109_v28 = vld [vmem:[%s9091_s7 + $0x70] sm:$0xff] }
  0x32   :  { %v163_v22 = vrot.slane %v161_v20, 1  ;;  %v171_v32 = vrot.slane %v169_v26, 1  ;;  %1316 = vmatprep.subr.bf16.mxu1 %v5873_v44  ;;  %v1171_v53 = vrot.slane %v154_v17, 1  ;;  %v1172_v54 = vrot.slane %v156_v18, 2  ;;  %v107_v60 = vld [vmem:[%s9091_s7 + $0x60] sm:$0xff]  ;;  %v108_v61 = vld [vmem:[%s9091_s7 + $0x68] sm:$0xff] }
  0x33   :  { %v159_v24 = vor.u32 %v158_v21, %v154_v17  ;;  %v179_v46 = vrot.slane %v177_v38, 1  ;;  %v185_v52 = vshll.u32 %v6427_v47, 16  ;;  %v1175_v55 = vrot.slane %v161_v20, 2  ;;  %v110_v29 = vld [vmem:[%s9091_s7 + $0x78] sm:$0xff]  ;;  %v111_v42 = vld [vmem:[%s9091_s7 + $0x80] sm:$0xff] }
  0x34   :  { %v167_v31 = vor.u32 %v165_v25, %v163_v22  ;;  %v175_v45 = vor.u32 %v173_v37, %v171_v32  ;;  %v1174_v56 = vrot.slane %v165_v25, 1  ;;  %v6442_v57 = vpack.c.bf16 %v106_v49, %v105_v48 }
  0x35   :  { %v164_v30 = vsel %vm152_vm1, %v159_v24, %v163_v22  ;;  %1317 = vmatpush1.bf16.msra.mxu1 %v5871_v43  ;;  %v183_v58 = vor.u32 %v181_v51, %v179_v46  ;;  %v187_v59 = vrot.slane %v185_v52, 1  ;;  %v1173_v62 = vor.u32 %v1172_v54, %v1171_v53  ;;  %v112_v43 = vld [vmem:[%s9091_s7 + $0x88] sm:$0xff] }
  0x36   :  { %5120 = vmatmul.mubr.msk.bf16.vlgmr.msra.gmra.mxu0 %vm300_vm0, %v164_v30  ;;  %v172_v36 = vsel %vm152_vm1, %v167_v31, %v171_v32  ;;  %v180_v50 = vsel %vm152_vm1, %v175_v45, %v179_v46  ;;  %v1176_v63 = vor.u32 %v1175_v55, %v1174_v56  ;;  %v189_v1 = vshrl.u32 %v6427_v47, 16  ;;  %v5876_v31 = vld [vmem:[%s9066_s1 + $0x94] ss:$8 sps:$4 sm:$0xff]  }
  0x37   :  { %391 = vmatprep.mubr.bf16.mxu0 %v9083_v0  ;;  %921 = vmatpush1.bf16.msra.mxu0 %v5862_v27  ;;  %v193_v2 = vshll.u32 %v6442_v57, 16  ;;  %v1178_v3 = vrot.slane %v173_v37, 1  ;;  %v188_v4 = vsel %vm152_vm1, %v183_v58, %v187_v59  ;;  %v1179_v6 = vrot.slane %v169_v26, 2  ;;  %v113_v55 = vld [vmem:[%s9091_s7 + $0x90] sm:$0xff]  ;;  %v114_v56 = vld [vmem:[%s9091_s7 + $0x98] sm:$0xff] }
  0x38   :  { %5141 = vmatmul.mubr.msk.bf16.gmra.mxu1 %vm300_vm0, %v6361_v15  ;;  %922 = vmatprep.subr.bf16.mxu0 %v5867_v35  ;;  %v6458_v5 = vsel %vm1170_vm2, %v1173_v62, %v1176_v63  ;;  %v1182_v7 = vrot.slane %v181_v51, 1  ;;  %v1183_v8 = vrot.slane %v177_v38, 2  ;;  %v1186_v9 = vrot.slane %v189_v1, 1 }
  0x39   :  { %646 = vmatprep.mubr.bf16.mxu1 %v9083_v0  ;;  %v1180_v10 = vor.u32 %v1179_v6, %v1178_v3  ;;  %v1187_v11 = vrot.slane %v185_v52, 2  ;;  %v6463_v12 = vpack.c.bf16 %v108_v61, %v107_v60  ;;  %v191_v16 = vor.u32 %v189_v1, %v187_v59  ;;  %v115_v6 = vld [vmem:[%s9091_s7 + $0xa0] sm:$0xff] }
  0x3a   :  { %v1184_v14 = vor.u32 %v1183_v8, %v1182_v7  ;;  %v195_v17 = vrot.slane %v193_v2, 1  ;;  %v197_v22 = vshrl.u32 %v6442_v57, 16  ;;  %v1191_v27 = vrot.slane %v193_v2, 2  ;;  %v116_v7 = vld [vmem:[%s9091_s7 + $0xa8] sm:$0xff] }
  0x3b   :  { %923 = vmatpush1.bf16.msra.mxu0 %v5865_v34  ;;  %v6467_v18 = vsel %vm1170_vm2, %v1176_v63, %v1180_v10  ;;  %v1188_v20 = vor.u32 %v1187_v11, %v1186_v9  ;;  %v201_v25 = vshll.u32 %v6463_v12, 16  ;;  %v6492_v35 = vpack.c.bf16 %v110_v29, %v109_v28 }
  0x3c   :  { %v6470_v21 = vsel %vm1170_vm2, %v1180_v10, %v1184_v14  ;;  %v196_v24 = vsel %vm152_vm1, %v191_v16, %v195_v17  ;;  %v1190_v26 = vrot.slane %v197_v22, 1  ;;  %v199_v32 = vor.u32 %v197_v22, %v195_v17  ;;  %1676 = vmatprep.subr.bf16.mxu0 %v5876_v31 }
  0x3d   :  { %v6474_v23 = vsel %vm1170_vm2, %v1184_v14, %v1188_v20  ;;  %v203_v34 = vrot.slane %v201_v25, 1  ;;  %v205_v37 = vshrl.u32 %v6463_v12, 16  ;;  %v209_v39 = vshll.u32 %v6492_v35, 16 }
  0x3e   :  { %5121 = vmatmul.mubr.msk.bf16.gmra.mxu0 %vm300_vm0, %v172_v36  ;;  %v1192_v30 = vor.u32 %v1191_v27, %v1190_v26  ;;  %v1195_v41 = vrot.slane %v201_v25, 2  ;;  %v6511_v48 = vpack.c.bf16 %v112_v43, %v111_v42  ;;  %v6530_v61 = vpack.c.bf16 %v114_v56, %v113_v55  ;;  %v117_v25 = vld [vmem:[%s9091_s7 + $0xb0] sm:$0xff]  ;;  %v118_v26 = vld [vmem:[%s9091_s7 + $0xb8] sm:$0xff] }
  0x3f   :  { %401 = vmatprep.mubr.bf16.mxu0 %v9083_v0  ;;  %v204_v38 = vsel %vm152_vm1, %v199_v32, %v203_v34  ;;  %v1194_v40 = vrot.slane %v205_v37, 1  ;;  %v207_v45 = vor.u32 %v205_v37, %v203_v34  ;;  %v211_v46 = vrot.slane %v209_v39, 1  ;;  %v121_v55 = vld [vmem:[%s9091_s7 + $0xd0] sm:$0xff]  ;;  %v122_v56 = vld [vmem:[%s9091_s7 + $0xd8] sm:$0xff] }
  0x40   :  { %5142 = vmatmul.mubr.msk.bf16.gmra.mxu1 %vm300_vm0, %v6368_v19  ;;  %v6495_v36 = vsel %vm1170_vm2, %v1188_v20, %v1192_v30  ;;  %v217_v52 = vshll.u32 %v6511_v48, 16  ;;  %v1199_v54 = vrot.slane %v209_v39, 2  ;;  %v221_v63 = vshrl.u32 %v6511_v48, 16 }
  0x41   :  { %656 = vmatprep.mubr.bf16.mxu1 %v9083_v0  ;;  %v1196_v44 = vor.u32 %v1195_v41, %v1194_v40  ;;  %v212_v51 = vsel %vm152_vm1, %v207_v45, %v211_v46  ;;  %v225_v2 = vshll.u32 %v6530_v61, 16  ;;  %v6549_v11 = vpack.c.bf16 %v116_v7, %v115_v6  ;;  %v119_v40 = vld [vmem:[%s9091_s7 + $0xc0] sm:$0xff]  ;;  %v120_v41 = vld [vmem:[%s9091_s7 + $0xc8] sm:$0xff] }
  0x42   :  { %v219_v60 = vrot.slane %v217_v52, 1  ;;  %v1202_v3 = vrot.slane %v221_v63, 1  ;;  %v229_v16 = vshrl.u32 %v6530_v61, 16  ;;  %v6587_v45 = vpack.c.bf16 %v120_v41, %v119_v40  ;;  %v123_v6 = vld [vmem:[%s9091_s7 + $0xe0] sm:$0xff]  ;;  %v124_v7 = vld [vmem:[%s9091_s7 + $0xe8] sm:$0xff] }
  0x43   :  { %v6514_v49 = vsel %vm1170_vm2, %v1192_v30, %v1196_v44  ;;  %v227_v10 = vrot.slane %v225_v2, 1  ;;  %v233_v20 = vshll.u32 %v6549_v11, 16  ;;  %v6568_v30 = vpack.c.bf16 %v118_v26, %v117_v25  ;;  %v125_v25 = vld [vmem:[%s9091_s7 + $0xf0] sm:$0xff]  ;;  %v126_v26 = vld [vmem:[%s9091_s7 + $0xf8] sm:$0xff] }
  0x44   :  { %v223_v9 = vor.u32 %v221_v63, %v219_v60  ;;  %v1206_v22 = vrot.slane %v229_v16, 1  ;;  %v237_v32 = vshrl.u32 %v6549_v11, 16  ;;  %v6610_v63 = vpack.c.bf16 %v122_v56, %v121_v55 }
  0x45   :  { %v231_v28 = vor.u32 %v229_v16, %v227_v10  ;;  %v235_v29 = vrot.slane %v233_v20, 1  ;;  %v241_v37 = vshll.u32 %v6568_v30, 16  ;;  %v1211_v39 = vrot.slane %v233_v20, 2 }
  0x46   :  { %5122 = vmatmul.mubr.msk.bf16.gmra.mxu0 %vm300_vm0, %v180_v50  ;;  %v213_v50 = vshrl.u32 %v6492_v35, 16  ;;  %v228_v17 = vsel %vm152_vm1, %v223_v9, %v227_v10  ;;  %v6632_v10 = vpack.c.bf16 %v124_v7, %v123_v6  ;;  %v261_v16 = vshrl.u32 %v6610_v63, 16  ;;  %v5874_v6 = vld [vmem:[%s9066_s1 + $0x90] ss:$8 sps:$4 sm:$0xff]   ;;  %v5879_v7 = vld [vmem:[%s9066_s1 + $0x84] ss:$8 sps:$4 sm:$0xff]  }
  0x47   :  { %411 = vmatprep.mubr.bf16.mxu0 %v9083_v0  ;;  %v236_v34 = vsel %vm152_vm1, %v231_v28, %v235_v29  ;;  %v239_v43 = vor.u32 %v237_v32, %v235_v29  ;;  %vm6223_vm11 = vmmov 0   ;;  %vm4199_vm12 = vcmask 654336  }
  0x48   :  { %5143 = vmatmul.mubr.msk.bf16.gmra.mxu1 %vm300_vm0, %v6393_v33  ;;  %v1198_v53 = vrot.slane %v213_v50, 1  ;;  %v215_v59 = vor.u32 %v213_v50, %v211_v46  ;;  %v245_v50 = vshrl.u32 %v6568_v30, 16  ;;  %v1222_v20 = vrot.slane %v261_v16, 1 }
  0x49   :  { %666 = vmatprep.mubr.bf16.mxu1 %v9083_v0  ;;  %vm4832_vm13 = vcmask 293888   ;;  %vm4934_vm14 = vcmask 982016  }
  0x4a   :  { %v1200_v58 = vor.u32 %v1199_v54, %v1198_v53  ;;  %v220_v1 = vsel %vm152_vm1, %v215_v59, %v219_v60  ;;  %v1214_v53 = vrot.slane %v245_v50, 1  ;;  %v1215_v54 = vrot.slane %v241_v37, 2 }
  0x4c   :  { %v6533_v62 = vsel %vm1170_vm2, %v1196_v44, %v1200_v58  ;;  %v243_v44 = vrot.slane %v241_v37, 1 }
  0x4e   :  { %5123 = vmatmul.mubr.msk.bf16.gmra.mxu0 %vm300_vm0, %v188_v4  ;;  %v1203_v4 = vrot.slane %v217_v52, 2  ;;  %v249_v52 = vshll.u32 %v6587_v45, 16  ;;  %v247_v59 = vor.u32 %v245_v50, %v243_v44 }
  0x4f   :  { %421 = vmatprep.mubr.bf16.mxu0 %v9083_v0 }
  0x50   :  { %5144 = vmatmul.mubr.msk.bf16.gmra.mxu1 %vm300_vm0, %v6427_v47  ;;  %v1204_v8 = vor.u32 %v1203_v4, %v1202_v3  ;;  %v251_v60 = vrot.slane %v249_v52, 1  ;;  %v253_v3 = vshrl.u32 %v6587_v45, 16  ;;  %v257_v4 = vshll.u32 %v6610_v63, 16 }
  0x51   :  { %676 = vmatprep.mubr.bf16.mxu1 %v9083_v0 }
  0x52   :  { %v6552_v14 = vsel %vm1170_vm2, %v1200_v58, %v1204_v8  ;;  %v6604_v58 = vor.u32 %v1215_v54, %v1214_v53  ;;  %v259_v9 = vrot.slane %v257_v4, 1 }
  0x54   :  { %v263_v28 = vor.u32 %v261_v16, %v259_v9  ;;  %v814_v16 = vrot.slane %v6393_v33, 1 }
  0x56   :  { %5124 = vmatmul.mubr.msk.bf16.gmra.mxu0 %vm300_vm0, %v196_v24  ;;  %v1207_v24 = vrot.slane %v225_v2, 2  ;;  %v252_v2 = vsel %vm152_vm1, %v247_v59, %v251_v60 }
  0x57   :  { %431 = vmatprep.mubr.bf16.mxu0 %v9083_v0 }
  0x58   :  { %5145 = vmatmul.mubr.msk.bf16.gmra.mxu1 %vm300_vm0, %v6442_v57  ;;  %v1208_v27 = vor.u32 %v1207_v24, %v1206_v22  ;;  %v265_v24 = vshll.u32 %v6632_v10, 16 }
  0x59   :  { %686 = vmatprep.mubr.bf16.mxu1 %v9083_v0 }
  0x5a   :  { %v6571_v31 = vsel %vm1170_vm2, %v1204_v8, %v1208_v27  ;;  %v255_v8 = vor.u32 %v253_v3, %v251_v60  ;;  %v267_v29 = vrot.slane %v265_v24, 1  ;;  %v1227_v37 = vrot.slane %v265_v24, 2 }
  0x5b   :  { %v809_v60 = vrot.slane %v6356_v13, 1 }
  0x5c   :  { %v260_v22 = vsel %vm152_vm1, %v255_v8, %v259_v9  ;;  %v812_v8 = vrot.slane %v6368_v19, 1 }
  0x5e   :  { %5125 = vmatmul.mubr.msk.bf16.gmra.mxu0 %vm300_vm0, %v204_v38  ;;  %v1210_v38 = vrot.slane %v237_v32, 1  ;;  %v6650_v32 = vpack.c.bf16 %v126_v26, %v125_v25 }
  0x5f   :  { %441 = vmatprep.mubr.bf16.mxu0 %v9083_v0 }
  0x60   :  { %5146 = vmatmul.mubr.msk.bf16.gmra.mxu1 %vm300_vm0, %v6463_v12  ;;  %v1212_v42 = vor.u32 %v1211_v39, %v1210_v38  ;;  %v268_v39 = vsel %vm152_vm1, %v263_v28, %v267_v29  ;;  %v273_v40 = vshll.u32 %v6650_v32, 16 }
  0x61   :  { %696 = vmatprep.mubr.bf16.mxu1 %v9083_v0 }
  0x62   :  { %v6590_v46 = vsel %vm1170_vm2, %v1208_v27, %v1212_v42 }
  0x66   :  { %5126 = vmatmul.mubr.msk.bf16.gmra.mxu0 %vm300_vm0, %v212_v51  ;;  %v244_v51 = vsel %vm152_vm1, %v239_v43, %v243_v44  ;;  %v275_v43 = vrot.slane %v273_v40, 1  ;;  %v277_v44 = vshrl.u32 %v6650_v32, 16 }
  0x67   :  { %451 = vmatprep.mubr.bf16.mxu0 %v9083_v0 }
  0x68   :  { %5147 = vmatmul.mubr.msk.bf16.gmra.mxu1 %vm300_vm0, %v6492_v35  ;;  %v1230_v53 = vrot.slane %v277_v44, 1  ;;  %v279_v59 = vor.u32 %v277_v44, %v275_v43 }
  0x69   :  { %706 = vmatprep.mubr.bf16.mxu1 %v9083_v0 }
  0x6e   :  { %5127 = vmatmul.mubr.msk.bf16.gmra.mxu0 %vm300_vm0, %v220_v1  ;;  %v6614_v1 = vsel %vm1170_vm2, %v1212_v42, %v6604_v58 }
  0x6f   :  { %461 = vmatprep.mubr.bf16.mxu0 %v9083_v0 }
  0x70   :  { %5148 = vmatmul.mubr.msk.bf16.gmra.mxu1 %vm300_vm0, %v6511_v48 }
  0x71   :  { %716 = vmatprep.mubr.bf16.mxu1 %v9083_v0 }
  0x76   :  { %5128 = vmatmul.mubr.msk.bf16.gmra.mxu0 %vm300_vm0, %v228_v17  ;;  %v1223_v17 = vrot.slane %v257_v4, 2 }
  0x77   :  { %471 = vmatprep.mubr.bf16.mxu0 %v9083_v0 }
  0x78   :  { %5149 = vmatmul.mubr.msk.bf16.gmra.mxu1 %vm300_vm0, %v6530_v61  ;;  %v6646_v27 = vor.u32 %v1223_v17, %v1222_v20  ;;  %v815_v17 = vsel %vm808_vm3, %v812_v8, %v814_v16 }
  0x79   :  { %726 = vmatprep.mubr.bf16.mxu1 %v9083_v0 }
  0x7e   :  { %5129 = vmatmul.mubr.msk.bf16.gmra.mxu0 %vm300_vm0, %v236_v34  ;;  %v269_v34 = vshrl.u32 %v6632_v10, 16 }
  0x7f   :  { %481 = vmatprep.mubr.bf16.mxu0 %v9083_v0 }
  0x80   :  { %5150 = vmatmul.mubr.msk.bf16.gmra.mxu1 %vm300_vm0, %v6549_v11  ;;  %v1226_v38 = vrot.slane %v269_v34, 1  ;;  %v271_v42 = vor.u32 %v269_v34, %v267_v29 }
  0x81   :  { %736 = vmatprep.mubr.bf16.mxu1 %v9083_v0 }
  0x82   :  { %v1228_v41 = vor.u32 %v1227_v37, %v1226_v38  ;;  %v276_v54 = vsel %vm152_vm1, %v271_v42, %v275_v43 }
  0x84   :  { %v6663_v50 = vsel %vm1170_vm2, %v6646_v27, %v1228_v41 }
  0x86   :  { %5130 = vmatmul.mubr.msk.bf16.gmra.mxu0 %vm300_vm0, %v244_v51  ;;  %v1231_v51 = vrot.slane %v273_v40, 2 }
  0x87   :  { %491 = vmatprep.mubr.bf16.mxu0 %v9083_v0 }
  0x88   :  { %5151 = vmatmul.mubr.msk.bf16.gmra.mxu1 %vm300_vm0, %v6568_v30  ;;  %v6669_v55 = vor.u32 %v1231_v51, %v1230_v53 }
  0x89   :  { %746 = vmatprep.mubr.bf16.mxu1 %v9083_v0 }
  0x8a   :  { %v6675_v56 = vsel %vm1170_vm2, %v1228_v41, %v6669_v55 }
  0x8e   :  { %5131 = vmatmul.mubr.msk.bf16.gmra.mxu0 %vm300_vm0, %v252_v2  ;;  %v810_v2 = vrot.slane %v6361_v15, 1 }
  0x8f   :  { %501 = vmatprep.mubr.bf16.mxu0 %v9083_v0 }
  0x90   :  { %5152 = vmatmul.mubr.msk.bf16.gmra.mxu1 %vm300_vm0, %v6587_v45  ;;  %v811_v4 = vsel %vm808_vm3, %v809_v60, %v810_v2  ;;  %v813_v9 = vsel %vm808_vm3, %v810_v2, %v812_v8 }
  0x91   :  { %756 = vmatprep.mubr.bf16.mxu1 %v9083_v0 }
  0x96   :  { %5132 = vmatmul.mubr.msk.bf16.gmra.mxu0 %vm300_vm0, %v260_v22 }
  0x97   :  { %511 = vmatprep.mubr.bf16.mxu0 %v9083_v0 }
  0x98   :  { %5153 = vmatmul.mubr.msk.bf16.gmra.mxu1 %vm300_vm0, %v6610_v63 }
  0x99   :  { %766 = vmatprep.mubr.bf16.mxu1 %v9083_v0 }
  0x9e   :  { %5133 = vmatmul.mubr.msk.bf16.gmra.mxu0 %vm300_vm0, %v268_v39  ;;  %v828_v39 = vrot.slane %v6549_v11, 1 }
  0x9f   :  { %521 = vmatprep.mubr.bf16.mxu0 %v9083_v0 }
  0xa0   :  { %5154 = vmatmul.mubr.msk.bf16.gmra.mxu1 %vm300_vm0, %v6632_v10 }
  0xa1   :  { %776 = vmatprep.mubr.bf16.mxu1 %v9083_v0 }
  0xa6   :  { %5134 = vmatmul.mubr.msk.bf16.gmra.mxu0 %vm300_vm0, %v276_v54 }
  0xa7   :  { %531 = vmatprep.mubr.bf16.mxu0 %v9083_v0 }
  0xa8   :  { %5155 = vmatmul.mubr.msk.bf16.gmra.mxu1 %vm300_vm0, %v6650_v32 }
  0xa9   :  { %1334 = vmatprep.mubr.bf16.mxu1 %v9083_v0 }
  0xae   :  { %5135 = vmatmul.mubr.msk.bf16.gmra.mxu0 %vm300_vm0, %v279_v59 }
  0xaf   :  { %940 = vmatprep.mubr.bf16.mxu0 %v9083_v0 }
  0xb0   :  { %5188 = vmatmul.mubr.msk.bf16.vlgmr.msra.gmra.mxu1 %vm300_vm0, %v6458_v5  ;;  %v5877_v5 = vld [vmem:[%s9066_s1 + $0x80] ss:$8 sps:$4 sm:$0xff]  }
  0xb1   :  { %1344 = vmatprep.mubr.bf16.mxu1 %v9083_v0 }
  0xb6   :  { %5164 = vmatmul.mubr.msk.bf16.vlgmr.msra.gmra.mxu0 %vm300_vm0, %v811_v4 }
  0xb7   :  { %950 = vmatprep.mubr.bf16.mxu0 %v9083_v0  ;;  %1677 = vmatpush1.bf16.msra.mxu0 %v5874_v6  ;;  %v1218_v6 = vrot.slane %v253_v3, 1 }
  0xb8   :  { %1678 = vmatprep.subr.bf16.mxu0 %v5879_v7  ;;  %5189 = vmatmul.mubr.msk.bf16.gmra.mxu1 %vm300_vm0, %v6467_v18  ;;  %v816_v18 = vrot.slane %v6427_v47, 1  ;;  %v1219_v7 = vrot.slane %v249_v52, 2 }
  0xb9   :  { %1354 = vmatprep.mubr.bf16.mxu1 %v9083_v0 }
  0xba   :  { %v817_v20 = vsel %vm808_vm3, %v814_v16, %v816_v18 }
  0xbb   :  { %1679 = vmatpush1.bf16.msra.mxu0 %v5877_v5 }
  0xbe   :  { %5165 = vmatmul.mubr.msk.bf16.gmra.mxu0 %vm300_vm0, %v813_v9 }
  0xbf   :  { %960 = vmatprep.mubr.bf16.mxu0 %v9083_v0 }
  0xc0   :  { %5190 = vmatmul.mubr.msk.bf16.gmra.mxu1 %vm300_vm0, %v6470_v21  ;;  %v818_v21 = vrot.slane %v6442_v57, 1 }
  0xc1   :  { %1364 = vmatprep.mubr.bf16.mxu1 %v9083_v0 }
  0xc2   :  { %v819_v22 = vsel %vm808_vm3, %v816_v18, %v818_v21 }
  0xc6   :  { %5166 = vmatmul.mubr.msk.bf16.gmra.mxu0 %vm300_vm0, %v815_v17 }
  0xc7   :  { %970 = vmatprep.mubr.bf16.mxu0 %v9083_v0 }
  0xc8   :  { %5191 = vmatmul.mubr.msk.bf16.gmra.mxu1 %vm300_vm0, %v6474_v23  ;;  %v820_v23 = vrot.slane %v6463_v12, 1 }
  0xc9   :  { %1374 = vmatprep.mubr.bf16.mxu1 %v9083_v0 }
  0xca   :  { %v821_v24 = vsel %vm808_vm3, %v818_v21, %v820_v23  ;;  %v1220_v21 = vor.u32 %v1219_v7, %v1218_v6 }
  0xce   :  { %5167 = vmatmul.mubr.msk.bf16.gmra.mxu0 %vm300_vm0, %v817_v20 }
  0xcf   :  { %980 = vmatprep.mubr.bf16.mxu0 %v9083_v0 }
  0xd0   :  { %5192 = vmatmul.mubr.msk.bf16.gmra.mxu1 %vm300_vm0, %v6495_v36  ;;  %v822_v36 = vrot.slane %v6492_v35, 1 }
  0xd1   :  { %1384 = vmatprep.mubr.bf16.mxu1 %v9083_v0 }
  0xd2   :  { %v823_v25 = vsel %vm808_vm3, %v820_v23, %v822_v36 }
  0xd6   :  { %5168 = vmatmul.mubr.msk.bf16.gmra.mxu0 %vm300_vm0, %v819_v22 }
  0xd7   :  { %990 = vmatprep.mubr.bf16.mxu0 %v9083_v0 }
  0xd8   :  { %5193 = vmatmul.mubr.msk.bf16.gmra.mxu1 %vm300_vm0, %v6514_v49  ;;  %v824_v49 = vrot.slane %v6511_v48, 1 }
  0xd9   :  { %1394 = vmatprep.mubr.bf16.mxu1 %v9083_v0 }
  0xda   :  { %v825_v26 = vsel %vm808_vm3, %v822_v36, %v824_v49 }
  0xde   :  { %5169 = vmatmul.mubr.msk.bf16.gmra.mxu0 %vm300_vm0, %v821_v24 }
  0xdf   :  { %1000 = vmatprep.mubr.bf16.mxu0 %v9083_v0 }
  0xe0   :  { %5194 = vmatmul.mubr.msk.bf16.gmra.mxu1 %vm300_vm0, %v6533_v62  ;;  %v826_v62 = vrot.slane %v6530_v61, 1 }
  0xe1   :  { %1404 = vmatprep.mubr.bf16.mxu1 %v9083_v0 }
  0xe2   :  { %v827_v29 = vsel %vm808_vm3, %v824_v49, %v826_v62  ;;  %v829_v51 = vsel %vm808_vm3, %v826_v62, %v828_v39 }
  0xe6   :  { %5170 = vmatmul.mubr.msk.bf16.gmra.mxu0 %vm300_vm0, %v823_v25  ;;  %v1221_v25 = vsel %vm1170_vm2, %v6604_v58, %v1220_v21 }
  0xe7   :  { %1010 = vmatprep.mubr.bf16.mxu0 %v9083_v0 }
  0xe8   :  { %5195 = vmatmul.mubr.msk.bf16.gmra.mxu1 %vm300_vm0, %v6552_v14 }
  0xe9   :  { %1414 = vmatprep.mubr.bf16.mxu1 %v9083_v0 }
  0xee   :  { %5171 = vmatmul.mubr.msk.bf16.gmra.mxu0 %vm300_vm0, %v825_v26 }
  0xef   :  { %1020 = vmatprep.mubr.bf16.mxu0 %v9083_v0 }
  0xf0   :  { %v628_v28 = vpop.f32.mrf.mxu1  ;;  %5196 = vmatmul.mubr.msk.bf16.gmra.mxu1 %vm300_vm0, %v6571_v31 }
  0xf1   :  { %1424 = vmatprep.mubr.bf16.mxu1 %v9083_v0 }
  0xf2   :  { %v630_v34 = vpop.f32.mrf.mxu1 }
  0xf4   :  { %v632_v37 = vpop.f32.mrf.mxu1 }
  0xf6   :  { %v383_v14 = vpop.f32.mrf.mxu0  ;;  %5172 = vmatmul.mubr.msk.bf16.gmra.mxu0 %vm300_vm0, %v827_v29  ;;  %v634_v41 = vpop.f32.mrf.mxu1 }
  0xf7   :  { %v6754_v38 = vadd.f32 %v628_v28, %v383_v14  ;;  %1030 = vmatprep.mubr.bf16.mxu0 %v9083_v0 }
  0xf8   :  { %v385_v40 = vpop.f32.mrf.mxu0  ;;  %v638_v43 = vpop.f32.mrf.mxu1  ;;  %5197 = vmatmul.mubr.msk.bf16.gmra.mxu1 %vm300_vm0, %v6590_v46  ;;  %v830_v46 = vrot.slane %v6568_v30, 1 }
  0xf9   :  { %v6758_v42 = vadd.f32 %v630_v34, %v385_v40  ;;  %1434 = vmatprep.mubr.bf16.mxu1 %v9083_v0 }
  0xfa   :  { %v387_v31 = vpop.f32.mrf.mxu0  ;;  %v640_v54 = vpop.f32.mrf.mxu1  ;;  %v831_v20 = vsel %vm808_vm3, %v828_v39, %v830_v46 }
  0xfb   :  { %v6762_v44 = vadd.f32 %v632_v37, %v387_v31 }
  0xfc   :  { %v389_v53 = vpop.f32.mrf.mxu0  ;;  %v642_v2 = vpop.f32.mrf.mxu1 }
  0xfd   :  { %v6766_v59 = vadd.f32 %v634_v41, %v389_v53 }
  0xfe   :  { %v393_v60 = vpop.f32.mrf.mxu0  ;;  %5173 = vmatmul.mubr.msk.bf16.gmra.mxu0 %vm300_vm0, %v829_v51  ;;  %v644_v5 = vpop.f32.mrf.mxu1  ;;  %v1225_v51 = vsel %vm1170_vm2, %v1220_v21, %v6646_v27  ;;  %v836_v21 = vrot.slane %v6632_v10, 1 }
  0xff   :  { %v6769_v4 = vadd.f32 %v638_v43, %v393_v60  ;;  %1040 = vmatprep.mubr.bf16.mxu0 %v9083_v0  ;;  %v834_v43 = vrot.slane %v6610_v63, 1 }
 0x100   :  { %v395_v8 = vpop.f32.mrf.mxu0  ;;  %v648_v17 = vpop.f32.mrf.mxu1  ;;  %5198 = vmatmul.mubr.msk.bf16.gmra.mxu1 %vm300_vm0, %v6614_v1  ;;  %v832_v1 = vrot.slane %v6587_v45, 1 }
 0x101   :  { %v6777_v9 = vadd.f32 %v640_v54, %v395_v8  ;;  %1444 = vmatprep.mubr.bf16.mxu1 %v9083_v0 }
 0x102   :  { %v397_v16 = vpop.f32.mrf.mxu0  ;;  %v650_v22 = vpop.f32.mrf.mxu1  ;;  %v833_v14 = vsel %vm808_vm3, %v830_v46, %v832_v1  ;;  %v835_v7 = vsel %vm808_vm3, %v832_v1, %v834_v43 }
 0x103   :  { %v6781_v18 = vadd.f32 %v642_v2, %v397_v16 }
 0x104   :  { %v399_v3 = vpop.f32.mrf.mxu0  ;;  %v652_v24 = vpop.f32.mrf.mxu1 }
 0x105   :  { %v6785_v23 = vadd.f32 %v644_v5, %v399_v3 }
 0x106   :  { %v403_v52 = vpop.f32.mrf.mxu0  ;;  %5174 = vmatmul.mubr.msk.bf16.gmra.mxu0 %vm300_vm0, %v831_v20  ;;  %v654_v26 = vpop.f32.mrf.mxu1 }
 0x107   :  { %v6788_v36 = vadd.f32 %v648_v17, %v403_v52  ;;  %1050 = vmatprep.mubr.bf16.mxu0 %v9083_v0 }
 0x108   :  { %v405_v49 = vpop.f32.mrf.mxu0  ;;  %v658_v29 = vpop.f32.mrf.mxu1  ;;  %5199 = vmatmul.mubr.msk.bf16.gmra.mxu1 %vm300_vm0, %v1221_v25  ;;  %v837_v25 = vsel %vm808_vm3, %v834_v43, %v836_v21 }
 0x109   :  { %v6794_v62 = vadd.f32 %v650_v22, %v405_v49  ;;  %1454 = vmatprep.mubr.bf16.mxu1 %v9083_v0 }
 0x10a   :  { %v407_v28 = vpop.f32.mrf.mxu0  ;;  %v660_v39 = vpop.f32.mrf.mxu1 }
 0x10b   :  { %v6797_v34 = vadd.f32 %v652_v24, %v407_v28 }
 0x10c   :  { %v409_v37 = vpop.f32.mrf.mxu0  ;;  %v662_v58 = vpop.f32.mrf.mxu1 }
 0x10d   :  { %v6801_v40 = vadd.f32 %v654_v26, %v409_v37 }
 0x10e   :  { %v413_v41 = vpop.f32.mrf.mxu0  ;;  %5175 = vmatmul.mubr.msk.bf16.gmra.mxu0 %vm300_vm0, %v833_v14  ;;  %v664_v54 = vpop.f32.mrf.mxu1 }
 0x10f   :  { %v6804_v31 = vadd.f32 %v658_v29, %v413_v41  ;;  %1060 = vmatprep.mubr.bf16.mxu0 %v9083_v0 }
 0x110   :  { %v415_v53 = vpop.f32.mrf.mxu0  ;;  %v668_v46 = vpop.f32.mrf.mxu1  ;;  %5200 = vmatmul.mubr.msk.bf16.gmra.mxu1 %vm300_vm0, %v1225_v51 }
 0x111   :  { %v6810_v60 = vadd.f32 %v660_v39, %v415_v53  ;;  %1464 = vmatprep.mubr.bf16.mxu1 %v9083_v0 }
 0x112   :  { %v417_v2 = vpop.f32.mrf.mxu0  ;;  %v6817_v5 = vpop.f32.mrf.mxu1 }
 0x113   :  { %v6813_v6 = vadd.f32 %v662_v58, %v417_v2 }
 0x114   :  { %v419_v8 = vpop.f32.mrf.mxu0  ;;  %v672_v17 = vpop.f32.mrf.mxu1 }
 0x115   :  { %v6819_v16 = vadd.f32 %v664_v54, %v419_v8 }
 0x116   :  { %v423_v27 = vpop.f32.mrf.mxu0  ;;  %5176 = vmatmul.mubr.msk.bf16.gmra.mxu0 %vm300_vm0, %v835_v7  ;;  %v6828_v22 = vpop.f32.mrf.mxu1 }
 0x117   :  { %v6822_v20 = vadd.f32 %v668_v46, %v423_v27  ;;  %1070 = vmatprep.mubr.bf16.mxu0 %v9083_v0  ;;  %9092 = vst [vmem:[#allocation11_spill] sm:$0xff] %v6828_v22 }
 0x118   :  { %v6826_v3 = vpop.f32.mrf.mxu0  ;;  %v678_v24 = vpop.f32.mrf.mxu1  ;;  %5201 = vmatmul.mubr.msk.bf16.gmra.mxu1 %vm300_vm0, %v6663_v50  ;;  %v838_v50 = vrot.slane %v6650_v32, 1 }
 0x119   :  { %1474 = vmatprep.mubr.bf16.mxu1 %v9083_v0 }
 0x11a   :  { %v427_v52 = vpop.f32.mrf.mxu0  ;;  %v6838_v26 = vpop.f32.mrf.mxu1  ;;  %v839_v51 = vsel %vm808_vm3, %v836_v21, %v838_v50 }
 0x11b   :  { %v6832_v1 = vadd.f32 %v672_v17, %v427_v52 }
 0x11c   :  { %v6836_v49 = vpop.f32.mrf.mxu0  ;;  %v682_v29 = vpop.f32.mrf.mxu1 }
 0x11d   :  { %9093 = vst [vmem:[#allocation12_spill] sm:$0xff] %v6836_v49 }
 0x11e   :  { %v433_v28 = vpop.f32.mrf.mxu0  ;;  %5177 = vmatmul.mubr.msk.bf16.gmra.mxu0 %vm300_vm0, %v837_v25  ;;  %v6847_v39 = vpop.f32.mrf.mxu1 }
 0x11f   :  { %v6841_v14 = vadd.f32 %v678_v24, %v433_v28  ;;  %1080 = vmatprep.mubr.bf16.mxu0 %v9083_v0  ;;  %9094 = vst [vmem:[#allocation13_spill] sm:$0xff] %v6847_v39 }
 0x120   :  { %v6845_v37 = vpop.f32.mrf.mxu0  ;;  %v688_v58 = vpop.f32.mrf.mxu1  ;;  %5202 = vmatmul.mubr.msk.bf16.gmra.mxu1 %vm300_vm0, %v6675_v56 }
 0x121   :  { %1484 = vmatprep.mubr.bf16.mxu1 %v9083_v0 }
 0x122   :  { %v437_v41 = vpop.f32.mrf.mxu0  ;;  %v6857_v54 = vpop.f32.mrf.mxu1 }
 0x123   :  { %v6851_v43 = vadd.f32 %v682_v29, %v437_v41  ;;  %v1565_v41 = vrot.slane %v6356_v13, 2 }
 0x124   :  { %v6855_v53 = vpop.f32.mrf.mxu0  ;;  %v692_v46 = vpop.f32.mrf.mxu1 }
 0x125   :  { %9095 = vst [vmem:[#allocation14_spill] sm:$0xff] %v6855_v53 }
 0x126   :  { %v443_v2 = vpop.f32.mrf.mxu0  ;;  %5178 = vmatmul.mubr.msk.bf16.gmra.mxu0 %vm300_vm0, %v839_v51  ;;  %v6865_v56 = vpop.f32.mrf.mxu1 }
 0x127   :  { %v6860_v7 = vadd.f32 %v688_v58, %v443_v2  ;;  %1090 = vmatprep.mubr.bf16.mxu0 %v9083_v0  ;;  %9096 = vst [vmem:[#allocation15_spill] sm:$0xff] %v6865_v56  ;;  %v1566_v58 = vrot.slane %v6361_v15, 2 }
 0x128   :  { %v6863_v8 = vpop.f32.mrf.mxu0  ;;  %v698_v17 = vpop.f32.mrf.mxu1  ;;  %5203 = vmatmul.mubr.msk.bf16.gmra.mxu1 %vm300_vm0, %v6669_v55 }
 0x12a   :  { %v447_v27 = vpop.f32.mrf.mxu0  ;;  %v6873_v24 = vpop.f32.mrf.mxu1 }
 0x12b   :  { %v6869_v21 = vadd.f32 %v692_v46, %v447_v27 }
 0x12c   :  { %v6871_v52 = vpop.f32.mrf.mxu0  ;;  %v702_v28 = vpop.f32.mrf.mxu1 }
 0x12d   :  { %9097 = vst [vmem:[#allocation16_spill] sm:$0xff] %v6871_v52 }
 0x12e   :  { %v453_v25 = vpop.f32.mrf.mxu0  ;;  %5179 = vmatmul.mubr.msk.bf16.gmra.mxu0 %vm300_vm0, %v838_v50  ;;  %v6883_v55 = vpop.f32.mrf.mxu1  ;;  %v1567_v50 = vsel %vm1564_vm4, %v1565_v41, %v1566_v58 }
 0x12f   :  { %v6876_v29 = vadd.f32 %v698_v17, %v453_v25  ;;  %1696 = vmatprep.mubr.bf16.mxu0 %v9083_v0  ;;  %9098 = vst [vmem:[#allocation17_spill] sm:$0xff] %v6883_v55  ;;  %v1568_v55 = vrot.slane %v6368_v19, 2  ;;  %v9104_v19 = vmov 0  }
 0x130   :  { %v6881_v51 = vpop.f32.mrf.mxu0  ;;  %v708_v46 = vpop.f32.mrf.mxu1 }
 0x132   :  { %v457_v2 = vpop.f32.mrf.mxu0  ;;  %v6890_v17 = vpop.f32.mrf.mxu1 }
 0x133   :  { %v6885_v27 = vadd.f32 %v702_v28, %v457_v2 }
 0x134   :  { %v6888_v39 = vpop.f32.mrf.mxu0  ;;  %v712_v13 = vpop.f32.mrf.mxu1 }
 0x135   :  { %9099 = vst [vmem:[#allocation18_spill] sm:$0xff] %v6888_v39  ;;  %v1569_v39 = vsel %vm1564_vm4, %v1566_v58, %v1568_v55 }
 0x136   :  { %v463_v25 = vpop.f32.mrf.mxu0  ;;  %5212 = vmatmul.mubr.msk.bf16.vlgmr.msra.gmra.mxu0 %vm300_vm0, %v1567_v50  ;;  %v6899_v28 = vpop.f32.mrf.mxu1 }
 0x137   :  { %v6893_v15 = vadd.f32 %v708_v46, %v463_v25  ;;  %1706 = vmatprep.mubr.bf16.mxu0 %v9083_v0  ;;  %9100 = vst [vmem:[#allocation19_spill] sm:$0xff] %v6899_v28  ;;  %v1570_v28 = vrot.slane %v6393_v33, 2  ;;  %v1572_v33 = vrot.slane %v6427_v47, 2  ;;  %v1574_v47 = vrot.slane %v6442_v57, 2 }
 0x138   :  { %v6897_v53 = vpop.f32.mrf.mxu0  ;;  %v718_v41 = vpop.f32.mrf.mxu1  ;;  %v1576_v57 = vrot.slane %v6463_v12, 2  ;;  %v1578_v12 = vrot.slane %v6492_v35, 2  ;;  %v1580_v35 = vrot.slane %v6511_v48, 2  ;;  %v1582_v48 = vrot.slane %v6530_v61, 2 }
 0x13a   :  { %v467_v2 = vpop.f32.mrf.mxu0  ;;  %v6906_v50 = vpop.f32.mrf.mxu1 }
 0x13b   :  { %v6901_v56 = vadd.f32 %v712_v13, %v467_v2  ;;  %9102 = vst [vmem:[#allocation21_spill] sm:$0xff] %v6906_v50 }
 0x13c   :  { %v6904_v52 = vpop.f32.mrf.mxu0  ;;  %v722_v25 = vpop.f32.mrf.mxu1 }
 0x13d   :  { %9101 = vst [vmem:[#allocation20_spill] sm:$0xff] %v6904_v52  ;;  %v1571_v52 = vsel %vm1564_vm4, %v1568_v55, %v1570_v28 }
 0x13e   :  { %v473_v46 = vpop.f32.mrf.mxu0  ;;  %5213 = vmatmul.mubr.msk.bf16.gmra.mxu0 %vm300_vm0, %v1569_v39  ;;  %v6915_v13 = vpop.f32.mrf.mxu1 }
 0x13f   :  { %v6909_v0 = vadd.f32 %v718_v41, %v473_v46  ;;  %1716 = vmatprep.mubr.bf16.mxu0 %v9104_v19  ;;  %9105 = vst [vmem:[#allocation23_spill] sm:$0xff] %v6915_v13 }
 0x140   :  { %v6913_v22 = vpop.f32.mrf.mxu0  ;;  %v728_v58 = vpop.f32.mrf.mxu1 }
 0x141   :  { %9103 = vst [vmem:[#allocation22_spill] sm:$0xff] %v6909_v0 }
 0x142   :  { %v477_v2 = vpop.f32.mrf.mxu0  ;;  %v6922_v39 = vpop.f32.mrf.mxu1 }
 0x143   :  { %v6917_v49 = vadd.f32 %v722_v25, %v477_v2  ;;  %9108 = vst [vmem:[#allocation26_spill] sm:$0xff] %v6922_v39 }
 0x144   :  { %v6920_v50 = vpop.f32.mrf.mxu0  ;;  %v732_v46 = vpop.f32.mrf.mxu1 }
 0x145   :  { %9106 = vst [vmem:[#allocation24_spill] sm:$0xff] %v6917_v49  ;;  %9107 = vst [vmem:[#allocation25_spill] sm:$0xff] %v6920_v50  ;;  %v1573_v50 = vsel %vm1564_vm4, %v1570_v28, %v1572_v33 }
 0x146   :  { %v483_v41 = vpop.f32.mrf.mxu0  ;;  %5214 = vmatmul.mubr.msk.bf16.gmra.mxu0 %vm300_vm0, %v1571_v52  ;;  %v6931_v25 = vpop.f32.mrf.mxu1 }
 0x147   :  { %v6925_v0 = vadd.f32 %v728_v58, %v483_v41  ;;  %1726 = vmatprep.mubr.bf16.mxu0 %v9104_v19  ;;  %9110 = vst [vmem:[#allocation28_spill] sm:$0xff] %v6931_v25 }
 0x148   :  { %v6929_v13 = vpop.f32.mrf.mxu0  ;;  %v738_v55 = vpop.f32.mrf.mxu1 }
 0x149   :  { %9109 = vst [vmem:[#allocation27_spill] sm:$0xff] %v6925_v0 }
 0x14a   :  { %v487_v2 = vpop.f32.mrf.mxu0  ;;  %v6938_v52 = vpop.f32.mrf.mxu1 }
 0x14b   :  { %v6933_v49 = vadd.f32 %v732_v46, %v487_v2  ;;  %9113 = vst [vmem:[#allocation31_spill] sm:$0xff] %v6938_v52 }
 0x14c   :  { %v6936_v39 = vpop.f32.mrf.mxu0  ;;  %v742_v41 = vpop.f32.mrf.mxu1 }
 0x14d   :  { %9111 = vst [vmem:[#allocation29_spill] sm:$0xff] %v6933_v49  ;;  %9112 = vst [vmem:[#allocation30_spill] sm:$0xff] %v6936_v39  ;;  %v1575_v39 = vsel %vm1564_vm4, %v1572_v33, %v1574_v47 }
 0x14e   :  { %v493_v58 = vpop.f32.mrf.mxu0  ;;  %5215 = vmatmul.mubr.msk.bf16.gmra.mxu0 %vm300_vm0, %v1573_v50  ;;  %v6947_v46 = vpop.f32.mrf.mxu1 }
 0x14f   :  { %v6941_v0 = vadd.f32 %v738_v55, %v493_v58  ;;  %1736 = vmatprep.mubr.bf16.mxu0 %v9104_v19  ;;  %9115 = vst [vmem:[#allocation33_spill] sm:$0xff] %v6947_v46 }
 0x150   :  { %v6945_v25 = vpop.f32.mrf.mxu0  ;;  %v748_v28 = vpop.f32.mrf.mxu1 }
 0x151   :  { %9114 = vst [vmem:[#allocation32_spill] sm:$0xff] %v6941_v0 }
 0x152   :  { %v497_v2 = vpop.f32.mrf.mxu0  ;;  %v6954_v50 = vpop.f32.mrf.mxu1 }
 0x153   :  { %v6949_v49 = vadd.f32 %v742_v41, %v497_v2  ;;  %9118 = vst [vmem:[#allocation36_spill] sm:$0xff] %v6954_v50 }
 0x154   :  { %v6952_v52 = vpop.f32.mrf.mxu0  ;;  %v752_v58 = vpop.f32.mrf.mxu1 }
 0x155   :  { %9116 = vst [vmem:[#allocation34_spill] sm:$0xff] %v6949_v49  ;;  %9117 = vst [vmem:[#allocation35_spill] sm:$0xff] %v6952_v52  ;;  %v1577_v52 = vsel %vm1564_vm4, %v1574_v47, %v1576_v57 }
 0x156   :  { %v503_v55 = vpop.f32.mrf.mxu0  ;;  %5216 = vmatmul.mubr.msk.bf16.gmra.mxu0 %vm300_vm0, %v1575_v39  ;;  %v6963_v41 = vpop.f32.mrf.mxu1 }
 0x157   :  { %v6957_v0 = vadd.f32 %v748_v28, %v503_v55  ;;  %1746 = vmatprep.mubr.bf16.mxu0 %v9104_v19  ;;  %9120 = vst [vmem:[#allocation38_spill] sm:$0xff] %v6963_v41 }
 0x158   :  { %v6961_v46 = vpop.f32.mrf.mxu0  ;;  %v758_v33 = vpop.f32.mrf.mxu1 }
 0x159   :  { %9119 = vst [vmem:[#allocation37_spill] sm:$0xff] %v6957_v0 }
 0x15a   :  { %v507_v2 = vpop.f32.mrf.mxu0  ;;  %v6970_v39 = vpop.f32.mrf.mxu1 }
 0x15b   :  { %v6965_v49 = vadd.f32 %v752_v58, %v507_v2  ;;  %9123 = vst [vmem:[#allocation41_spill] sm:$0xff] %v6970_v39 }
 0x15c   :  { %v6968_v50 = vpop.f32.mrf.mxu0  ;;  %v762_v55 = vpop.f32.mrf.mxu1 }
 0x15d   :  { %9121 = vst [vmem:[#allocation39_spill] sm:$0xff] %v6965_v49  ;;  %9122 = vst [vmem:[#allocation40_spill] sm:$0xff] %v6968_v50  ;;  %v1579_v50 = vsel %vm1564_vm4, %v1576_v57, %v1578_v12 }
 0x15e   :  { %v513_v28 = vpop.f32.mrf.mxu0  ;;  %5217 = vmatmul.mubr.msk.bf16.gmra.mxu0 %vm300_vm0, %v1577_v52  ;;  %v6979_v58 = vpop.f32.mrf.mxu1 }
 0x15f   :  { %v6973_v0 = vadd.f32 %v758_v33, %v513_v28  ;;  %1756 = vmatprep.mubr.bf16.mxu0 %v9104_v19  ;;  %9125 = vst [vmem:[#allocation43_spill] sm:$0xff] %v6979_v58 }
 0x160   :  { %v6977_v41 = vpop.f32.mrf.mxu0  ;;  %v768_v47 = vpop.f32.mrf.mxu1 }
 0x161   :  { %9124 = vst [vmem:[#allocation42_spill] sm:$0xff] %v6973_v0 }
 0x162   :  { %v517_v2 = vpop.f32.mrf.mxu0  ;;  %v6986_v52 = vpop.f32.mrf.mxu1 }
 0x163   :  { %v6981_v49 = vadd.f32 %v762_v55, %v517_v2  ;;  %9128 = vst [vmem:[#allocation46_spill] sm:$0xff] %v6986_v52 }
 0x164   :  { %v6984_v39 = vpop.f32.mrf.mxu0  ;;  %v772_v28 = vpop.f32.mrf.mxu1 }
 0x165   :  { %9126 = vst [vmem:[#allocation44_spill] sm:$0xff] %v6981_v49  ;;  %9127 = vst [vmem:[#allocation45_spill] sm:$0xff] %v6984_v39  ;;  %v1581_v39 = vsel %vm1564_vm4, %v1578_v12, %v1580_v35 }
 0x166   :  { %v523_v33 = vpop.f32.mrf.mxu0  ;;  %5218 = vmatmul.mubr.msk.bf16.gmra.mxu0 %vm300_vm0, %v1579_v50  ;;  %v6995_v55 = vpop.f32.mrf.mxu1 }
 0x167   :  { %v6989_v0 = vadd.f32 %v768_v47, %v523_v33  ;;  %1766 = vmatprep.mubr.bf16.mxu0 %v9104_v19  ;;  %9130 = vst [vmem:[#allocation48_spill] sm:$0xff] %v6995_v55 }
 0x168   :  { %v6993_v58 = vpop.f32.mrf.mxu0  ;;  %v778_v57 = vpop.f32.mrf.mxu1 }
 0x169   :  { %9129 = vst [vmem:[#allocation47_spill] sm:$0xff] %v6989_v0 }
 0x16a   :  { %v527_v2 = vpop.f32.mrf.mxu0  ;;  %v7002_v50 = vpop.f32.mrf.mxu1 }
 0x16b   :  { %v6997_v49 = vadd.f32 %v772_v28, %v527_v2  ;;  %9133 = vst [vmem:[#allocation51_spill] sm:$0xff] %v7002_v50 }
 0x16c   :  { %v7000_v52 = vpop.f32.mrf.mxu0  ;;  %v782_v33 = vpop.f32.mrf.mxu1 }
 0x16d   :  { %9131 = vst [vmem:[#allocation49_spill] sm:$0xff] %v6997_v49  ;;  %9132 = vst [vmem:[#allocation50_spill] sm:$0xff] %v7000_v52  ;;  %v1583_v52 = vsel %vm1564_vm4, %v1580_v35, %v1582_v48 }
 0x16e   :  { %v533_v47 = vpop.f32.mrf.mxu0  ;;  %5219 = vmatmul.mubr.msk.bf16.gmra.mxu0 %vm300_vm0, %v1581_v39  ;;  %v7011_v28 = vpop.f32.mrf.mxu1 }
 0x16f   :  { %v7005_v0 = vadd.f32 %v778_v57, %v533_v47  ;;  %1776 = vmatprep.mubr.bf16.mxu0 %v9104_v19  ;;  %9136 = vst [vmem:[#allocation54_spill] sm:$0xff] %v7011_v28  ;;  %v1584_v28 = vrot.slane %v6549_v11, 2 }
 0x170   :  { %v7009_v55 = vpop.f32.mrf.mxu0  ;;  %v1336_v12 = vpop.f32.mrf.mxu1 }
 0x171   :  { %9134 = vst [vmem:[#allocation52_spill] sm:$0xff] %v7005_v0  ;;  %9135 = vst [vmem:[#allocation53_spill] sm:$0xff] %v7009_v55 }
 0x172   :  { %v537_v2 = vpop.f32.mrf.mxu0  ;;  %v7018_v39 = vpop.f32.mrf.mxu1 }
 0x173   :  { %v7013_v49 = vadd.f32 %v782_v33, %v537_v2  ;;  %9139 = vst [vmem:[#allocation57_spill] sm:$0xff] %v7018_v39 }
 0x174   :  { %v7016_v50 = vpop.f32.mrf.mxu0  ;;  %v1340_v47 = vpop.f32.mrf.mxu1 }
 0x175   :  { %9137 = vst [vmem:[#allocation55_spill] sm:$0xff] %v7013_v49  ;;  %9138 = vst [vmem:[#allocation56_spill] sm:$0xff] %v7016_v50 }
 0x176   :  { %v942_v57 = vpop.f32.mrf.mxu0  ;;  %5220 = vmatmul.mubr.msk.bf16.gmra.mxu0 %vm300_vm0, %v1583_v52  ;;  %v7024_v55 = vpop.f32.mrf.mxu1  ;;  %v1585_v52 = vsel %vm1564_vm4, %v1582_v48, %v1584_v28 }
 0x177   :  { %v1101_v61 = vadd.f32 %v942_v57, %v6754_v38  ;;  %1786 = vmatprep.mubr.bf16.mxu0 %v9104_v19  ;;  %9140 = vst [vmem:[#allocation58_spill] sm:$0xff] %v7024_v55 }
 0x178   :  { %v944_v0 = vpop.f32.mrf.mxu0  ;;  %v1346_v50 = vpop.f32.mrf.mxu1 }
 0x179   :  { %v7027_v33 = vadd.f32 %v944_v0, %v6758_v42  ;;  %v7029_v35 = vadd.f32 %v1336_v12, %v1101_v61 }
 0x17a   :  { %v946_v2 = vpop.f32.mrf.mxu0  ;;  %v7033_v38 = vpop.f32.mrf.mxu1 }
 0x17b   :  { %v1103_v39 = vadd.f32 %v946_v2, %v6762_v44  ;;  %v1586_v44 = vrot.slane %v6568_v30, 2 }
 0x17c   :  { %v948_v49 = vpop.f32.mrf.mxu0  ;;  %v1350_v0 = vpop.f32.mrf.mxu1 }
 0x17d   :  { %v7036_v57 = vadd.f32 %v948_v49, %v6766_v59  ;;  %v7038_v11 = vadd.f32 %v1340_v47, %v1103_v39  ;;  %v1587_v2 = vsel %vm1564_vm4, %v1584_v28, %v1586_v44 }
 0x17e   :  { %v952_v55 = vpop.f32.mrf.mxu0  ;;  %5221 = vmatmul.mubr.msk.bf16.gmra.mxu0 %vm300_vm0, %v1585_v52  ;;  %v7044_v48 = vpop.f32.mrf.mxu1 }
 0x17f   :  { %9141 = vst [vmem:[#allocation59_spill] sm:$0xff] %v7036_v57  ;;  %v1105_v42 = vadd.f32 %v952_v55, %v6769_v4  ;;  %1796 = vmatprep.mubr.bf16.mxu0 %v9104_v19 }
 0x180   :  { %v954_v12 = vpop.f32.mrf.mxu0  ;;  %v1356_v39 = vpop.f32.mrf.mxu1 }
 0x181   :  { %v7047_v61 = vadd.f32 %v954_v12, %v6777_v9  ;;  %v7049_v59 = vadd.f32 %v1346_v50, %v1105_v42 }
 0x182   :  { %v956_v49 = vpop.f32.mrf.mxu0  ;;  %v1358_v4 = vpop.f32.mrf.mxu1 }
 0x183   :  { %v1107_v47 = vadd.f32 %v956_v49, %v6781_v18  ;;  %v1588_v18 = vrot.slane %v6587_v45, 2 }
 0x184   :  { %v958_v52 = vpop.f32.mrf.mxu0  ;;  %v7059_v9 = vpop.f32.mrf.mxu1 }
 0x185   :  { %v7054_v55 = vadd.f32 %v958_v52, %v6785_v23  ;;  %v7056_v30 = vadd.f32 %v1350_v0, %v1107_v47 }
 0x186   :  { %v962_v57 = vpop.f32.mrf.mxu0  ;;  %5222 = vmatmul.mubr.msk.bf16.gmra.mxu0 %vm300_vm0, %v1587_v2  ;;  %v7064_v28 = vpop.f32.mrf.mxu1 }
 0x187   :  { %v1109_v50 = vadd.f32 %v962_v57, %v6788_v36  ;;  %1806 = vmatprep.mubr.bf16.mxu0 %v9104_v19  ;;  %9142 = vst [vmem:[#allocation60_spill] sm:$0xff] %v7064_v28  ;;  %v1589_v36 = vsel %vm1564_vm4, %v1586_v44, %v1588_v18 }
 0x188   :  { %v964_v42 = vpop.f32.mrf.mxu0  ;;  %v7069_v49 = vpop.f32.mrf.mxu1 }
 0x189   :  { %v1110_v12 = vadd.f32 %v964_v42, %v6794_v62  ;;  %v7067_v23 = vadd.f32 %v1356_v39, %v1109_v50 }
 0x18a   :  { %v966_v0 = vpop.f32.mrf.mxu0  ;;  %v7077_v52 = vpop.f32.mrf.mxu1 }
 0x18b   :  { %v7072_v47 = vadd.f32 %v966_v0, %v6797_v34  ;;  %v7074_v2 = vadd.f32 %v1358_v4, %v1110_v12  ;;  %v1590_v34 = vrot.slane %v6610_v63, 2 }
 0x18c   :  { %v968_v57 = vpop.f32.mrf.mxu0  ;;  %v7083_v62 = vpop.f32.mrf.mxu1 }
 0x18d   :  { %9143 = vst [vmem:[#allocation61_spill] sm:$0xff] %v7074_v2  ;;  %v7080_v45 = vadd.f32 %v968_v57, %v6801_v40  ;;  %v1591_v0 = vsel %vm1564_vm4, %v1588_v18, %v1590_v34 }
 0x18e   :  { %v972_v28 = vpop.f32.mrf.mxu0  ;;  %5223 = vmatmul.mubr.msk.bf16.gmra.mxu0 %vm300_vm0, %v1589_v36  ;;  %v7090_v44 = vpop.f32.mrf.mxu1 }
 0x18f   :  { %v7086_v39 = vadd.f32 %v972_v28, %v6804_v31  ;;  %1816 = vmatprep.mubr.bf16.mxu0 %v9104_v19 }
 0x190   :  { %v974_v4 = vpop.f32.mrf.mxu0  ;;  %v7095_v42 = vpop.f32.mrf.mxu1 }
 0x191   :  { %v7093_v50 = vadd.f32 %v974_v4, %v6810_v60  ;;  %v671_v60 = vadd.f32 %v6817_v5, %v6826_v3 }
 0x192   :  { %v976_v40 = vpop.f32.mrf.mxu0  ;;  %v7101_v28 = vpop.f32.mrf.mxu1 }
 0x193   :  { %v7098_v12 = vadd.f32 %v976_v40, %v6813_v6  ;;  %v1592_v6 = vrot.slane %v6632_v10, 2 }
 0x194   :  { %v978_v31 = vpop.f32.mrf.mxu0  ;;  %v7107_v57 = vpop.f32.mrf.mxu1 }
 0x195   :  { %v7104_v36 = vadd.f32 %v978_v31, %v6819_v16  ;;  %v1593_v5 = vsel %vm1564_vm4, %v1590_v34, %v1592_v6 }
 0x196   :  { %v982_v63 = vpop.f32.mrf.mxu0  ;;  %5224 = vmatmul.mubr.msk.bf16.gmra.mxu0 %vm300_vm0, %v1591_v0  ;;  %v7116_v40 = vpop.f32.mrf.mxu1 }
 0x197   :  { %v7112_v4 = vadd.f32 %v982_v63, %v6822_v20  ;;  %1826 = vmatprep.mubr.bf16.mxu0 %v9104_v19  ;;  %9144 = vst [vmem:[#allocation62_spill] sm:$0xff] %v7116_v40 }
 0x198   :  { %v984_v18 = vpop.f32.mrf.mxu0  ;;  %v7120_v2 = vpop.f32.mrf.mxu1 }
 0x199   :  { %v7118_v16 = vadd.f32 %v984_v18, %v671_v60  ;;  %9145 = vst [vmem:[#allocation63_spill] sm:$0xff] %v7120_v2  ;;  %v681_v60 = vadd.f32 %v6838_v26, %v6845_v37 }
 0x19a   :  { %v986_v31 = vpop.f32.mrf.mxu0  ;;  %v7128_v20 = vpop.f32.mrf.mxu1 }
 0x19b   :  { %v7123_v0 = vadd.f32 %v986_v31, %v6832_v1  ;;  %9146 = vst [vmem:[#allocation64_spill] sm:$0xff] %v7128_v20  ;;  %v1594_v1 = vrot.slane %v6650_v32, 2 }
 0x19c   :  { %v7126_v3 = vpop.f32.mrf.mxu0  ;;  %v7131_v10 = vpop.f32.mrf.mxu1 }
 0x19d   :  { %9147 = vst [vmem:[#allocation65_spill] sm:$0xff] %v7131_v10  ;;  %v1595_v26 = vsel %vm1564_vm4, %v1592_v6, %v1594_v1 }
 0x19e   :  { %v992_v63 = vpop.f32.mrf.mxu0  ;;  %5225 = vmatmul.mubr.msk.bf16.gmra.mxu0 %vm300_vm0, %v1593_v5  ;;  %v7140_v31 = vpop.f32.mrf.mxu1 }
 0x19f   :  { %v7136_v18 = vadd.f32 %v992_v63, %v6841_v14  ;;  %1836 = vmatprep.mubr.bf16.mxu0 %v9104_v19  ;;  %9148 = vst [vmem:[#allocation66_spill] sm:$0xff] %v7140_v31 }
 0x1a0   :  { %v994_v34 = vpop.f32.mrf.mxu0  ;;  %v7144_v40 = vpop.f32.mrf.mxu1 }
 0x1a1   :  { %v7142_v2 = vadd.f32 %v994_v34, %v681_v60  ;;  %9150 = vst [vmem:[#allocation68_spill] sm:$0xff] %v7144_v40  ;;  %v691_v60 = vadd.f32 %v6857_v54, %v6863_v8  ;;  %v701_v8 = vadd.f32 %v6873_v24, %v6881_v51 }
 0x1a2   :  { %v996_v20 = vpop.f32.mrf.mxu0  ;;  %v7152_v14 = vpop.f32.mrf.mxu1 }
 0x1a3   :  { %9149 = vst [vmem:[#allocation67_spill] sm:$0xff] %v7142_v2  ;;  %v7147_v5 = vadd.f32 %v996_v20, %v6851_v43  ;;  %9152 = vst [vmem:[#allocation70_spill] sm:$0xff] %v7152_v14 }
 0x1a4   :  { %v7150_v37 = vpop.f32.mrf.mxu0  ;;  %v7155_v32 = vpop.f32.mrf.mxu1 }
 0x1a5   :  { %9151 = vst [vmem:[#allocation69_spill] sm:$0xff] %v7147_v5  ;;  %9153 = vst [vmem:[#allocation71_spill] sm:$0xff] %v7155_v32 }
 0x1a6   :  { %v1002_v63 = vpop.f32.mrf.mxu0  ;;  %5226 = vmatmul.mubr.msk.bf16.gmra.mxu0 %vm300_vm0, %v1595_v26  ;;  %v7163_v20 = vpop.f32.mrf.mxu1 }
 0x1a7   :  { %v7160_v34 = vadd.f32 %v1002_v63, %v6860_v7  ;;  %1846 = vmatprep.mubr.bf16.mxu0 %v9104_v19 }
 0x1a8   :  { %v1004_v43 = vpop.f32.mrf.mxu0  ;;  %v7167_v31 = vpop.f32.mrf.mxu1 }
 0x1a9   :  { %9154 = vst [vmem:[#allocation72_spill] sm:$0xff] %v7160_v34  ;;  %v7165_v6 = vadd.f32 %v1004_v43, %v691_v60 }
 0x1aa   :  { %v1006_v40 = vpop.f32.mrf.mxu0  ;;  %v7174_v10 = vpop.f32.mrf.mxu1 }
 0x1ab   :  { %9155 = vst [vmem:[#allocation73_spill] sm:$0xff] %v7165_v6  ;;  %v7170_v26 = vadd.f32 %v1006_v40, %v6869_v21 }
 0x1ac   :  { %v7172_v14 = vpop.f32.mrf.mxu0  ;;  %v7177_v7 = vpop.f32.mrf.mxu1 }
 0x1ad   :  { %9156 = vst [vmem:[#allocation74_spill] sm:$0xff] %v7170_v26  ;;  %9157 = vst [vmem:[#allocation75_spill] sm:$0xff] %v7177_v7 }
 0x1ae   :  { %v1012_v54 = vpop.f32.mrf.mxu0  ;;  %5227 = vmatmul.mubr.msk.bf16.gmra.mxu0 %vm300_vm0, %v1594_v1  ;;  %v7185_v21 = vpop.f32.mrf.mxu1 }
 0x1af   :  { %v7182_v63 = vadd.f32 %v1012_v54, %v6876_v29  ;;  %3022 = vmatprep.mubr.bf16.mxu0 %v9104_v19  ;;  %9158 = vst [vmem:[#allocation76_spill] sm:$0xff] %v7185_v21  ;;  %v711_v29 = vadd.f32 %v6890_v17, %v6897_v53 }
 0x1b0   :  { %v1014_v60 = vpop.f32.mrf.mxu0  ;;  %v1416_v34 = vpop.f32.mrf.mxu1 }
 0x1b1   :  { %v7187_v40 = vadd.f32 %v1014_v60, %v701_v8 }
 0x1b2   :  { %v1016_v43 = vpop.f32.mrf.mxu0  ;;  %v1418_v7 = vpop.f32.mrf.mxu1 }
 0x1b3   :  { %v7190_v6 = vadd.f32 %v1016_v43, %v6885_v27 }
 0x1b4   :  { %v7192_v1 = vpop.f32.mrf.mxu0  ;;  %v1420_v24 = vpop.f32.mrf.mxu1 }
 0x1b5   :  { %9159 = vst [vmem:[#allocation77_spill] sm:$0xff] %v7190_v6 }
 0x1b6   :  { %v1022_v5 = vpop.f32.mrf.mxu0  ;;  %v7197_v19 = vpop.f32.mrf.mxu1 }
 0x1b7   :  { %v1133_v51 = vadd.f32 %v1022_v5, %v6893_v15  ;;  %9160 = vst [vmem:[#allocation78_spill] sm:$0xff] %v7197_v19  ;;  %v9164_v15 = vld [vmem:[#allocation21_spill] sm:$0xff]  ;;  %v9165_v19 = vld [vmem:[#allocation22_spill] sm:$0xff] }
 0x1b8   :  { %v1024_v54 = vpop.f32.mrf.mxu0  ;;  %v1426_v32 = vpop.f32.mrf.mxu1  ;;  %v721_v5 = vadd.f32 %v9164_v15, %v6913_v22  ;;  %v9171_v22 = vld [vmem:[#allocation26_spill] sm:$0xff] }
 0x1b9   :  { %v1134_v8 = vadd.f32 %v1024_v54, %v711_v29  ;;  %v7199_v60 = vadd.f32 %v1416_v34, %v1133_v51 }
 0x1ba   :  { %v1026_v21 = vpop.f32.mrf.mxu0  ;;  %v1428_v26 = vpop.f32.mrf.mxu1 }
 0x1bb   :  { %9161 = vst [vmem:[#allocation79_spill] sm:$0xff] %v7199_v60  ;;  %v1135_v27 = vadd.f32 %v1026_v21, %v6901_v56  ;;  %v7202_v43 = vadd.f32 %v1418_v7, %v1134_v8  ;;  %v9167_v7 = vld [vmem:[#allocation24_spill] sm:$0xff] }
 0x1bc   :  { %v7204_v6 = vpop.f32.mrf.mxu0  ;;  %v1430_v17 = vpop.f32.mrf.mxu1 }
 0x1bd   :  { %9162 = vst [vmem:[#allocation80_spill] sm:$0xff] %v7202_v43  ;;  %9163 = vst [vmem:[#allocation81_spill] sm:$0xff] %v7204_v6  ;;  %v7206_v2 = vadd.f32 %v1420_v24, %v1135_v27 }
 0x1be   :  { %v1032_v53 = vpop.f32.mrf.mxu0  ;;  %v7211_v51 = vpop.f32.mrf.mxu1 }
 0x1bf   :  { %v1137_v29 = vadd.f32 %v1032_v53, %v9165_v19  ;;  %9166 = vst [vmem:[#allocation21_spill] sm:$0xff] %v7211_v51  ;;  %v731_v19 = vadd.f32 %v9171_v22, %v6929_v13  ;;  %v9172_v53 = vld [vmem:[#allocation27_spill] sm:$0xff]  ;;  %v9179_v13 = vld [vmem:[#allocation32_spill] sm:$0xff] }
 0x1c0   :  { %v1034_v34 = vpop.f32.mrf.mxu0  ;;  %v1436_v27 = vpop.f32.mrf.mxu1 }
 0x1c1   :  { %v1138_v54 = vadd.f32 %v1034_v34, %v721_v5  ;;  %v7213_v60 = vadd.f32 %v1426_v32, %v1137_v29 }
 0x1c2   :  { %v1036_v56 = vpop.f32.mrf.mxu0  ;;  %v1438_v5 = vpop.f32.mrf.mxu1 }
 0x1c3   :  { %v1139_v21 = vadd.f32 %v1036_v56, %v9167_v7  ;;  %v7216_v8 = vadd.f32 %v1428_v26, %v1138_v54  ;;  %v9174_v56 = vld [vmem:[#allocation29_spill] sm:$0xff] }
 0x1c4   :  { %v7218_v24 = vpop.f32.mrf.mxu0 }
 0x1c5   :  { %9168 = vst [vmem:[#allocation22_spill] sm:$0xff] %v7216_v8  ;;  %9169 = vst [vmem:[#allocation24_spill] sm:$0xff] %v7218_v24  ;;  %v7220_v43 = vadd.f32 %v1430_v17, %v1139_v21  ;;  %v9178_v21 = vld [vmem:[#allocation31_spill] sm:$0xff] }
 0x1c6   :  { %v1042_v6 = vpop.f32.mrf.mxu0  ;;  %v741_v8 = vadd.f32 %v9178_v21, %v6945_v25 }
 0x1c7   :  { %9170 = vst [vmem:[#allocation82_spill] sm:$0xff] %v7220_v43  ;;  %v1141_v15 = vadd.f32 %v1042_v6, %v9172_v53 }
 0x1c8   :  { %v1044_v51 = vpop.f32.mrf.mxu0 }
 0x1c9   :  { %v1142_v32 = vadd.f32 %v1044_v51, %v731_v19  ;;  %v7225_v29 = vadd.f32 %v1436_v27, %v1141_v15  ;;  %v9182_v27 = vld [vmem:[#allocation34_spill] sm:$0xff] }
 0x1ca   :  { %v1046_v34 = vpop.f32.mrf.mxu0 }
 0x1cb   :  { %9173 = vst [vmem:[#allocation26_spill] sm:$0xff] %v7225_v29  ;;  %v7228_v26 = vadd.f32 %v1046_v34, %v9174_v56  ;;  %v7230_v54 = vadd.f32 %v1438_v5, %v1142_v32  ;;  %v9185_v32 = vld [vmem:[#allocation36_spill] sm:$0xff]  ;;  %v9186_v56 = vld [vmem:[#allocation37_spill] sm:$0xff] }
 0x1cc   :  { %v7232_v7 = vpop.f32.mrf.mxu0  ;;  %v751_v34 = vadd.f32 %v9185_v32, %v6961_v46 }
 0x1cd   :  { %9175 = vst [vmem:[#allocation27_spill] sm:$0xff] %v7228_v26  ;;  %9176 = vst [vmem:[#allocation29_spill] sm:$0xff] %v7230_v54 }
 0x1ce   :  { %9177 = vst [vmem:[#allocation83_spill] sm:$0xff] %v7232_v7  ;;  %v1052_v17 = vpop.f32.mrf.mxu0 }
 0x1cf   :  { %v7237_v22 = vadd.f32 %v1052_v17, %v9179_v13  ;;  %v9189_v13 = vld [vmem:[#allocation39_spill] sm:$0xff] }
 0x1d0   :  { %v1054_v6 = vpop.f32.mrf.mxu0 }
 0x1d1   :  { %9180 = vst [vmem:[#allocation31_spill] sm:$0xff] %v7237_v22  ;;  %v7239_v53 = vadd.f32 %v1054_v6, %v741_v8 }
 0x1d2   :  { %v1056_v51 = vpop.f32.mrf.mxu0 }
 0x1d3   :  { %9181 = vst [vmem:[#allocation32_spill] sm:$0xff] %v7239_v53  ;;  %v7242_v19 = vadd.f32 %v1056_v51, %v9182_v27  ;;  %v9192_v27 = vld [vmem:[#allocation41_spill] sm:$0xff]  ;;  %v9193_v53 = vld [vmem:[#allocation42_spill] sm:$0xff] }
 0x1d4   :  { %v7244_v15 = vpop.f32.mrf.mxu0 }
 0x1d5   :  { %9183 = vst [vmem:[#allocation34_spill] sm:$0xff] %v7242_v19  ;;  %9184 = vst [vmem:[#allocation84_spill] sm:$0xff] %v7244_v15  ;;  %v761_v19 = vadd.f32 %v9192_v27, %v6977_v41 }
 0x1d6   :  { %v1062_v5 = vpop.f32.mrf.mxu0 }
 0x1d7   :  { %v7249_v54 = vadd.f32 %v1062_v5, %v9186_v56  ;;  %v9196_v56 = vld [vmem:[#allocation44_spill] sm:$0xff] }
 0x1d8   :  { %v1064_v25 = vpop.f32.mrf.mxu0 }
 0x1d9   :  { %9187 = vst [vmem:[#allocation36_spill] sm:$0xff] %v7249_v54  ;;  %v7251_v21 = vadd.f32 %v1064_v25, %v751_v34 }
 0x1da   :  { %v1066_v17 = vpop.f32.mrf.mxu0 }
 0x1db   :  { %9188 = vst [vmem:[#allocation37_spill] sm:$0xff] %v7251_v21  ;;  %v7254_v8 = vadd.f32 %v1066_v17, %v9189_v13  ;;  %v9199_v13 = vld [vmem:[#allocation46_spill] sm:$0xff]  ;;  %v9200_v21 = vld [vmem:[#allocation47_spill] sm:$0xff] }
 0x1dc   :  { %v7256_v6 = vpop.f32.mrf.mxu0 }
 0x1dd   :  { %9190 = vst [vmem:[#allocation39_spill] sm:$0xff] %v7254_v8  ;;  %9191 = vst [vmem:[#allocation85_spill] sm:$0xff] %v7256_v6  ;;  %v771_v8 = vadd.f32 %v9199_v13, %v6993_v58 }
 0x1de   :  { %v1072_v51 = vpop.f32.mrf.mxu0 }
 0x1df   :  { %v7261_v22 = vadd.f32 %v1072_v51, %v9193_v53  ;;  %v9203_v51 = vld [vmem:[#allocation49_spill] sm:$0xff] }
 0x1e0   :  { %v1074_v46 = vpop.f32.mrf.mxu0 }
 0x1e1   :  { %9194 = vst [vmem:[#allocation41_spill] sm:$0xff] %v7261_v22  ;;  %v7263_v32 = vadd.f32 %v1074_v46, %v761_v19  ;;  %v9207_v22 = vld [vmem:[#allocation51_spill] sm:$0xff] }
 0x1e2   :  { %v1076_v5 = vpop.f32.mrf.mxu0 }
 0x1e3   :  { %9195 = vst [vmem:[#allocation42_spill] sm:$0xff] %v7263_v32  ;;  %v7266_v34 = vadd.f32 %v1076_v5, %v9196_v56  ;;  %v9206_v56 = vld [vmem:[#allocation53_spill] sm:$0xff]  ;;  %v9208_v32 = vld [vmem:[#allocation52_spill] sm:$0xff] }
 0x1e4   :  { %v7268_v25 = vpop.f32.mrf.mxu0 }
 0x1e5   :  { %9197 = vst [vmem:[#allocation44_spill] sm:$0xff] %v7266_v34  ;;  %9198 = vst [vmem:[#allocation86_spill] sm:$0xff] %v7268_v25  ;;  %v781_v34 = vadd.f32 %v9207_v22, %v9206_v56 }
 0x1e6   :  { %v1082_v17 = vpop.f32.mrf.mxu0 }
 0x1e7   :  { %v7273_v54 = vadd.f32 %v1082_v17, %v9200_v21  ;;  %v9211_v17 = vld [vmem:[#allocation55_spill] sm:$0xff] }
 0x1e8   :  { %v1084_v41 = vpop.f32.mrf.mxu0 }
 0x1e9   :  { %9201 = vst [vmem:[#allocation46_spill] sm:$0xff] %v7273_v54  ;;  %v7275_v27 = vadd.f32 %v1084_v41, %v771_v8 }
 0x1ea   :  { %v1086_v53 = vpop.f32.mrf.mxu0 }
 0x1eb   :  { %9202 = vst [vmem:[#allocation47_spill] sm:$0xff] %v7275_v27  ;;  %v7278_v19 = vadd.f32 %v1086_v53, %v9203_v51  ;;  %v9214_v51 = vld [vmem:[#allocation57_spill] sm:$0xff] }
 0x1ec   :  { %v7280_v46 = vpop.f32.mrf.mxu0  ;;  %v1496_v54 = vadd.f32 %v9214_v51, %v7027_v33 }
 0x1ed   :  { %9204 = vst [vmem:[#allocation49_spill] sm:$0xff] %v7278_v19  ;;  %9205 = vst [vmem:[#allocation87_spill] sm:$0xff] %v7280_v46 }
 0x1ee   :  { %v1092_v5 = vpop.f32.mrf.mxu0 }
 0x1ef   :  { %v7285_v25 = vadd.f32 %v1092_v5, %v9208_v32 }
 0x1f0   :  { %v1094_v58 = vpop.f32.mrf.mxu0 }
 0x1f1   :  { %9209 = vst [vmem:[#allocation53_spill] sm:$0xff] %v7285_v25  ;;  %v7287_v13 = vadd.f32 %v1094_v58, %v781_v34 }
 0x1f2   :  { %v1096_v21 = vpop.f32.mrf.mxu0 }
 0x1f3   :  { %9210 = vst [vmem:[#allocation51_spill] sm:$0xff] %v7287_v13  ;;  %v7290_v8 = vadd.f32 %v1096_v21, %v9211_v17  ;;  %v1500_v21 = vadd.f32 %v7033_v38, %v7047_v61 }
 0x1f4   :  { %v7292_v41 = vpop.f32.mrf.mxu0 }
 0x1f5   :  { %9212 = vst [vmem:[#allocation52_spill] sm:$0xff] %v7290_v8  ;;  %9213 = vst [vmem:[#allocation55_spill] sm:$0xff] %v7292_v41  ;;  %v1923_v41 = vlaneseq }
 0x1f6   :  { %v1698_v53 = vpop.f32.mrf.mxu0 }
 0x1f7   :  { %v7297_v27 = vadd.f32 %v1698_v53, %v7029_v35  ;;  %v7353_v26 = vshrl.u32 %v1923_v41, 7 }
 0x1f8   :  { %v1700_v22 = vpop.f32.mrf.mxu0 }
 0x1f9   :  { %9215 = vst [vmem:[#allocation57_spill] sm:$0xff] %v7297_v27  ;;  %v7299_v56 = vadd.f32 %v1700_v22, %v1496_v54  ;;  %9228 = vst [vmem:[#allocation100_spill] sm:$0xff] %v7353_v26 }
 0x1fa   :  { %v1702_v32 = vpop.f32.mrf.mxu0 }
 0x1fb   :  { %9216 = vst [vmem:[#allocation88_spill] sm:$0xff] %v7299_v56  ;;  %v7302_v34 = vadd.f32 %v1702_v32, %v7038_v11 }
 0x1fc   :  { %v7304_v5 = vpop.f32.mrf.mxu0 }
 0x1fd   :  { %9217 = vst [vmem:[#allocation89_spill] sm:$0xff] %v7302_v34  ;;  %9218 = vst [vmem:[#allocation90_spill] sm:$0xff] %v7304_v5  ;;  %v9231_v34 = vld [vmem:[#allocation12_spill] sm:$0xff]  ;;  %v9236_v5 = vld [vmem:[#allocation13_spill] sm:$0xff] }
 0x1fe   :  { %v1708_v58 = vpop.f32.mrf.mxu0 }
 0x1ff   :  { %v7309_v17 = vadd.f32 %v1708_v58, %v7049_v59 }
 0x200   :  { %v1710_v33 = vpop.f32.mrf.mxu0 }
 0x201   :  { %9219 = vst [vmem:[#allocation91_spill] sm:$0xff] %v7309_v17  ;;  %v7311_v51 = vadd.f32 %v1710_v33, %v1500_v21  ;;  %v9232_v17 = vld [vmem:[#allocation11_spill] sm:$0xff] }
 0x202   :  { %v1712_v35 = vpop.f32.mrf.mxu0  ;;  %v675_v41 = vadd.f32 %v9232_v17, %v9231_v34  ;;  %v9239_v34 = vsub.s32 0, %v7353_v26 }
 0x203   :  { %9220 = vst [vmem:[#allocation92_spill] sm:$0xff] %v7311_v51  ;;  %v7314_v54 = vadd.f32 %v1712_v35, %v7056_v30  ;;  %v7341_v35 = vpop.f32.mrf.mxu1  ;;  %v9233_v51 = vld [vmem:[#allocation16_spill] sm:$0xff] }
 0x204   :  { %v7316_v53 = vpop.f32.mrf.mxu0  ;;  %9226 = vst [vmem:[#allocation98_spill] sm:$0xff] %v7341_v35  ;;  %v9238_v35 = vld [vmem:[#allocation17_spill] sm:$0xff] }
 0x205   :  { %9221 = vst [vmem:[#allocation93_spill] sm:$0xff] %v7314_v54  ;;  %9222 = vst [vmem:[#allocation94_spill] sm:$0xff] %v7316_v53  ;;  %v7347_v13 = vpop.f32.mrf.mxu1  ;;  %v9234_v54 = vld [vmem:[#allocation15_spill] sm:$0xff]  ;;  %v9237_v53 = vld [vmem:[#allocation18_spill] sm:$0xff] }
 0x206   :  { %v1718_v11 = vpop.f32.mrf.mxu0  ;;  %9227 = vst [vmem:[#allocation99_spill] sm:$0xff] %v7347_v13  ;;  %v1921_v13 = vld [vmem:[%s9067_s2] sm:$0x3]  ;;  %v705_v43 = vadd.f32 %v9238_v35, %v9237_v53  ;;  %v7394_v53 = vadd.f32 %v7059_v9, %v7072_v47  ;;  %v1511_v9 = vadd.f32 %v7095_v42, %v7112_v4  ;;  %v1513_v47 = vadd.f32 %v7107_v57, %v7123_v0  ;;  %v9244_v4 = vld [vmem:[#allocation67_spill] sm:$0xff]  ;;  %v9246_v0 = vld [vmem:[#allocation74_spill] sm:$0xff] }
 0x207   :  { %v7319_v22 = vadd.f32 %v1718_v11, %v7067_v23  ;;  %v7355_v46 = vpop.f32.mrf.mxu1  ;;  %v7381_v17 = vrot.slane %v1921_v13, %v9239_v34  ;;  %v9245_v57 = vld [vmem:[#allocation64_spill] sm:$0xff]  ;;  %v9248_v35 = vld [vmem:[#allocation69_spill] sm:$0xff]  ;;  %v9252_v34 = vld [vmem:[#allocation66_spill] sm:$0xff] }
 0x208   :  { %v7321_v32 = vpop.f32.mrf.mxu0  ;;  %9229 = vst [vmem:[#allocation101_spill] sm:$0xff] %v7355_v46  ;;  %v695_v46 = vadd.f32 %v9234_v54, %v9233_v51  ;;  %v9240_v51 = vsub.s32 1, %v7353_v26  ;;  %v7390_v54 = vadd.f32 %v7044_v48, %v7054_v55  ;;  %v7410_v48 = vadd.f32 %v7083_v62, %v7098_v12 }
 0x209   :  { %9223 = vst [vmem:[#allocation95_spill] sm:$0xff] %v7319_v22  ;;  %9224 = vst [vmem:[#allocation96_spill] sm:$0xff] %v7321_v32  ;;  %v7361_v27 = vpop.f32.mrf.mxu1  ;;  %v9235_v22 = vld [vmem:[#allocation14_spill] sm:$0xff]  ;;  %v1120_v32 = vadd.f32 %v7126_v3, %v675_v41  ;;  %v9241_v3 = vld [vmem:[#allocation60_spill] sm:$0xff]  ;;  %v7414_v55 = vadd.f32 %v7090_v44, %v7104_v36  ;;  %v1524_v12 = vadd.f32 %v7174_v10, %v7187_v40 }
 0x20a   :  { %v7323_v8 = vpop.f32.mrf.mxu0  ;;  %9230 = vst [vmem:[#allocation102_spill] sm:$0xff] %v7361_v27  ;;  %v685_v29 = vadd.f32 %v9236_v5, %v9235_v22  ;;  %v2190_v27 = vld [vmem:[%s9068_s3 + $0x8] sm:$0xff]  ;;  %v7385_v5 = vrot.slane %v1921_v13, %v9240_v51  ;;  %v1132_v42 = vadd.f32 %v7192_v1, %v705_v43  ;;  %v9251_v10 = vld [vmem:[#allocation70_spill] sm:$0xff]  ;;  %v9253_v51 = vld [vmem:[#allocation72_spill] sm:$0xff] }
 0x20b   :  { %9225 = vst [vmem:[#allocation97_spill] sm:$0xff] %v7323_v8  ;;  %v1128_v8 = vadd.f32 %v7172_v14, %v695_v46  ;;  %5230 = vmatprep.mubr.msk.f32.mxu1 %vm2217_vm5, %v2190_v27  ;;  %v7398_v14 = vadd.f32 %v9241_v3, %v7080_v45  ;;  %v7402_v46 = vadd.f32 %v7069_v49, %v7086_v39  ;;  %v7404_v13 = vpop.f32.mrf.mxu1  ;;  %v9242_v39 = vld [vmem:[#allocation62_spill] sm:$0xff]  ;;  %v9250_v41 = vld [vmem:[#allocation73_spill] sm:$0xff]  ;;  %v9254_v3 = vld [vmem:[#allocation68_spill] sm:$0xff] }
 0x20c   :  { %v7325_v38 = vpop.f32.mrf.mxu0  ;;  %v1508_v27 = vadd.f32 %v7077_v52, %v7093_v50  ;;  %v1512_v49 = vadd.f32 %v7101_v28, %v7118_v16  ;;  %v1124_v45 = vadd.f32 %v7150_v37, %v685_v29  ;;  %v1523_v52 = vadd.f32 %v7167_v31, %v7182_v63  ;;  %v9243_v28 = vld [vmem:[#allocation63_spill] sm:$0xff] }
 0x20d   :  { %v1514_v50 = vadd.f32 %v9242_v39, %v1120_v32  ;;  %v1522_v44 = vadd.f32 %v7163_v20, %v1128_v8  ;;  %v1515_v36 = vadd.f32 %v9243_v28, %v7136_v18  ;;  %v1516_v16 = vadd.f32 %v9245_v57, %v9244_v4  ;;  %v9247_v37 = vld [vmem:[#allocation71_spill] sm:$0xff]  ;;  %v7436_v31 = vpop.f32.mrf.mxu1  ;;  %v9249_v20 = vld [vmem:[#allocation65_spill] sm:$0xff] }
 0x20e   :  { %v7327_v61 = vpop.f32.mrf.mxu0  ;;  %v1521_v29 = vadd.f32 %v9247_v37, %v9246_v0  ;;  %v1517_v8 = vadd.f32 %v9249_v20, %v9248_v35  ;;  %v1520_v40 = vadd.f32 %v9251_v10, %v9250_v41  ;;  %v1518_v18 = vadd.f32 %v9252_v34, %v1124_v45  ;;  %v9255_v28 = vld [vmem:[#allocation77_spill] sm:$0xff]  ;;  %v9256_v4 = vld [vmem:[#allocation75_spill] sm:$0xff] }
 0x20f   :  { %v1519_v39 = vadd.f32 %v9254_v3, %v9253_v51  ;;  %v1525_v57 = vadd.f32 %v9256_v4, %v9255_v28 }
 0x210   :  { %v7329_v59 = vpop.f32.mrf.mxu0 }
 0x211   :  { %v7449_v26 = vadd.f32 %v7329_v59, %v1508_v27 }
 0x212   :  { %v7331_v58 = vpop.f32.mrf.mxu0 }
 0x214   :  { %v7333_v30 = vpop.f32.mrf.mxu0 }
 0x216   :  { %v7335_v21 = vpop.f32.mrf.mxu0 }
 0x217   :  { %v1873_v45 = vadd.f32 %v7335_v21, %v1511_v9 }
 0x218   :  { %v7337_v33 = vpop.f32.mrf.mxu0 }
 0x21a   :  { %v7339_v23 = vpop.f32.mrf.mxu0 }
 0x21b   :  { %v1875_v51 = vadd.f32 %v7339_v23, %v1513_v47  ;;  %v1872_v47 = vadd.f32 %v7333_v30, %v7414_v55  ;;  %v1869_v55 = vadd.f32 %v7327_v61, %v7402_v46  ;;  %v9266_v46 = vld [vmem:[#allocation61_spill] sm:$0xff] }
 0x21c   :  { %v7343_v11 = vpop.f32.mrf.mxu0 }
 0x21d   :  { %v1876_v59 = vadd.f32 %v7343_v11, %v1514_v50 }
 0x21e   :  { %v7345_v19 = vpop.f32.mrf.mxu0 }
 0x21f   :  { %v1877_v11 = vadd.f32 %v7345_v19, %v1515_v36  ;;  %v1874_v19 = vadd.f32 %v7337_v33, %v1512_v49  ;;  %v1952_v33 = vadd.f32 %v7385_v5, %v1876_v59 }
 0x220   :  { %v7349_v25 = vpop.f32.mrf.mxu0 }
 0x222   :  { %v7351_v6 = vpop.f32.mrf.mxu0 }
 0x224   :  { %v7357_v15 = vpop.f32.mrf.mxu0 }
 0x226   :  { %v1758_v7 = vpop.f32.mrf.mxu0 }
 0x228   :  { %v1760_v56 = vpop.f32.mrf.mxu0 }
 0x229   :  { %v1882_v35 = vadd.f32 %v1760_v56, %v1520_v40  ;;  %v1879_v56 = vadd.f32 %v7351_v6, %v1517_v8 }
 0x22a   :  { %v1762_v24 = vpop.f32.mrf.mxu0 }
 0x22b   :  { %v1883_v0 = vadd.f32 %v1762_v24, %v1521_v29  ;;  %v1880_v24 = vadd.f32 %v7357_v15, %v1518_v18  ;;  %v1958_v9 = vadd.f32 %v7385_v5, %v1882_v35  ;;  %v9258_v15 = vld [vmem:[#allocation79_spill] sm:$0xff]  ;;  %v1955_v3 = vadd.f32 %v7381_v17, %v1879_v56 }
 0x22c   :  { %v1764_v22 = vpop.f32.mrf.mxu0  ;;  %v1951_v35 = vadd.f32 %v7381_v17, %v1875_v51 }
 0x22d   :  { %v1884_v1 = vadd.f32 %v1764_v22, %v1522_v44  ;;  %v7452_v22 = vpop.f32.mrf.mxu1  ;;  %v1881_v44 = vadd.f32 %v1758_v7, %v1519_v39  ;;  %v1959_v27 = vadd.f32 %v7381_v17, %v1883_v0  ;;  %v1878_v7 = vadd.f32 %v7349_v25, %v1516_v16 }
 0x22e   :  { %v1768_v62 = vpop.f32.mrf.mxu0  ;;  %v1956_v18 = vadd.f32 %v7385_v5, %v1880_v24  ;;  %v2022_v4 = vmul.f32 0.6666667, %v1958_v9  ;;  %v1953_v0 = vadd.f32 %v7381_v17, %v1877_v11  ;;  %v1868_v24 = vadd.f32 %v7325_v38, %v7398_v14 }
 0x22f   :  { %v1885_v63 = vadd.f32 %v1768_v62, %v1523_v52  ;;  %v9257_v52 = vld [vmem:[#allocation76_spill] sm:$0xff]  ;;  %v1960_v29 = vadd.f32 %v7385_v5, %v1884_v1  ;;  %v7468_v1 = vpop.f32.mrf.mxu1  ;;  %v1957_v6 = vadd.f32 %v7381_v17, %v1881_v44  ;;  %v2023_v39 = vmul.f32 0.6666667, %v1959_v27 }
 0x230   :  { %v1770_v32 = vpop.f32.mrf.mxu0  ;;  %v1526_v62 = vadd.f32 %v9257_v52, %v1132_v42  ;;  %v1954_v36 = vadd.f32 %v7385_v5, %v1878_v7  ;;  %v2020_v49 = vmul.f32 0.6666667, %v1956_v18  ;;  %v2015_v56 = vmul.f32 0.6666667, %v1951_v35  ;;  %v9273_v18 = vld [vmem:[#allocation58_spill] sm:$0xff] }
 0x231   :  { %v1886_v43 = vadd.f32 %v1770_v32, %v1524_v12  ;;  %v1961_v12 = vadd.f32 %v7381_v17, %v1885_v63  ;;  %v2024_v25 = vmul.f32 0.6666667, %v1960_v29  ;;  %v1948_v29 = vadd.f32 %v7385_v5, %v1872_v47 }
 0x232   :  { %v1772_v37 = vpop.f32.mrf.mxu0  ;;  %v1945_v14 = vadd.f32 %v7381_v17, %v1869_v55 }
 0x233   :  { %v1962_v20 = vadd.f32 %v7385_v5, %v1886_v43  ;;  %v1887_v32 = vadd.f32 %v1772_v37, %v1525_v57  ;;  %v2025_v50 = vmul.f32 0.6666667, %v1961_v12  ;;  %v7479_v57 = vpop.f32.mrf.mxu1  ;;  %v2021_v37 = vmul.f32 0.6666667, %v1957_v6 }
 0x234   :  { %v1774_v41 = vpop.f32.mrf.mxu0  ;;  %v2018_v12 = vmul.f32 0.6666667, %v1954_v36  ;;  %v1944_v6 = vadd.f32 %v7385_v5, %v1868_v24  ;;  %v9274_v36 = vld [vmem:[#allocation26_spill] sm:$0xff] }
 0x235   :  { %v2026_v42 = vmul.f32 0.6666667, %v1962_v20  ;;  %v1888_v10 = vadd.f32 %v1774_v41, %v1526_v62  ;;  %v1963_v40 = vadd.f32 %v7381_v17, %v1887_v32  ;;  %v1871_v62 = vadd.f32 %v7331_v58, %v7410_v48  ;;  %v7497_v30 = vpop.f32.mrf.mxu1 }
 0x236   :  { %v1778_v21 = vpop.f32.mrf.mxu0  ;;  %v2019_v20 = vmul.f32 0.6666667, %v1955_v3  ;;  %v1949_v41 = vadd.f32 %v7381_v17, %v1873_v45  ;;  %v2017_v58 = vmul.f32 0.6666667, %v1953_v0  ;;  %v9267_v45 = vld [vmem:[#allocation96_spill] sm:$0xff] }
 0x237   :  { %v1964_v63 = vadd.f32 %v7385_v5, %v1888_v10  ;;  %v7466_v43 = vadd.f32 %v1778_v21, %v9258_v15  ;;  %v2027_v8 = vmul.f32 0.6666667, %v1963_v40  ;;  %5964 = vtanh.f32 %v2026_v42  ;;  %v7514_v38 = vpop.f32.mrf.mxu1  ;;  %v9271_v15 = vld [vmem:[#allocation94_spill] sm:$0xff] }
 0x238   :  { %v7472_v34 = vpop.f32.mrf.mxu0  ;;  %v2016_v42 = vmul.f32 0.6666667, %v1952_v33  ;;  %v1947_v59 = vadd.f32 %v7381_v17, %v1871_v62  ;;  %v1866_v27 = vadd.f32 %v9267_v45, %v9266_v46  ;;  %v1946_v40 = vadd.f32 %v7385_v5, %v7449_v26  ;;  %v9277_v33 = vld [vmem:[#allocation95_spill] sm:$0xff] }
 0x239   :  { %9259 = vst [vmem:[#allocation12_spill] sm:$0xff] %v7466_v43  ;;  %9260 = vst [vmem:[#allocation11_spill] sm:$0xff] %v7472_v34  ;;  %v2028_v16 = vmul.f32 0.6666667, %v1964_v63  ;;  %5966 = vtanh.f32 %v2027_v8  ;;  %v2013_v7 = vmul.f32 0.6666667, %v1949_v41  ;;  %v1864_v11 = vadd.f32 %v9271_v15, %v7390_v54  ;;  %v7532_v0 = vpop.f32.mrf.mxu1 }
 0x23a   :  { %v1782_v28 = vpop.f32.mrf.mxu0  ;;  %v9272_v8 = vld [vmem:[#allocation59_spill] sm:$0xff]  ;;  %v2011_v51 = vmul.f32 0.6666667, %v1947_v59  ;;  %v2009_v62 = vmul.f32 0.6666667, %v1945_v14  ;;  %v9278_v41 = vld [vmem:[#allocation93_spill] sm:$0xff] }
 0x23b   :  { %5968 = vtanh.f32 %v2028_v16  ;;  %v7483_v52 = vadd.f32 %v1782_v28, %v7206_v2  ;;  %v1950_v2 = vadd.f32 %v7385_v5, %v1874_v19  ;;  %v1942_v28 = vadd.f32 %v7385_v5, %v1866_v27  ;;  %v7546_v45 = vpop.f32.mrf.mxu1  ;;  %v9280_v27 = vld [vmem:[#allocation91_spill] sm:$0xff] }
 0x23c   :  { %5970 = vtanh.f32 %v2025_v50  ;;  %v7485_v23 = vpop.f32.mrf.mxu0  ;;  %v2012_v50 = vmul.f32 0.6666667, %v1948_v29  ;;  %v2010_v19 = vmul.f32 0.6666667, %v1946_v40  ;;  %v1937_v40 = vadd.f32 %v7381_v17, %v9280_v27 }
 0x23d   :  { %9261 = vst [vmem:[#allocation16_spill] sm:$0xff] %v7483_v52  ;;  %9262 = vst [vmem:[#allocation15_spill] sm:$0xff] %v7485_v23  ;;  %5972 = vtanh.f32 %v2024_v25  ;;  %v2014_v21 = vmul.f32 0.6666667, %v1950_v2  ;;  %v1498_v25 = vadd.f32 %v9273_v18, %v9272_v8  ;;  %v2008_v2 = vmul.f32 0.6666667, %v1944_v6 }
 0x23e   :  { %5974 = vtanh.f32 %v2023_v39  ;;  %v1788_v44 = vpop.f32.mrf.mxu0  ;;  %v9305_v23 = vld [vmem:[#allocation78_spill] sm:$0xff] }
 0x23f   :  { %5976 = vtanh.f32 %v2022_v4  ;;  %v7495_v32 = vadd.f32 %v1788_v44, %v7213_v60  ;;  %v9265_v60 = vld [vmem:[#allocation97_spill] sm:$0xff]  ;;  %v1940_v44 = vadd.f32 %v7385_v5, %v1864_v11 }
 0x240   :  { %5978 = vtanh.f32 %v2021_v37  ;;  %v7502_v48 = vpop.f32.mrf.mxu0  ;;  %v1867_v10 = vadd.f32 %v9265_v60, %v7394_v53  ;;  %v9268_v53 = vld [vmem:[#allocation82_spill] sm:$0xff] }
 0x241   :  { %9263 = vst [vmem:[#allocation14_spill] sm:$0xff] %v7495_v32  ;;  %9264 = vst [vmem:[#allocation13_spill] sm:$0xff] %v7502_v48  ;;  %5980 = vtanh.f32 %v2020_v49  ;;  %v9276_v37 = vld [vmem:[#allocation90_spill] sm:$0xff]  ;;  %v1941_v49 = vadd.f32 %v7381_v17, %v9277_v33  ;;  %v2004_v11 = vmul.f32 0.6666667, %v1940_v44 }
 0x242   :  { %5982 = vtanh.f32 %v2019_v20  ;;  %v1792_v61 = vpop.f32.mrf.mxu0  ;;  %v1943_v16 = vadd.f32 %v7381_v17, %v1867_v10  ;;  %v1860_v47 = vadd.f32 %v9276_v37, %v1498_v25  ;;  %v9279_v10 = vld [vmem:[#allocation92_spill] sm:$0xff]  ;;  %v9283_v37 = vld [vmem:[#allocation57_spill] sm:$0xff]  ;;  %v2001_v33 = vmul.f32 0.6666667, %v1937_v40 }
 0x243   :  { %5984 = vtanh.f32 %v2018_v12  ;;  %v7518_v9 = vadd.f32 %v1792_v61, %v9268_v53  ;;  %v1938_v59 = vadd.f32 %v7385_v5, %v9279_v10 }
 0x244   :  { %5986 = vtanh.f32 %v2017_v58  ;;  %v7520_v63 = vpop.f32.mrf.mxu0  ;;  %v5965_v26 = vpop.eup %5964  ;;  %v1939_v58 = vadd.f32 %v7381_v17, %v9278_v41  ;;  %v2007_v24 = vmul.f32 0.6666667, %v1943_v16  ;;  %v1936_v15 = vadd.f32 %v7385_v5, %v1860_v47 }
 0x245   :  { %9269 = vst [vmem:[#allocation18_spill] sm:$0xff] %v7518_v9  ;;  %9270 = vst [vmem:[#allocation17_spill] sm:$0xff] %v7520_v63  ;;  %5988 = vtanh.f32 %v2016_v42  ;;  %v2154_v61 = vmul.f32 1.7159, %v5965_v26  ;;  %v9281_v26 = vld [vmem:[#allocation89_spill] sm:$0xff]  ;;  %v1933_v47 = vadd.f32 %v7381_v17, %v9283_v37  ;;  %v9303_v9 = vld [vmem:[#allocation56_spill] sm:$0xff] }
 0x246   :  { %5990 = vtanh.f32 %v2015_v56  ;;  %v1798_v3 = vpop.f32.mrf.mxu0  ;;  %v5967_v39 = vpop.eup %5966  ;;  %v2006_v56 = vmul.f32 0.6666667, %v1942_v28  ;;  %v1935_v8 = vadd.f32 %v7381_v17, %v9281_v26  ;;  %v2003_v18 = vmul.f32 0.6666667, %v1939_v58  ;;  %v9322_v63 = vld [vmem:[#allocation55_spill] sm:$0xff] }
 0x247   :  { %5992 = vtanh.f32 %v2014_v21  ;;  %v7530_v54 = vadd.f32 %v1798_v3, %v9274_v36  ;;  %v2155_v29 = vmul.f32 1.7159, %v5967_v39  ;;  %v2005_v21 = vmul.f32 0.6666667, %v1941_v49  ;;  %v9282_v3 = vld [vmem:[#allocation88_spill] sm:$0xff] }
 0x248   :  { %v5969_v4 = vpop.eup %5968  ;;  %5994 = vtanh.f32 %v2013_v7  ;;  %v7537_v35 = vpop.f32.mrf.mxu0  ;;  %v1934_v39 = vadd.f32 %v7385_v5, %v9282_v3  ;;  %v2002_v28 = vmul.f32 0.6666667, %v1938_v59  ;;  %v2000_v44 = vmul.f32 0.6666667, %v1936_v15 }
 0x249   :  { %9275 = vst [vmem:[#allocation60_spill] sm:$0xff] %v7530_v54  ;;  %v5971_v20 = vpop.eup %5970  ;;  %5996 = vtanh.f32 %v2012_v50  ;;  %v2156_v12 = vmul.f32 1.7159, %v5969_v4  ;;  %v7559_v4 = vpop.f32.mrf.mxu1 }
 0x24a   :  { %v5973_v55 = vpop.eup %5972  ;;  %5998 = vtanh.f32 %v2011_v51  ;;  %v7542_v42 = vpop.f32.mrf.mxu0  ;;  %v2153_v14 = vmul.f32 1.7159, %v5971_v20 }
 0x24b   :  { %v5975_v60 = vpop.eup %5974  ;;  %6000 = vtanh.f32 %v2010_v19  ;;  %2267 = vmatprep.subr.mxu1 %v2156_v12  ;;  %v2152_v6 = vmul.f32 1.7159, %v5973_v55  ;;  %v1999_v55 = vmul.f32 0.6666667, %v1935_v8  ;;  %v7567_v59 = vpop.f32.mrf.mxu1 }
 0x24c   :  { %v5977_v46 = vpop.eup %5976  ;;  %6002 = vtanh.f32 %v2009_v62  ;;  %v7550_v7 = vpop.f32.mrf.mxu0  ;;  %2268 = vmatpush1.msra.mxu1 %v2155_v29  ;;  %v2151_v25 = vmul.f32 1.7159, %v5975_v60  ;;  %v1998_v29 = vmul.f32 0.6666667, %v1934_v39 }
 0x24d   :  { %v5979_v53 = vpop.eup %5978  ;;  %6004 = vtanh.f32 %v2008_v2  ;;  %2269 = vmatprep.subr.mxu1 %v2154_v61  ;;  %v2150_v19 = vmul.f32 1.7159, %v5977_v46 }
 0x24e   :  { %v5981_v50 = vpop.eup %5980  ;;  %6006 = vtanh.f32 %v2007_v24  ;;  %v7555_v16 = vpop.f32.mrf.mxu0  ;;  %2270 = vmatpush1.msra.mxu1 %v2153_v14  ;;  %v2149_v49 = vmul.f32 1.7159, %v5979_v53 }
 0x24f   :  { %v5983_v51 = vpop.eup %5982  ;;  %6008 = vtanh.f32 %v2006_v56  ;;  %2271 = vmatprep.subr.mxu1 %v2152_v6  ;;  %v2148_v2 = vmul.f32 1.7159, %v5981_v50  ;;  %v1997_v56 = vmul.f32 0.6666667, %v1933_v47  ;;  %v7573_v50 = vpop.f32.mrf.mxu1 }
 0x250   :  { %v5985_v36 = vpop.eup %5984  ;;  %6010 = vtanh.f32 %v2005_v21  ;;  %v7563_v62 = vpop.f32.mrf.mxu0  ;;  %2272 = vmatpush1.msra.mxu1 %v2151_v25  ;;  %v2147_v41 = vmul.f32 1.7159, %v5983_v51 }
 0x251   :  { %v5987_v20 = vpop.eup %5986  ;;  %6012 = vtanh.f32 %v2004_v11  ;;  %2273 = vmatprep.subr.mxu1 %v2150_v19  ;;  %v2146_v60 = vmul.f32 1.7159, %v5985_v36  ;;  %v7579_v37 = vpop.f32.mrf.mxu1 }
 0x252   :  { %v5989_v12 = vpop.eup %5988  ;;  %6014 = vtanh.f32 %v2003_v18  ;;  %v7565_v58 = vpop.f32.mrf.mxu0  ;;  %2274 = vmatpush1.msra.mxu1 %v2149_v49  ;;  %v2145_v61 = vmul.f32 1.7159, %v5987_v20 }
 0x253   :  { %v5991_v24 = vpop.eup %5990  ;;  %6016 = vtanh.f32 %v2002_v28  ;;  %2275 = vmatprep.subr.mxu1 %v2148_v2  ;;  %v2144_v40 = vmul.f32 1.7159, %v5989_v12 }
 0x254   :  { %v5993_v10 = vpop.eup %5992  ;;  %6018 = vtanh.f32 %v2001_v33  ;;  %v7569_v46 = vpop.f32.mrf.mxu0  ;;  %2276 = vmatpush1.msra.mxu1 %v2147_v41  ;;  %v2143_v14 = vmul.f32 1.7159, %v5991_v24 }
 0x255   :  { %v5995_v27 = vpop.eup %5994  ;;  %6020 = vtanh.f32 %v2000_v44  ;;  %2277 = vmatprep.subr.mxu1 %v2146_v60  ;;  %v2142_v11 = vmul.f32 1.7159, %v5993_v10 }
 0x256   :  { %v5997_v21 = vpop.eup %5996  ;;  %6022 = vtanh.f32 %v1999_v55  ;;  %v7571_v53 = vpop.f32.mrf.mxu0  ;;  %2278 = vmatpush1.msra.mxu1 %v2145_v61  ;;  %v2141_v26 = vmul.f32 1.7159, %v5995_v27 }
 0x257   :  { %v5999_v15 = vpop.eup %5998  ;;  %6024 = vtanh.f32 %v1998_v29  ;;  %2279 = vmatprep.subr.mxu1 %v2144_v40  ;;  %v2140_v25 = vmul.f32 1.7159, %v5997_v21  ;;  %v1482_v29 = vpop.f32.mrf.mxu1 }
 0x258   :  { %v6001_v6 = vpop.eup %6000  ;;  %6026 = vtanh.f32 %v1997_v56  ;;  %v7575_v8 = vpop.f32.mrf.mxu0  ;;  %2280 = vmatpush1.msra.mxu1 %v2143_v14  ;;  %v2139_v3 = vmul.f32 1.7159, %v5999_v15 }
 0x259   :  { %v6003_v18 = vpop.eup %6002  ;;  %2281 = vmatprep.subr.mxu1 %v2142_v11  ;;  %v2138_v19 = vmul.f32 1.7159, %v6001_v6  ;;  %v1486_v6 = vpop.f32.mrf.mxu1 }
 0x25a   :  { %v6005_v51 = vpop.eup %6004  ;;  %v7577_v39 = vpop.f32.mrf.mxu0  ;;  %2282 = vmatpush1.msra.mxu1 %v2141_v26  ;;  %v2137_v47 = vmul.f32 1.7159, %v6003_v18 }
 0x25b   :  { %v6007_v28 = vpop.eup %6006  ;;  %2283 = vmatprep.subr.mxu1 %v2140_v25  ;;  %v2136_v20 = vmul.f32 1.7159, %v6005_v51  ;;  %v1488_v52 = vpop.f32.mrf.mxu1 }
 0x25c   :  { %v6009_v36 = vpop.eup %6008  ;;  %v7581_v33 = vpop.f32.mrf.mxu0  ;;  %2284 = vmatpush1.msra.mxu1 %v2139_v3  ;;  %v2135_v2 = vmul.f32 1.7159, %v6007_v28  ;;  %v9284_v3 = vld [vmem:[#allocation20_spill] sm:$0xff]  ;;  %v9285_v28 = vld [vmem:[#allocation19_spill] sm:$0xff] }
 0x25d   :  { %v6011_v49 = vpop.eup %6010  ;;  %2285 = vmatprep.subr.mxu1 %v2138_v19  ;;  %v2134_v41 = vmul.f32 1.7159, %v6009_v36  ;;  %v715_v19 = vadd.f32 %v9285_v28, %v9284_v3  ;;  %v9286_v36 = vld [vmem:[#allocation25_spill] sm:$0xff] }
 0x25e   :  { %v6013_v44 = vpop.eup %6012  ;;  %v7583_v12 = vpop.f32.mrf.mxu0  ;;  %2286 = vmatpush1.msra.mxu1 %v2137_v47  ;;  %v2133_v60 = vmul.f32 1.7159, %v6011_v49  ;;  %v9287_v47 = vld [vmem:[#allocation23_spill] sm:$0xff] }
 0x25f   :  { %v6015_v55 = vpop.eup %6014  ;;  %2287 = vmatprep.subr.mxu1 %v2136_v20  ;;  %v2132_v61 = vmul.f32 1.7159, %v6013_v44  ;;  %v725_v49 = vadd.f32 %v9287_v47, %v9286_v36  ;;  %v9294_v36 = vld [vmem:[#allocation50_spill] sm:$0xff] }
 0x260   :  { %v6017_v24 = vpop.eup %6016  ;;  %v7585_v10 = vpop.f32.mrf.mxu0  ;;  %2288 = vmatpush1.msra.mxu1 %v2135_v2  ;;  %v2131_v40 = vmul.f32 1.7159, %v6015_v55  ;;  %v9288_v2 = vld [vmem:[#allocation30_spill] sm:$0xff]  ;;  %v9289_v55 = vld [vmem:[#allocation28_spill] sm:$0xff] }
 0x261   :  { %v6019_v56 = vpop.eup %6018  ;;  %2289 = vmatprep.subr.mxu1 %v2134_v41  ;;  %v2130_v15 = vmul.f32 1.7159, %v6017_v24  ;;  %v735_v41 = vadd.f32 %v9289_v55, %v9288_v2  ;;  %v9297_v2 = vld [vmem:[#allocation84_spill] sm:$0xff] }
 0x262   :  { %v6021_v27 = vpop.eup %6020  ;;  %v7587_v21 = vpop.f32.mrf.mxu0  ;;  %2290 = vmatpush1.msra.mxu1 %v2133_v60  ;;  %v2129_v26 = vmul.f32 1.7159, %v6019_v56  ;;  %v9290_v60 = vld [vmem:[#allocation35_spill] sm:$0xff]  ;;  %v9291_v56 = vld [vmem:[#allocation33_spill] sm:$0xff]  ;;  %v9298_v55 = vld [vmem:[#allocation40_spill] sm:$0xff] }
 0x263   :  { %v6023_v14 = vpop.eup %6022  ;;  %2291 = vmatprep.subr.mxu1 %v2132_v61  ;;  %v2128_v51 = vmul.f32 1.7159, %v6021_v27  ;;  %v745_v61 = vadd.f32 %v9291_v56, %v9290_v60  ;;  %v9293_v27 = vld [vmem:[#allocation24_spill] sm:$0xff]  ;;  %v9299_v60 = vld [vmem:[#allocation38_spill] sm:$0xff] }
 0x264   :  { %v6025_v11 = vpop.eup %6024  ;;  %v7589_v18 = vpop.f32.mrf.mxu0  ;;  %2292 = vmatpush1.msra.mxu1 %v2131_v40  ;;  %v2127_v20 = vmul.f32 1.7159, %v6023_v14  ;;  %v9292_v40 = vld [vmem:[#allocation81_spill] sm:$0xff]  ;;  %v1140_v43 = vadd.f32 %v9293_v27, %v725_v49  ;;  %v9295_v14 = vld [vmem:[#allocation48_spill] sm:$0xff]  ;;  %v755_v56 = vadd.f32 %v9299_v60, %v9298_v55  ;;  %v9302_v27 = vld [vmem:[#allocation87_spill] sm:$0xff] }
 0x265   :  { %v6027_v25 = vpop.eup %6026  ;;  %2293 = vmatprep.subr.mxu1 %v2130_v15  ;;  %v2126_v24 = vmul.f32 1.7159, %v6025_v11  ;;  %v1136_v15 = vadd.f32 %v9292_v40, %v715_v19  ;;  %v775_v47 = vadd.f32 %v9295_v14, %v9294_v36  ;;  %v9300_v19 = vld [vmem:[#allocation45_spill] sm:$0xff]  ;;  %v9301_v40 = vld [vmem:[#allocation43_spill] sm:$0xff]  ;;  %v9310_v14 = vld [vmem:[#allocation98_spill] sm:$0xff] }
 0x266   :  { %v1838_v44 = vpop.f32.mrf.mxu0  ;;  %2294 = vmatpush1.msra.mxu1 %v2129_v26  ;;  %v2125_v3 = vmul.f32 1.7159, %v6027_v25  ;;  %v9296_v26 = vld [vmem:[#allocation83_spill] sm:$0xff]  ;;  %v765_v49 = vadd.f32 %v9301_v40, %v9300_v19 }
 0x267   :  { %2295 = vmatprep.subr.mxu1 %v2128_v51  ;;  %v1144_v32 = vadd.f32 %v9296_v26, %v735_v41  ;;  %v1148_v51 = vadd.f32 %v9297_v2, %v745_v61  ;;  %v1160_v25 = vadd.f32 %v9302_v27, %v775_v47  ;;  %v7613_v36 = vadd.f32 %v9305_v23, %v1136_v15  ;;  %v9307_v41 = vld [vmem:[#allocation21_spill] sm:$0xff]  ;;  %v9309_v61 = vld [vmem:[#allocation27_spill] sm:$0xff]  ;;  %v1490_v26 = vpop.f32.mrf.mxu1  ;;  %v9315_v27 = vld [vmem:[#allocation102_spill] sm:$0xff] }
 0x268   :  { %v1840_v28 = vpop.f32.mrf.mxu0  ;;  %2296 = vmatpush1.msra.mxu1 %v2127_v20  ;;  %v9304_v20 = vld [vmem:[#allocation54_spill] sm:$0xff]  ;;  %v9311_v55 = vld [vmem:[#allocation99_spill] sm:$0xff]  ;;  %v9313_v47 = vld [vmem:[#allocation101_spill] sm:$0xff] }
 0x269   :  { %2297 = vmatprep.subr.mxu1 %v2126_v24  ;;  %v785_v54 = vadd.f32 %v9304_v20, %v9303_v9  ;;  %9306 = vst [vmem:[#allocation62_spill] sm:$0xff] %v7613_v36  ;;  %v7616_v24 = vadd.f32 %v9307_v41, %v1140_v43  ;;  %v7623_v60 = vadd.f32 %v9311_v55, %v1144_v32  ;;  %v9312_v19 = vld [vmem:[#allocation31_spill] sm:$0xff]  ;;  %v9314_v9 = vld [vmem:[#allocation32_spill] sm:$0xff]  ;;  %v9316_v15 = vld [vmem:[#allocation85_spill] sm:$0xff] }
 0x26a   :  { %v1842_v11 = vpop.f32.mrf.mxu0  ;;  %2298 = vmatpush1.msra.mxu1 %v2125_v3  ;;  %v7620_v3 = vadd.f32 %v9310_v14, %v9309_v61  ;;  %v7627_v40 = vadd.f32 %v9313_v47, %v9312_v19  ;;  %v7631_v23 = vadd.f32 %v9315_v27, %v9314_v9  ;;  %v1152_v43 = vadd.f32 %v9316_v15, %v755_v56  ;;  %v9317_v20 = vld [vmem:[#allocation34_spill] sm:$0xff]  ;;  %v9318_v14 = vld [vmem:[#allocation36_spill] sm:$0xff]  ;;  %v9319_v55 = vld [vmem:[#allocation53_spill] sm:$0xff] }
 0x26b   :  { %9308 = vst [vmem:[#allocation63_spill] sm:$0xff] %v7616_v24  ;;  %v7636_v41 = vadd.f32 %v7404_v13, %v9317_v20  ;;  %v7639_v61 = vadd.f32 %v7436_v31, %v1148_v51  ;;  %v1543_v32 = vadd.f32 %v7452_v22, %v9318_v14  ;;  %v1555_v36 = vadd.f32 %v1486_v6, %v9319_v55  ;;  %v9320_v47 = vld [vmem:[#allocation86_spill] sm:$0xff]  ;;  %v9321_v9 = vld [vmem:[#allocation51_spill] sm:$0xff]  ;;  %v9323_v15 = vld [vmem:[#allocation37_spill] sm:$0xff]  ;;  %v1492_v22 = vpop.f32.mrf.mxu1 }
 0x26c   :  { %v1844_v2 = vpop.f32.mrf.mxu0  ;;  %v1156_v48 = vadd.f32 %v9320_v47, %v765_v49  ;;  %v1554_v34 = vadd.f32 %v1482_v29, %v1160_v25  ;;  %v1556_v27 = vadd.f32 %v1488_v52, %v9321_v9  ;;  %v1164_v56 = vadd.f32 %v9322_v63, %v785_v54  ;;  %v9324_v20 = vld [vmem:[#allocation39_spill] sm:$0xff]  ;;  %v9325_v51 = vld [vmem:[#allocation49_spill] sm:$0xff]  ;;  %v9327_v63 = vld [vmem:[#allocation42_spill] sm:$0xff] }
 0x26d   :  { %v1544_v13 = vadd.f32 %v7468_v1, %v9323_v15  ;;  %v1545_v31 = vadd.f32 %v7479_v57, %v9324_v20  ;;  %v1553_v24 = vadd.f32 %v7579_v37, %v9325_v51  ;;  %v1546_v55 = vadd.f32 %v7497_v30, %v1152_v43  ;;  %v9326_v49 = vld [vmem:[#allocation47_spill] sm:$0xff]  ;;  %v9328_v1 = vld [vmem:[#allocation46_spill] sm:$0xff]  ;;  %v9329_v57 = vld [vmem:[#allocation52_spill] sm:$0xff] }
 0x26e   :  { %v1848_v19 = vpop.f32.mrf.mxu0  ;;  %v1552_v29 = vadd.f32 %v7573_v50, %v9326_v49  ;;  %v1916_v52 = vadd.f32 %v1844_v2, %v1554_v34  ;;  %v1548_v54 = vadd.f32 %v7532_v0, %v9327_v63  ;;  %v1551_v47 = vadd.f32 %v7567_v59, %v9328_v1  ;;  %v9330_v43 = vld [vmem:[#allocation44_spill] sm:$0xff]  ;;  %v9331_v51 = vld [vmem:[#allocation41_spill] sm:$0xff] }
 0x26f   :  { %v1917_v14 = vadd.f32 %v1848_v19, %v1555_v36  ;;  %v1557_v9 = vadd.f32 %v1490_v26, %v9329_v57  ;;  %v1915_v15 = vadd.f32 %v1842_v11, %v1553_v24  ;;  %v1550_v36 = vadd.f32 %v7559_v4, %v1156_v48 }
 0x270   :  { %v1850_v6 = vpop.f32.mrf.mxu0  ;;  %v1558_v19 = vadd.f32 %v1492_v22, %v1164_v56  ;;  %v1914_v20 = vadd.f32 %v1840_v28, %v1552_v29  ;;  %v1549_v34 = vadd.f32 %v7546_v45, %v9330_v43  ;;  %v1913_v50 = vadd.f32 %v1838_v44, %v1551_v47 }
 0x271   :  { %v1918_v25 = vadd.f32 %v1850_v6, %v1556_v27  ;;  %v1993_v2 = vadd.f32 %v7381_v17, %v1917_v14  ;;  %v1912_v59 = vadd.f32 %v7589_v18, %v1550_v36  ;;  %v1992_v26 = vadd.f32 %v7385_v5, %v1916_v52 }
 0x272   :  { %v1852_v37 = vpop.f32.mrf.mxu0  ;;  %v1547_v48 = vadd.f32 %v7514_v38, %v9331_v51  ;;  %v1911_v4 = vadd.f32 %v7587_v21, %v1549_v34  ;;  %v1991_v28 = vadd.f32 %v7381_v17, %v1915_v15  ;;  %v1908_v44 = vadd.f32 %v7581_v33, %v1546_v55  ;;  %v9333_v43 = vld [vmem:[#allocation63_spill] sm:$0xff]  ;;  %v9334_v34 = vld [vmem:[#allocation17_spill] sm:$0xff] }
 0x273   :  { %v1994_v30 = vadd.f32 %v7385_v5, %v1918_v25  ;;  %v1919_v0 = vadd.f32 %v1852_v37, %v1557_v9  ;;  %v1910_v56 = vadd.f32 %v7585_v10, %v1548_v54  ;;  %v1990_v22 = vadd.f32 %v7385_v5, %v1914_v20  ;;  %v9332_v20 = vld [vmem:[#allocation29_spill] sm:$0xff] }
 0x274   :  { %v1854_v27 = vpop.f32.mrf.mxu0  ;;  %v1909_v14 = vadd.f32 %v7583_v12, %v1547_v48  ;;  %v1989_v6 = vadd.f32 %v7381_v17, %v1913_v50  ;;  %v2057_v49 = vmul.f32 0.6666667, %v1993_v2  ;;  %v1988_v21 = vadd.f32 %v7385_v5, %v1912_v59  ;;  %v9338_v51 = vld [vmem:[#allocation13_spill] sm:$0xff] }
 0x275   :  { %v2058_v11 = vmul.f32 0.6666667, %v1994_v30  ;;  %v1920_v24 = vadd.f32 %v1854_v27, %v1558_v19  ;;  %v1995_v45 = vadd.f32 %v7381_v17, %v1919_v0  ;;  %v2056_v29 = vmul.f32 0.6666667, %v1992_v26  ;;  %v9335_v0 = vld [vmem:[#allocation80_spill] sm:$0xff]  ;;  %v9336_v27 = vld [vmem:[#allocation11_spill] sm:$0xff] }
 0x276   :  { %v1907_v25 = vadd.f32 %v7577_v39, %v1545_v31  ;;  %v1987_v33 = vadd.f32 %v7381_v17, %v1911_v4  ;;  %v2055_v10 = vmul.f32 0.6666667, %v1991_v28  ;;  %v1906_v55 = vadd.f32 %v7575_v8, %v1544_v13 }
 0x277   :  { %v1996_v18 = vadd.f32 %v7385_v5, %v1920_v24  ;;  %v2059_v38 = vmul.f32 0.6666667, %v1995_v45  ;;  %6028 = vtanh.f32 %v2058_v11  ;;  %v1986_v63 = vadd.f32 %v7385_v5, %v1910_v56  ;;  %v9337_v24 = vld [vmem:[#allocation22_spill] sm:$0xff]  ;;  %v9340_v56 = vld [vmem:[#allocation15_spill] sm:$0xff] }
 0x278   :  { %v2054_v12 = vmul.f32 0.6666667, %v1990_v22  ;;  %v1905_v54 = vadd.f32 %v7571_v53, %v1543_v32  ;;  %v1985_v1 = vadd.f32 %v7381_v17, %v1909_v14  ;;  %v2053_v47 = vmul.f32 0.6666667, %v1989_v6 }
 0x279   :  { %v2060_v52 = vmul.f32 0.6666667, %v1996_v18  ;;  %6030 = vtanh.f32 %v2059_v38  ;;  %v1904_v57 = vadd.f32 %v7569_v46, %v7639_v61  ;;  %v1984_v39 = vadd.f32 %v7385_v5, %v1908_v44  ;;  %v9339_v44 = vld [vmem:[#allocation62_spill] sm:$0xff]  ;;  %v9341_v18 = vld [vmem:[#allocation60_spill] sm:$0xff] }
 0x27a   :  { %v2052_v31 = vmul.f32 0.6666667, %v1988_v21  ;;  %v1903_v8 = vadd.f32 %v7565_v58, %v7636_v41  ;;  %v1983_v13 = vadd.f32 %v7381_v17, %v1907_v25  ;;  %v2051_v9 = vmul.f32 0.6666667, %v1987_v33  ;;  %v9342_v25 = vld [vmem:[#allocation18_spill] sm:$0xff] }
 0x27b   :  { %6032 = vtanh.f32 %v2060_v52  ;;  %v1902_v53 = vadd.f32 %v7563_v62, %v7631_v23  ;;  %v1982_v32 = vadd.f32 %v7385_v5, %v1906_v55  ;;  %v2050_v15 = vmul.f32 0.6666667, %v1986_v63 }
 0x27c   :  { %6034 = vtanh.f32 %v2057_v49  ;;  %v1901_v46 = vadd.f32 %v7555_v16, %v7627_v40  ;;  %v1981_v61 = vadd.f32 %v7381_v17, %v1905_v54  ;;  %v2049_v37 = vmul.f32 0.6666667, %v1985_v1 }
 0x27d   :  { %6036 = vtanh.f32 %v2056_v29  ;;  %v1900_v58 = vadd.f32 %v7550_v7, %v7623_v60  ;;  %v1980_v41 = vadd.f32 %v7385_v5, %v1904_v57  ;;  %v2048_v36 = vmul.f32 0.6666667, %v1984_v39  ;;  %v9343_v57 = vld [vmem:[#allocation14_spill] sm:$0xff] }
 0x27e   :  { %6038 = vtanh.f32 %v2055_v10  ;;  %v1899_v62 = vadd.f32 %v7542_v42, %v7620_v3  ;;  %v1979_v23 = vadd.f32 %v7381_v17, %v1903_v8  ;;  %v2047_v19 = vmul.f32 0.6666667, %v1983_v13 }
 0x27f   :  { %6040 = vtanh.f32 %v2054_v12  ;;  %v1898_v16 = vadd.f32 %v7537_v35, %v9332_v20  ;;  %v1978_v40 = vadd.f32 %v7385_v5, %v1902_v53  ;;  %v2046_v30 = vmul.f32 0.6666667, %v1982_v32  ;;  %v9345_v20 = vld [vmem:[#allocation12_spill] sm:$0xff] }
 0x280   :  { %6042 = vtanh.f32 %v2053_v47  ;;  %v1977_v7 = vadd.f32 %v7381_v17, %v1901_v46  ;;  %v2045_v60 = vmul.f32 0.6666667, %v1981_v61  ;;  %v1896_v50 = vadd.f32 %v9334_v34, %v9333_v43  ;;  %v9344_v46 = vld [vmem:[#allocation16_spill] sm:$0xff] }
 0x281   :  { %6044 = vtanh.f32 %v2052_v31  ;;  %v1976_v42 = vadd.f32 %v7385_v5, %v1900_v58  ;;  %v2044_v3 = vmul.f32 0.6666667, %v1980_v41  ;;  %v1890_v35 = vadd.f32 %v9336_v27, %v9335_v0 }
 0x282   :  { %6046 = vtanh.f32 %v2051_v9  ;;  %v1975_v59 = vadd.f32 %v7381_v17, %v1899_v62  ;;  %v2043_v26 = vmul.f32 0.6666667, %v1979_v23  ;;  %v1894_v48 = vadd.f32 %v9338_v51, %v9337_v24 }
 0x283   :  { %6048 = vtanh.f32 %v2050_v15  ;;  %v1974_v4 = vadd.f32 %v7385_v5, %v1898_v16  ;;  %v2042_v28 = vmul.f32 0.6666667, %v1978_v40  ;;  %v1892_v22 = vadd.f32 %v9340_v56, %v9339_v44 }
 0x284   :  { %6050 = vtanh.f32 %v2049_v37  ;;  %v6029_v2 = vpop.eup %6028  ;;  %v1973_v14 = vadd.f32 %v7381_v17, %v9341_v18  ;;  %v2041_v6 = vmul.f32 0.6666667, %v1977_v7  ;;  %v1972_v38 = vadd.f32 %v7385_v5, %v1896_v50 }
 0x285   :  { %6052 = vtanh.f32 %v2048_v36  ;;  %v2040_v21 = vmul.f32 0.6666667, %v1976_v42  ;;  %v1971_v33 = vadd.f32 %v7381_v17, %v9342_v25  ;;  %v2039_v10 = vmul.f32 0.6666667, %v1975_v59 }
 0x286   :  { %6054 = vtanh.f32 %v2047_v19  ;;  %v6031_v11 = vpop.eup %6030  ;;  %v1970_v12 = vadd.f32 %v7385_v5, %v1894_v48  ;;  %v2038_v54 = vmul.f32 0.6666667, %v1974_v4  ;;  %v2186_v1 = vmul.f32 1.7159, %v6029_v2 }
 0x287   :  { %6056 = vtanh.f32 %v2046_v30  ;;  %v2187_v55 = vmul.f32 1.7159, %v6031_v11  ;;  %v1969_v39 = vadd.f32 %v7381_v17, %v9343_v57  ;;  %v2037_v31 = vmul.f32 0.6666667, %v1973_v14 }
 0x288   :  { %v6033_v45 = vpop.eup %6032  ;;  %6058 = vtanh.f32 %v2045_v60  ;;  %v1968_v9 = vadd.f32 %v7385_v5, %v1892_v22  ;;  %v2036_v53 = vmul.f32 0.6666667, %v1972_v38  ;;  %v1967_v61 = vadd.f32 %v7381_v17, %v9344_v46  ;;  %v2431_v46 = vld [vmem:[%s9069_s4 + $0x78] sm:$0xff] }
 0x289   :  { %v6035_v49 = vpop.eup %6034  ;;  %6060 = vtanh.f32 %v2044_v3  ;;  %v2188_v29 = vmul.f32 1.7159, %v6033_v45  ;;  %v2035_v37 = vmul.f32 0.6666667, %v1971_v33  ;;  %v1966_v36 = vadd.f32 %v7385_v5, %v1890_v35 }
 0x28a   :  { %v6037_v52 = vpop.eup %6036  ;;  %6062 = vtanh.f32 %v2043_v26  ;;  %v2185_v8 = vmul.f32 1.7159, %v6035_v49  ;;  %v2034_v62 = vmul.f32 0.6666667, %v1970_v12  ;;  %v1965_v16 = vadd.f32 %v7381_v17, %v9345_v20  ;;  %v2427_v20 = vld [vmem:[%s9069_s4 + $0x58] sm:$0xff] }
 0x28b   :  { %v6039_v63 = vpop.eup %6038  ;;  %6064 = vtanh.f32 %v2042_v28  ;;  %5228 = vmatprep.subr.msk.mxu1 %vm2260_vm6, %v2188_v29  ;;  %v2184_v32 = vmul.f32 1.7159, %v6037_v52  ;;  %v2033_v40 = vmul.f32 0.6666667, %v1969_v39  ;;  %v2032_v60 = vmul.f32 0.6666667, %v1968_v9 }
 0x28c   :  { %v6041_v47 = vpop.eup %6040  ;;  %6066 = vtanh.f32 %v2041_v6  ;;  %5229 = vmatpush2.msk.msra.mxu1 %vm2260_vm6, %v2187_v55  ;;  %v2183_v58 = vmul.f32 1.7159, %v6039_v63  ;;  %v2031_v50 = vmul.f32 0.6666667, %v1967_v61  ;;  %v2030_v3 = vmul.f32 0.6666667, %v1966_v36 }
 0x28d   :  { %v6043_v13 = vpop.eup %6042  ;;  %6068 = vtanh.f32 %v2040_v21  ;;  %2301 = vmatprep.subr.mxu1 %v2186_v1  ;;  %v2182_v23 = vmul.f32 1.7159, %v6041_v47  ;;  %v2029_v0 = vmul.f32 0.6666667, %v1965_v16  ;;  %v9088_v61 = vmov 0.0   ;;  %v2429_v36 = vld [vmem:[%s9069_s4 + $0x68] sm:$0xff] }
 0x28e   :  { %v6045_v15 = vpop.eup %6044  ;;  %6070 = vtanh.f32 %v2039_v10  ;;  %2302 = vmatpush2.msra.mxu1 %v2185_v8  ;;  %v2181_v30 = vmul.f32 1.7159, %v6043_v13  ;;  %v2426_v16 = vld [vmem:[%s9069_s4 + $0x50] sm:$0xff] }
 0x28f   :  { %v6047_v41 = vpop.eup %6046  ;;  %6072 = vtanh.f32 %v2038_v54  ;;  %2303 = vmatprep.subr.mxu1 %v2184_v32  ;;  %v2180_v43 = vmul.f32 1.7159, %v6045_v15  ;;  %v2189_v32 = vld [vmem:[%s9068_s3] sm:$0xff]  ;;  %v2192_v15 = vld [vmem:[%s9068_s3 + $0x18] sm:$0xff] }
 0x290   :  { %v6049_v19 = vpop.eup %6048  ;;  %6074 = vtanh.f32 %v2037_v31  ;;  %2304 = vmatpush2.msra.mxu1 %v2183_v58  ;;  %v2179_v5 = vmul.f32 1.7159, %v6047_v41  ;;  %v2191_v58 = vld [vmem:[%s9068_s3 + $0x10] sm:$0xff]  ;;  %v2194_v41 = vld [vmem:[%s9068_s3 + $0x28] sm:$0xff] }
 0x291   :  { %v6051_v7 = vpop.eup %6050  ;;  %6076 = vtanh.f32 %v2036_v53  ;;  %2305 = vmatprep.subr.mxu1 %v2182_v23  ;;  %v2178_v2 = vmul.f32 1.7159, %v6049_v19  ;;  %v2193_v23 = vld [vmem:[%s9068_s3 + $0x20] sm:$0xff]  ;;  %v2196_v19 = vld [vmem:[%s9068_s3 + $0x38] sm:$0xff] }
 0x292   :  { %v6053_v34 = vpop.eup %6052  ;;  %6078 = vtanh.f32 %v2035_v37  ;;  %2306 = vmatpush2.msra.mxu1 %v2181_v30  ;;  %v2177_v27 = vmul.f32 1.7159, %v6051_v7  ;;  %v2430_v37 = vld [vmem:[%s9069_s4 + $0x70] sm:$0xff]  ;;  %v2198_v30 = vld [vmem:[%s9068_s3 + $0x48] sm:$0xff] }
 0x293   :  { %v6055_v42 = vpop.eup %6054  ;;  %6080 = vtanh.f32 %v2034_v62  ;;  %2307 = vmatprep.subr.mxu1 %v2180_v43  ;;  %v2176_v59 = vmul.f32 1.7159, %v6053_v34  ;;  %v2428_v62 = vld [vmem:[%s9069_s4 + $0x60] sm:$0xff]  ;;  %v2425_v7 = vld [vmem:[%s9069_s4 + $0x48] sm:$0xff]  ;;  %v2200_v34 = vld [vmem:[%s9068_s3 + $0x58] sm:$0xff] }
 0x294   :  { %v6057_v17 = vpop.eup %6056  ;;  %6082 = vtanh.f32 %v2033_v40  ;;  %2308 = vmatpush2.msra.mxu1 %v2179_v5  ;;  %v2175_v11 = vmul.f32 1.7159, %v6055_v42  ;;  %v2195_v40 = vld [vmem:[%s9068_s3 + $0x30] sm:$0xff]  ;;  %v2197_v43 = vld [vmem:[%s9068_s3 + $0x40] sm:$0xff] }
 0x295   :  { %v6059_v35 = vpop.eup %6058  ;;  %6084 = vtanh.f32 %v2032_v60  ;;  %2309 = vmatprep.subr.mxu1 %v2178_v2  ;;  %v2174_v51 = vmul.f32 1.7159, %v6057_v17  ;;  %v2424_v60 = vld [vmem:[%s9069_s4 + $0x40] sm:$0xff]  ;;  %v2422_v5 = vld [vmem:[%s9069_s4 + $0x30] sm:$0xff]  ;;  %v2421_v2 = vld [vmem:[%s9069_s4 + $0x28] sm:$0xff] }
 0x296   :  { %v6061_v26 = vpop.eup %6060  ;;  %6086 = vtanh.f32 %v2031_v50  ;;  %2310 = vmatpush2.msra.mxu1 %v2177_v27  ;;  %v2173_v4 = vmul.f32 1.7159, %v6059_v35  ;;  %v2423_v50 = vld [vmem:[%s9069_s4 + $0x38] sm:$0xff]  ;;  %v2199_v42 = vld [vmem:[%s9068_s3 + $0x50] sm:$0xff]  ;;  %v2420_v17 = vld [vmem:[%s9069_s4 + $0x20] sm:$0xff] }
 0x297   :  { %v6063_v24 = vpop.eup %6062  ;;  %6088 = vtanh.f32 %v2030_v3  ;;  %2311 = vmatprep.subr.mxu1 %v2176_v59  ;;  %v2172_v45 = vmul.f32 1.7159, %v6061_v26  ;;  %v2202_v3 = vld [vmem:[%s9068_s3 + $0x68] sm:$0xff]  ;;  %v2204_v27 = vld [vmem:[%s9068_s3 + $0x78] sm:$0xff]  ;;  %v2418_v59 = vld [vmem:[%s9069_s4 + $0x10] sm:$0xff] }
 0x298   :  { %v6065_v48 = vpop.eup %6064  ;;  %6090 = vtanh.f32 %v2029_v0  ;;  %2312 = vmatpush2.msra.mxu1 %v2175_v11  ;;  %v2171_v56 = vmul.f32 1.7159, %v6063_v24  ;;  %v2201_v0 = vld [vmem:[%s9068_s3 + $0x60] sm:$0xff]  ;;  %v2419_v35 = vld [vmem:[%s9069_s4 + $0x18] sm:$0xff]  ;;  %v2203_v26 = vld [vmem:[%s9068_s3 + $0x70] sm:$0xff] }
 0x299   :  { %v6067_v28 = vpop.eup %6066  ;;  %2313 = vmatprep.subr.mxu1 %v2174_v51  ;;  %v2170_v18 = vmul.f32 1.7159, %v6065_v48  ;;  %v2206_v11 = vld [vmem:[%s9068_s3 + $0x88] sm:$0xff]  ;;  %v2416_v51 = vld [vmem:[%s9069_s4] sm:$0xff] }
 0x29a   :  { %v6069_v44 = vpop.eup %6068  ;;  %2314 = vmatpush2.msra.mxu1 %v2173_v4  ;;  %v2169_v6 = vmul.f32 1.7159, %v6067_v28  ;;  %v2417_v24 = vld [vmem:[%s9069_s4 + $0x8] sm:$0xff]  ;;  %v2205_v48 = vld [vmem:[%s9068_s3 + $0x80] sm:$0xff]  ;;  %v2208_v4 = vld [vmem:[%s9068_s3 + $0x98] sm:$0xff] }
 0x29b   :  { %v6071_v22 = vpop.eup %6070  ;;  %2315 = vmatprep.subr.mxu1 %v2172_v45  ;;  %v2168_v38 = vmul.f32 1.7159, %v6069_v44  ;;  %v2436_v28 = vld [vmem:[%s9069_s4 + $0xa0] sm:$0xff]  ;;  %v2435_v45 = vld [vmem:[%s9069_s4 + $0x98] sm:$0xff]  ;;  %v2207_v44 = vld [vmem:[%s9068_s3 + $0x90] sm:$0xff] }
 0x29c   :  { %v6073_v14 = vpop.eup %6072  ;;  %2316 = vmatpush2.msra.mxu1 %v2171_v56  ;;  %v2167_v29 = vmul.f32 1.7159, %v6071_v22  ;;  %v2210_v56 = vld [vmem:[%s9068_s3 + $0xa8] sm:$0xff]  ;;  %v2434_v22 = vld [vmem:[%s9069_s4 + $0x90] sm:$0xff] }
 0x29d   :  { %v6075_v49 = vpop.eup %6074  ;;  %2317 = vmatprep.subr.mxu1 %v2170_v18  ;;  %v2166_v25 = vmul.f32 1.7159, %v6073_v14  ;;  %v2209_v18 = vld [vmem:[%s9068_s3 + $0xa0] sm:$0xff]  ;;  %v2212_v14 = vld [vmem:[%s9068_s3 + $0xb8] sm:$0xff] }
 0x29e   :  { %v6077_v21 = vpop.eup %6076  ;;  %2318 = vmatpush2.msra.mxu1 %v2169_v6  ;;  %v2165_v10 = vmul.f32 1.7159, %v6075_v49  ;;  %v2211_v6 = vld [vmem:[%s9068_s3 + $0xb0] sm:$0xff]  ;;  %v2214_v49 = vld [vmem:[%s9068_s3 + $0xc8] sm:$0xff] }
 0x29f   :  { %v6079_v52 = vpop.eup %6078  ;;  %2319 = vmatprep.subr.mxu1 %v2168_v38  ;;  %v2164_v63 = vmul.f32 1.7159, %v6077_v21  ;;  %v2213_v38 = vld [vmem:[%s9068_s3 + $0xc0] sm:$0xff]  ;;  %v2216_v21 = vld [vmem:[%s9068_s3 + $0xd8] sm:$0xff] }
 0x2a0   :  { %v6081_v33 = vpop.eup %6080  ;;  %2320 = vmatpush2.msra.mxu1 %v2167_v29  ;;  %v2163_v54 = vmul.f32 1.7159, %v6079_v52  ;;  %v2215_v29 = vld [vmem:[%s9068_s3 + $0xd0] sm:$0xff]  ;;  %v2433_v52 = vld [vmem:[%s9069_s4 + $0x88] sm:$0xff] }
 0x2a1   :  { %v6083_v55 = vpop.eup %6082  ;;  %2321 = vmatprep.subr.mxu1 %v2166_v25  ;;  %v2162_v47 = vmul.f32 1.7159, %v6081_v33  ;;  %v2432_v25 = vld [vmem:[%s9069_s4 + $0x80] sm:$0xff]  ;;  %v2661_v33 = vld [vmem:[%s9070_s5 + $0x50] sm:$0x33] }
 0x2a2   :  { %v6085_v12 = vpop.eup %6084  ;;  %2322 = vmatpush2.msra.mxu1 %v2165_v10  ;;  %v2161_v39 = vmul.f32 1.7159, %v6083_v55  ;;  %v5300_v10 = vcombine.high %v2661_v33, %v2661_v33  ;;  %v5299_v55 = vcombine.low %v2661_v33, %v2661_v33 }
 0x2a3   :  { %v6087_v1 = vpop.eup %6086  ;;  %2323 = vmatprep.subr.mxu1 %v2164_v63  ;;  %v2160_v8 = vmul.f32 1.7159, %v6085_v12  ;;  %v5884_v63 = vld [vmem:[%s9070_s5 + $0x44] ss:$8 sps:$4 sm:$0xff]  }
 0x2a4   :  { %v6089_v57 = vpop.eup %6088  ;;  %2324 = vmatpush2.msra.mxu1 %v2163_v54  ;;  %v2159_v13 = vmul.f32 1.7159, %v6087_v1  ;;  %5301 = vmatprep.subr.msk.bf16.mxu0 %vm2805_vm7, %v5300_v10  ;;  %v2985_v12 = vsel %vm2805_vm7, %v5299_v55, 0  ;;  %v5882_v54 = vld [vmem:[%s9070_s5 + $0x40] ss:$8 sps:$4 sm:$0xff]  }
 0x2a5   :  { %v6091_v31 = vpop.eup %6090  ;;  %2325 = vmatprep.subr.mxu1 %v2162_v47  ;;  %v2158_v9 = vmul.f32 1.7159, %v6089_v57  ;;  %2995 = vmatpush1.bf16.msra.mxu0 %v2985_v12  ;;  %v5887_v1 = vld [vmem:[%s9070_s5 + $0x34] ss:$8 sps:$4 sm:$0xff]   ;;  %v5885_v47 = vld [vmem:[%s9070_s5 + $0x30] ss:$8 sps:$4 sm:$0xff]  }
 0x2a6   :  { %2326 = vmatpush2.msra.mxu1 %v2161_v39  ;;  %v2157_v53 = vmul.f32 1.7159, %v6091_v31  ;;  %2996 = vmatprep.subr.bf16.mxu0 %v5884_v63 }
 0x2a7   :  { %2327 = vmatprep.subr.mxu1 %v2160_v8 }
 0x2a8   :  { %2328 = vmatpush2.msra.mxu1 %v2159_v13 }
 0x2a9   :  { %2329 = vmatprep.subr.mxu1 %v2158_v9  ;;  %2997 = vmatpush1.bf16.msra.mxu0 %v5882_v54 }
 0x2aa   :  { %2330 = vmatpush2.msra.mxu1 %v2157_v53  ;;  %2998 = vmatprep.subr.bf16.mxu0 %v5887_v1 }
 0x2ab   :  { %2332 = vmatmul.mubr.f32.vlgmr.msra.gmra.mxu1 %v2189_v32  ;;  %2480 = vmatprep.subr.mxu1 %v9088_v61 }
 0x2ac   :  { %5231 = vmatprep.mubr.msk.f32.mxu1 %vm2217_vm5, %v2192_v15  ;;  %2481 = vmatpush1.msra.mxu1 %v2431_v46 }
 0x2ad   :  { %2482 = vmatprep.subr.mxu1 %v9088_v61  ;;  %2999 = vmatpush1.bf16.msra.mxu0 %v5885_v47 }
 0x2ae   :  { %2483 = vmatpush1.msra.mxu1 %v2430_v37 }
 0x2af   :  { %2338 = vmatmul.mubr.f32.gmra.mxu1 %v2191_v58  ;;  %2484 = vmatprep.subr.mxu1 %v9088_v61 }
 0x2b0   :  { %5232 = vmatprep.mubr.msk.f32.mxu1 %vm2217_vm5, %v2194_v41  ;;  %2485 = vmatpush1.msra.mxu1 %v2429_v36 }
 0x2b1   :  { %2486 = vmatprep.subr.mxu1 %v9088_v61 }
 0x2b2   :  { %2487 = vmatpush1.msra.mxu1 %v2428_v62 }
 0x2b3   :  { %2344 = vmatmul.mubr.f32.gmra.mxu1 %v2193_v23  ;;  %2488 = vmatprep.subr.mxu1 %v9088_v61 }
 0x2b4   :  { %5233 = vmatprep.mubr.msk.f32.mxu1 %vm2217_vm5, %v2196_v19  ;;  %2489 = vmatpush1.msra.mxu1 %v2427_v20 }
 0x2b5   :  { %2490 = vmatprep.subr.mxu1 %v9088_v61 }
 0x2b6   :  { %2491 = vmatpush1.msra.mxu1 %v2426_v16 }
 0x2b7   :  { %2350 = vmatmul.mubr.f32.gmra.mxu1 %v2195_v40  ;;  %2492 = vmatprep.subr.mxu1 %v9088_v61 }
 0x2b8   :  { %5234 = vmatprep.mubr.msk.f32.mxu1 %vm2217_vm5, %v2198_v30  ;;  %2493 = vmatpush1.msra.mxu1 %v2425_v7 }
 0x2b9   :  { %2494 = vmatprep.subr.mxu1 %v9088_v61 }
 0x2ba   :  { %2495 = vmatpush1.msra.mxu1 %v2424_v60 }
 0x2bb   :  { %2356 = vmatmul.mubr.f32.gmra.mxu1 %v2197_v43  ;;  %2496 = vmatprep.subr.mxu1 %v9088_v61 }
 0x2bc   :  { %5235 = vmatprep.mubr.msk.f32.mxu1 %vm2217_vm5, %v2200_v34  ;;  %2497 = vmatpush1.msra.mxu1 %v2423_v50 }
 0x2bd   :  { %2498 = vmatprep.subr.mxu1 %v9088_v61 }
 0x2be   :  { %2499 = vmatpush1.msra.mxu1 %v2422_v5 }
 0x2bf   :  { %2362 = vmatmul.mubr.f32.gmra.mxu1 %v2199_v42  ;;  %2500 = vmatprep.subr.mxu1 %v9088_v61 }
 0x2c0   :  { %5236 = vmatprep.mubr.msk.f32.mxu1 %vm2217_vm5, %v2202_v3  ;;  %2501 = vmatpush1.msra.mxu1 %v2421_v2  ;;  %v9346_v3 = vmov 0   ;;  %v5888_v2 = vld [vmem:[%s9070_s5 + $0x20] ss:$8 sps:$4 sm:$0xff]  }
 0x2c1   :  { %2502 = vmatprep.subr.mxu1 %v9088_v61 }
 0x2c2   :  { %2503 = vmatpush1.msra.mxu1 %v2420_v17  ;;  %v5890_v17 = vld [vmem:[%s9070_s5 + $0x24] ss:$8 sps:$4 sm:$0xff]  }
 0x2c3   :  { %2368 = vmatmul.mubr.f32.gmra.mxu1 %v2201_v0  ;;  %2504 = vmatprep.subr.mxu1 %v9088_v61  ;;  %v5268_v0 = vld [vmem:[%s9070_s5 + $0xa8] sm:$0x33] }
 0x2c4   :  { %5237 = vmatprep.mubr.msk.f32.mxu1 %vm2217_vm5, %v2204_v27  ;;  %2505 = vmatpush1.msra.mxu1 %v2419_v35  ;;  %v5280_v27 = vcombine.high %v5268_v0, %v5268_v0  ;;  %v5279_v35 = vcombine.low %v5268_v0, %v5268_v0 }
 0x2c5   :  { %2506 = vmatprep.subr.mxu1 %v9088_v61  ;;  %3000 = vmatprep.subr.bf16.mxu0 %v5890_v17  ;;  %v5931_v17 = vld [vmem:[%s9070_s5 + $0xf4] ss:$8 sps:$4 sm:$0xff]  }
 0x2c6   :  { %2507 = vmatpush1.msra.mxu1 %v2418_v59  ;;  %3001 = vmatpush1.bf16.msra.mxu0 %v5888_v2  ;;  %v2807_v59 = vsel %vm2805_vm7, %v5279_v35, 0  ;;  %v5928_v2 = vld [vmem:[%s9070_s5 + $0x11c] ss:$8 sps:$4 sm:$0xff]  }
 0x2c7   :  { %2374 = vmatmul.mubr.f32.gmra.mxu1 %v2203_v26  ;;  %2508 = vmatprep.subr.mxu1 %v9088_v61  ;;  %v5893_v26 = vld [vmem:[%s9070_s5 + $0x10] ss:$8 sps:$4 sm:$0xff]  }
 0x2c8   :  { %5238 = vmatprep.mubr.msk.f32.mxu1 %vm2217_vm5, %v2206_v11  ;;  %2509 = vmatpush1.msra.mxu1 %v2417_v24  ;;  %v5895_v11 = vld [vmem:[%s9070_s5 + $0x14] ss:$8 sps:$4 sm:$0xff]  }
 0x2c9   :  { %2510 = vmatprep.subr.mxu1 %v9088_v61  ;;  %v5898_v24 = vld [vmem:[%s9070_s5 + $0x9c] ss:$8 sps:$4 sm:$0xff]   ;;  %3002 = vmatprep.subr.bf16.mxu0 %v5895_v11  ;;  %v5926_v11 = vld [vmem:[%s9070_s5 + $0x118] ss:$8 sps:$4 sm:$0xff]  }
 0x2ca   :  { %2511 = vmatpush1.msra.mxu1 %v2416_v51  ;;  %v5896_v51 = vld [vmem:[%s9070_s5 + $0x98] ss:$8 sps:$4 sm:$0xff]   ;;  %3003 = vmatpush1.bf16.msra.mxu0 %v5893_v26 }
 0x2cb   :  { %2380 = vmatmul.mubr.f32.gmra.mxu1 %v2205_v48  ;;  %2534 = vmatprep.subr.mxu1 %v9088_v61  ;;  %v5899_v48 = vld [vmem:[%s9070_s5] ss:$8 sps:$4 sm:$0xff]  }
 0x2cc   :  { %5239 = vmatprep.mubr.msk.f32.mxu1 %vm2217_vm5, %v2208_v4  ;;  %2535 = vmatpush2.msra.mxu1 %v2436_v28  ;;  %v5901_v4 = vld [vmem:[%s9070_s5 + $0x4] ss:$8 sps:$4 sm:$0xff]  }
 0x2cd   :  { %2536 = vmatprep.subr.mxu1 %v9088_v61  ;;  %v5904_v28 = vld [vmem:[%s9070_s5 + $0x8c] ss:$8 sps:$4 sm:$0xff]   ;;  %3004 = vmatprep.subr.bf16.mxu0 %v5901_v4 }
 0x2ce   :  { %2537 = vmatpush2.msra.mxu1 %v2435_v45  ;;  %v5902_v45 = vld [vmem:[%s9070_s5 + $0x88] ss:$8 sps:$4 sm:$0xff]   ;;  %3005 = vmatpush1.bf16.msra.mxu0 %v5899_v48  ;;  %v5934_v48 = vld [vmem:[%s9070_s5 + $0x10c] ss:$8 sps:$4 sm:$0xff]  }
 0x2cf   :  { %2386 = vmatmul.mubr.f32.gmra.mxu1 %v2207_v44  ;;  %2538 = vmatprep.subr.mxu1 %v9088_v61  ;;  %v5907_v44 = vld [vmem:[%s9070_s5 + $0x7c] ss:$8 sps:$4 sm:$0xff]  }
 0x2d0   :  { %5240 = vmatprep.mubr.msk.f32.mxu1 %vm2217_vm5, %v2210_v56  ;;  %2539 = vmatpush2.msra.mxu1 %v2434_v22  ;;  %v5905_v56 = vld [vmem:[%s9070_s5 + $0x78] ss:$8 sps:$4 sm:$0xff]   ;;  %v5910_v22 = vld [vmem:[%s9070_s5 + $0x6c] ss:$8 sps:$4 sm:$0xff]  }
 0x2d1   :  { %2540 = vmatprep.subr.mxu1 %v9088_v61 }
 0x2d2   :  { %2541 = vmatpush2.msra.mxu1 %v2433_v52 }
 0x2d3   :  { %2392 = vmatmul.mubr.f32.gmra.mxu1 %v2209_v18  ;;  %2542 = vmatprep.subr.mxu1 %v9088_v61  ;;  %v5908_v18 = vld [vmem:[%s9070_s5 + $0x68] ss:$8 sps:$4 sm:$0xff]  }
 0x2d4   :  { %5241 = vmatprep.mubr.msk.f32.mxu1 %vm2217_vm5, %v2212_v14  ;;  %2543 = vmatpush2.msra.mxu1 %v2432_v25  ;;  %v5913_v14 = vld [vmem:[%s9070_s5 + $0x5c] ss:$8 sps:$4 sm:$0xff]  }
 0x2d5   :  { %5281 = vmatprep.subr.msk.bf16.mxu1 %vm2805_vm7, %v5280_v27 }
 0x2d7   :  { %2398 = vmatmul.mubr.f32.gmra.mxu1 %v2211_v6  ;;  %v5911_v6 = vld [vmem:[%s9070_s5 + $0x58] ss:$8 sps:$4 sm:$0xff]  }
 0x2d8   :  { %5242 = vmatprep.mubr.msk.f32.mxu1 %vm2217_vm5, %v2214_v49  ;;  %v5350_v49 = vld [vmem:[%s9070_s5 + $0x158] sm:$0x33] }
 0x2d9   :  { %v5361_v63 = vcombine.low %v5350_v49, %v5350_v49 }
 0x2db   :  { %2404 = vmatmul.mubr.f32.gmra.mxu1 %v2213_v38  ;;  %v5362_v38 = vcombine.high %v5350_v49, %v5350_v49  ;;  %v5935_v49 = vld [vmem:[%s9070_s5 + $0xe0] ss:$8 sps:$4 sm:$0xff]  }
 0x2dc   :  { %5243 = vmatprep.mubr.msk.f32.mxu1 %vm2217_vm5, %v2216_v21  ;;  %v5319_v21 = vld [vmem:[%s9070_s5 + $0x100] sm:$0x33] }
 0x2dd   :  { %5363 = vmatprep.subr.msk.bf16.mxu0 %vm2805_vm7, %v5362_v38 }
 0x2df   :  { %2410 = vmatmul.mubr.f32.gmra.mxu1 %v2215_v29  ;;  %v5331_v29 = vcombine.high %v5319_v21, %v5319_v21 }
 0x36b   :  { %v2333_v57 = vpop.f32.mrf.mxu1 }
 0x36d   :  { %v2335_v39 = vpop.f32.mrf.mxu1 }
 0x36e   :  { %5244 = vmatprep.mubr.msk.f32.mxu1 %vm2437_vm8, %v2335_v39  ;;  %v3454_v39 = vsel %vm2805_vm7, %v5361_v63, 0  ;;  %v5938_v63 = vld [vmem:[%s9070_s5 + $0xd0] ss:$8 sps:$4 sm:$0xff]  }
 0x36f   :  { %v2339_v31 = vpop.f32.mrf.mxu1  ;;  %2545 = vmatmul.mubr.f32.vlgmr.msra.gmra.mxu1 %v2333_v57 }
 0x370   :  { %2817 = vmatpush1.bf16.msra.mxu1 %v2807_v59 }
 0x371   :  { %v2341_v8 = vpop.f32.mrf.mxu1  ;;  %2818 = vmatprep.subr.bf16.mxu1 %v5898_v24 }
 0x372   :  { %5245 = vmatprep.mubr.msk.f32.mxu1 %vm2437_vm8, %v2341_v8 }
 0x373   :  { %v2345_v13 = vpop.f32.mrf.mxu1  ;;  %2550 = vmatmul.mubr.f32.gmra.mxu1 %v2339_v31  ;;  %v5917_v31 = vld [vmem:[%s9070_s5 + $0x14c] ss:$8 sps:$4 sm:$0xff]  }
 0x374   :  { %2819 = vmatpush1.bf16.msra.mxu1 %v5896_v51  ;;  %v5929_v51 = vld [vmem:[%s9070_s5 + $0xf0] ss:$8 sps:$4 sm:$0xff]  }
 0x375   :  { %v2347_v9 = vpop.f32.mrf.mxu1  ;;  %2820 = vmatprep.subr.bf16.mxu1 %v5904_v28  ;;  %v5937_v28 = vld [vmem:[%s9070_s5 + $0xe4] ss:$8 sps:$4 sm:$0xff]  }
 0x376   :  { %5246 = vmatprep.mubr.msk.f32.mxu1 %vm2437_vm8, %v2347_v9  ;;  %v5915_v9 = vld [vmem:[%s9070_s5 + $0x148] ss:$8 sps:$4 sm:$0xff]  }
 0x377   :  { %v2351_v53 = vpop.f32.mrf.mxu1  ;;  %2555 = vmatmul.mubr.f32.gmra.mxu1 %v2345_v13 }
 0x378   :  { %2821 = vmatpush1.bf16.msra.mxu1 %v5902_v45 }
 0x379   :  { %v2353_v32 = vpop.f32.mrf.mxu1  ;;  %2822 = vmatprep.subr.bf16.mxu1 %v5907_v44 }
 0x37a   :  { %5247 = vmatprep.mubr.msk.f32.mxu1 %vm2437_vm8, %v2353_v32  ;;  %v5920_v32 = vld [vmem:[%s9070_s5 + $0x13c] ss:$8 sps:$4 sm:$0xff]  }
 0x37b   :  { %v2357_v15 = vpop.f32.mrf.mxu1  ;;  %2560 = vmatmul.mubr.f32.gmra.mxu1 %v2351_v53 }
 0x37c   :  { %2823 = vmatpush1.bf16.msra.mxu1 %v5905_v56 }
 0x37d   :  { %v2359_v46 = vpop.f32.mrf.mxu1  ;;  %2824 = vmatprep.subr.bf16.mxu1 %v5910_v22 }
 0x37e   :  { %5248 = vmatprep.mubr.msk.f32.mxu1 %vm2437_vm8, %v2359_v46 }
 0x37f   :  { %v2363_v37 = vpop.f32.mrf.mxu1  ;;  %2565 = vmatmul.mubr.f32.gmra.mxu1 %v2357_v15 }
 0x380   :  { %2825 = vmatpush1.bf16.msra.mxu1 %v5908_v18  ;;  %v5932_v18 = vld [vmem:[%s9070_s5 + $0x108] ss:$8 sps:$4 sm:$0xff]  }
 0x381   :  { %v2365_v58 = vpop.f32.mrf.mxu1  ;;  %2826 = vmatprep.subr.bf16.mxu1 %v5913_v14 }
 0x382   :  { %5249 = vmatprep.mubr.msk.f32.mxu1 %vm2437_vm8, %v2365_v58 }
 0x383   :  { %v2369_v41 = vpop.f32.mrf.mxu1  ;;  %2570 = vmatmul.mubr.f32.gmra.mxu1 %v2363_v37 }
 0x384   :  { %2827 = vmatpush1.bf16.msra.mxu1 %v5911_v6 }
 0x385   :  { %v2371_v36 = vpop.f32.mrf.mxu1  ;;  %5332 = vmatprep.subr.msk.bf16.mxu1 %vm2805_vm7, %v5331_v29 }
 0x386   :  { %5250 = vmatprep.mubr.msk.f32.mxu1 %vm2437_vm8, %v2371_v36 }
 0x387   :  { %v2375_v62 = vpop.f32.mrf.mxu1  ;;  %2575 = vmatmul.mubr.f32.gmra.mxu1 %v2369_v41  ;;  %v5918_v41 = vld [vmem:[%s9070_s5 + $0x138] ss:$8 sps:$4 sm:$0xff]  }
 0x389   :  { %v2377_v23 = vpop.f32.mrf.mxu1 }
 0x38a   :  { %5251 = vmatprep.mubr.msk.f32.mxu1 %vm2437_vm8, %v2377_v23  ;;  %v5923_v23 = vld [vmem:[%s9070_s5 + $0x12c] ss:$8 sps:$4 sm:$0xff]  }
 0x38b   :  { %v2381_v19 = vpop.f32.mrf.mxu1  ;;  %2580 = vmatmul.mubr.f32.gmra.mxu1 %v2375_v62 }
 0x38d   :  { %v2383_v20 = vpop.f32.mrf.mxu1 }
 0x38e   :  { %5252 = vmatprep.mubr.msk.f32.mxu1 %vm2437_vm8, %v2383_v20  ;;  %v5330_v20 = vcombine.low %v5319_v21, %v5319_v21  ;;  %v5940_v21 = vld [vmem:[%s9070_s5 + $0xd4] ss:$8 sps:$4 sm:$0xff]  }
 0x38f   :  { %v2387_v16 = vpop.f32.mrf.mxu1  ;;  %2585 = vmatmul.mubr.f32.gmra.mxu1 %v2381_v19 }
 0x391   :  { %v2389_v40 = vpop.f32.mrf.mxu1 }
 0x392   :  { %5253 = vmatprep.mubr.msk.f32.mxu1 %vm2437_vm8, %v2389_v40 }
 0x393   :  { %v2393_v30 = vpop.f32.mrf.mxu1  ;;  %2590 = vmatmul.mubr.f32.gmra.mxu1 %v2387_v16 }
 0x395   :  { %v2395_v7 = vpop.f32.mrf.mxu1 }
 0x396   :  { %5254 = vmatprep.mubr.msk.f32.mxu1 %vm2437_vm8, %v2395_v7 }
 0x397   :  { %v2399_v60 = vpop.f32.mrf.mxu1  ;;  %2595 = vmatmul.mubr.f32.gmra.mxu1 %v2393_v30 }
 0x399   :  { %v2401_v43 = vpop.f32.mrf.mxu1 }
 0x39a   :  { %5255 = vmatprep.mubr.msk.f32.mxu1 %vm2437_vm8, %v2401_v43 }
 0x39b   :  { %v2405_v34 = vpop.f32.mrf.mxu1  ;;  %2600 = vmatmul.mubr.f32.gmra.mxu1 %v2399_v60  ;;  %v5921_v60 = vld [vmem:[%s9070_s5 + $0x128] ss:$8 sps:$4 sm:$0xff]  }
 0x39d   :  { %v2407_v50 = vpop.f32.mrf.mxu1 }
 0x39e   :  { %5256 = vmatprep.mubr.msk.f32.mxu1 %vm2437_vm8, %v2407_v50 }
 0x39f   :  { %v2411_v5 = vpop.f32.mrf.mxu1  ;;  %2605 = vmatmul.mubr.f32.gmra.mxu1 %v2405_v34 }
 0x3a1   :  { %v2413_v42 = vpop.f32.mrf.mxu1 }
 0x3a2   :  { %5257 = vmatprep.mubr.msk.f32.mxu1 %vm2437_vm8, %v2413_v42  ;;  %v3202_v42 = vsel %vm2805_vm7, %v5330_v20, 0  ;;  %v5944_v20 = vld [vmem:[%s9070_s5 + $0xb0] ss:$8 sps:$4 sm:$0xff]  }
 0x3a3   :  { %2610 = vmatmul.mubr.f32.gmra.mxu1 %v2411_v5 }
 0x3a4   :  { %2844 = vmatprep.mubr.bf16.mxu1 %v9346_v3 }
 0x42f   :  { %v2546_v52 = vpop.f32.mrf.mxu1 }
 0x430   :  { %2616 = vst.msk [vmem:[#allocation2] sm:$0xff] %vm2615_vm9, %v2546_v52 }
 0x431   :  { %v2548_v25 = vpop.f32.mrf.mxu1 }
 0x433   :  { %v2551_v33 = vpop.f32.mrf.mxu1 }
 0x434   :  { %2617 = vst.msk [vmem:[#allocation2 + $0x8] sm:$0xff] %vm2615_vm9, %v2551_v33 }
 0x435   :  { %v2553_v10 = vpop.f32.mrf.mxu1 }
 0x437   :  { %v2556_v55 = vpop.f32.mrf.mxu1  ;;  %v2630_v1 = vld [vmem:[#allocation2] sm:$0xff] }
 0x438   :  { %2618 = vst.msk [vmem:[#allocation2 + $0x10] sm:$0xff] %vm2615_vm9, %v2556_v55 }
 0x439   :  { %v2558_v12 = vpop.f32.mrf.mxu1 }
 0x43b   :  { %v2561_v54 = vpop.f32.mrf.mxu1  ;;  %v2631_v47 = vld [vmem:[#allocation2 + $0x8] sm:$0xff] }
 0x43c   :  { %2619 = vst.msk [vmem:[#allocation2 + $0x18] sm:$0xff] %vm2615_vm9, %v2561_v54  ;;  %v8010_v57 = vpack.c.bf16 %v2631_v47, %v2630_v1  ;;  %v5943_v54 = vld [vmem:[%s9070_s5 + $0xc4] ss:$8 sps:$4 sm:$0xff]  }
 0x43d   :  { %v2563_v8 = vpop.f32.mrf.mxu1 }
 0x43e   :  { %5302 = vmatmul.mubr.msk.bf16.vlgmr.msra.gmra.mxu0 %vm2615_vm9, %v8010_v57  ;;  %v2677_v53 = vshll.u32 %v8010_v57, 16  ;;  %v2675_v16 = vshrl.u32 %v8010_v57, 16  ;;  %v3602_v43 = vrot.slane %v8010_v57, 2 }
 0x43f   :  { %v2566_v13 = vpop.f32.mrf.mxu1  ;;  %3032 = vmatprep.mubr.bf16.mxu0 %v9346_v3  ;;  %3464 = vmatpush1.bf16.msra.mxu0 %v3454_v39  ;;  %v2632_v37 = vld [vmem:[#allocation2 + $0x10] sm:$0xff] }
 0x440   :  { %2620 = vst.msk [vmem:[#allocation2 + $0x20] sm:$0xff] %vm2615_vm9, %v2566_v13  ;;  %3465 = vmatprep.subr.bf16.mxu0 %v5917_v31  ;;  %v2679_v62 = vrot.slane %v2677_v53, 1 }
 0x441   :  { %v2568_v15 = vpop.f32.mrf.mxu1 }
 0x442   :  { %v2680_v34 = vor.u32 %v2679_v62, %v2675_v16  ;;  %v5946_v15 = vld [vmem:[%s9070_s5 + $0xb4] ss:$8 sps:$4 sm:$0xff]  }
 0x443   :  { %v2571_v46 = vpop.f32.mrf.mxu1  ;;  %v2633_v58 = vld [vmem:[#allocation2 + $0x18] sm:$0xff]  ;;  %3466 = vmatpush1.bf16.msra.mxu0 %v5915_v9  ;;  %v5941_v9 = vld [vmem:[%s9070_s5 + $0xc0] ss:$8 sps:$4 sm:$0xff]  }
 0x444   :  { %2621 = vst.msk [vmem:[#allocation2 + $0x28] sm:$0xff] %vm2615_vm9, %v2571_v46  ;;  %v8031_v36 = vpack.c.bf16 %v2633_v58, %v2632_v37  ;;  %3467 = vmatprep.subr.bf16.mxu0 %v5920_v32  ;;  %v8140_v58 = vld [vmem:[%s9070_s5 + $0x1b0] sm:$0x33] }
 0x445   :  { %v2573_v19 = vpop.f32.mrf.mxu1 }
 0x446   :  { %5303 = vmatmul.mubr.msk.bf16.gmra.mxu0 %vm2615_vm9, %v8031_v36  ;;  %v2682_v40 = vshll.u32 %v8031_v36, 16  ;;  %v3603_v30 = vrot.slane %v8031_v36, 2  ;;  %v2686_v45 = vshrl.u32 %v8031_v36, 16 }
 0x447   :  { %v2576_v7 = vpop.f32.mrf.mxu1  ;;  %3042 = vmatprep.mubr.bf16.mxu0 %v9346_v3  ;;  %3468 = vmatpush1.bf16.msra.mxu0 %v5918_v41  ;;  %v2634_v59 = vld [vmem:[#allocation2 + $0x20] sm:$0xff] }
 0x448   :  { %2622 = vst.msk [vmem:[#allocation2 + $0x30] sm:$0xff] %vm2615_vm9, %v2576_v7  ;;  %v2684_v50 = vrot.slane %v2682_v40, 1  ;;  %3469 = vmatprep.subr.bf16.mxu0 %v5923_v23  ;;  %v8061_v0 = vsel %vm1564_vm4, %v3602_v43, %v3603_v30  ;;  %v5393_v7 = vcombine.high %v8140_v58, %v8140_v58 }
 0x449   :  { %v2578_v5 = vpop.f32.mrf.mxu1 }
 0x44a   :  { %v2685_v27 = vsel %vm152_vm1, %v2680_v34, %v2684_v50  ;;  %v2688_v14 = vor.u32 %v2686_v45, %v2684_v50 }
 0x44b   :  { %v2581_v35 = vpop.f32.mrf.mxu1  ;;  %5282 = vmatmul.mubr.msk.bf16.vlgmr.msra.gmra.mxu1 %vm2615_vm9, %v2685_v27  ;;  %v2635_v26 = vld [vmem:[#allocation2 + $0x28] sm:$0xff]  ;;  %3470 = vmatpush1.bf16.msra.mxu0 %v5921_v60 }
 0x44c   :  { %2623 = vst.msk [vmem:[#allocation2 + $0x38] sm:$0xff] %vm2615_vm9, %v2581_v35  ;;  %v8069_v24 = vpack.c.bf16 %v2635_v26, %v2634_v59  ;;  %2854 = vmatprep.mubr.bf16.mxu1 %v9346_v3  ;;  %3212 = vmatpush1.bf16.msra.mxu1 %v3202_v42 }
 0x44d   :  { %v2583_v4 = vpop.f32.mrf.mxu1  ;;  %3471 = vmatprep.subr.bf16.mxu0 %v5928_v2  ;;  %3213 = vmatprep.subr.bf16.mxu1 %v5931_v17 }
 0x44e   :  { %5304 = vmatmul.mubr.msk.bf16.gmra.mxu0 %vm2615_vm9, %v8069_v24  ;;  %v2690_v44 = vshll.u32 %v8069_v24, 16  ;;  %v3605_v56 = vrot.slane %v8069_v24, 2  ;;  %v2694_v1 = vshrl.u32 %v8069_v24, 16 }
 0x44f   :  { %v2586_v22 = vpop.f32.mrf.mxu1  ;;  %3052 = vmatprep.mubr.bf16.mxu0 %v9346_v3  ;;  %3472 = vmatpush1.bf16.msra.mxu0 %v5926_v11  ;;  %v2636_v33 = vld [vmem:[#allocation2 + $0x30] sm:$0xff] }
 0x450   :  { %2624 = vst.msk [vmem:[#allocation2 + $0x40] sm:$0xff] %vm2615_vm9, %v2586_v22  ;;  %v2692_v6 = vrot.slane %v2690_v44, 1  ;;  %3214 = vmatpush1.bf16.msra.mxu1 %v5929_v51  ;;  %3473 = vmatprep.subr.bf16.mxu0 %v5934_v48  ;;  %v8102_v29 = vsel %vm1564_vm4, %v3603_v30, %v3605_v56 }
 0x451   :  { %v2588_v38 = vpop.f32.mrf.mxu1  ;;  %3215 = vmatprep.subr.bf16.mxu1 %v5937_v28 }
 0x452   :  { %v2693_v52 = vsel %vm152_vm1, %v2688_v14, %v2692_v6  ;;  %v2696_v8 = vor.u32 %v2694_v1, %v2692_v6 }
 0x453   :  { %v2591_v25 = vpop.f32.mrf.mxu1  ;;  %5283 = vmatmul.mubr.msk.bf16.gmra.mxu1 %vm2615_vm9, %v2693_v52  ;;  %v2637_v10 = vld [vmem:[#allocation2 + $0x38] sm:$0xff]  ;;  %3474 = vmatpush1.bf16.msra.mxu0 %v5932_v18  ;;  %v3354_v52 = vrot.slane %v2682_v40, 2 }
 0x454   :  { %2625 = vst.msk [vmem:[#allocation2 + $0x48] sm:$0xff] %vm2615_vm9, %v2591_v25  ;;  %v8107_v55 = vpack.c.bf16 %v2637_v10, %v2636_v33  ;;  %2864 = vmatprep.mubr.bf16.mxu1 %v9346_v3  ;;  %3216 = vmatpush1.bf16.msra.mxu1 %v5935_v49 }
 0x455   :  { %v2593_v12 = vpop.f32.mrf.mxu1  ;;  %3217 = vmatprep.subr.bf16.mxu1 %v5940_v21  ;;  %v3353_v21 = vrot.slane %v2686_v45, 1  ;;  %v3351_v45 = vrot.slane %v2677_v53, 2  ;;  %v3357_v53 = vrot.slane %v2694_v1, 1 }
 0x456   :  { %5305 = vmatmul.mubr.msk.bf16.gmra.mxu0 %vm2615_vm9, %v8107_v55  ;;  %v2698_v47 = vshll.u32 %v8107_v55, 16  ;;  %v3607_v39 = vrot.slane %v8107_v55, 2  ;;  %v2702_v60 = vshrl.u32 %v8107_v55, 16 }
 0x457   :  { %v2596_v31 = vpop.f32.mrf.mxu1  ;;  %3062 = vmatprep.mubr.bf16.mxu0 %v9346_v3  ;;  %v2638_v62 = vld [vmem:[#allocation2 + $0x40] sm:$0xff] }
 0x458   :  { %2626 = vst.msk [vmem:[#allocation2 + $0x50] sm:$0xff] %vm2615_vm9, %v2596_v31  ;;  %v2700_v13 = vrot.slane %v2698_v47, 1  ;;  %3218 = vmatpush1.bf16.msra.mxu1 %v5938_v63  ;;  %v8134_v46 = vsel %vm1564_vm4, %v3605_v56, %v3607_v39  ;;  %v3350_v63 = vrot.slane %v2675_v16, 1  ;;  %v3361_v1 = vrot.slane %v2702_v60, 1 }
 0x459   :  { %v2598_v32 = vpop.f32.mrf.mxu1  ;;  %3219 = vmatprep.subr.bf16.mxu1 %v5943_v54  ;;  %v3355_v54 = vor.u32 %v3354_v52, %v3353_v21 }
 0x45a   :  { %v2701_v37 = vsel %vm152_vm1, %v2696_v8, %v2700_v13  ;;  %v2704_v5 = vor.u32 %v2702_v60, %v2700_v13  ;;  %v3352_v8 = vor.u32 %v3351_v45, %v3350_v63  ;;  %v3358_v13 = vrot.slane %v2690_v44, 2 }
 0x45b   :  { %v2601_v41 = vpop.f32.mrf.mxu1  ;;  %5284 = vmatmul.mubr.msk.bf16.gmra.mxu1 %vm2615_vm9, %v2701_v37  ;;  %v2639_v23 = vld [vmem:[#allocation2 + $0x48] sm:$0xff]  ;;  %v3362_v44 = vrot.slane %v2698_v47, 2 }
 0x45c   :  { %2627 = vst.msk [vmem:[#allocation2 + $0x58] sm:$0xff] %vm2615_vm9, %v2601_v41  ;;  %v8144_v19 = vpack.c.bf16 %v2639_v23, %v2638_v62  ;;  %2874 = vmatprep.mubr.bf16.mxu1 %v9346_v3  ;;  %3220 = vmatpush1.bf16.msra.mxu1 %v5941_v9  ;;  %v3356_v16 = vsel %vm1170_vm2, %v3352_v8, %v3355_v54  ;;  %v3113_v62 = vrot.slane %v8031_v36, 1  ;;  %v3112_v23 = vrot.slane %v8010_v57, 1  ;;  %v5949_v36 = vld [vmem:[%s9070_s5 + $0x1a0] ss:$8 sps:$4 sm:$0xff]  }
 0x45d   :  { %v2603_v30 = vpop.f32.mrf.mxu1  ;;  %3221 = vmatprep.subr.bf16.mxu1 %v5946_v15  ;;  %v3359_v15 = vor.u32 %v3358_v13, %v3357_v53  ;;  %v5392_v41 = vcombine.low %v8140_v58, %v8140_v58 }
 0x45e   :  { %5306 = vmatmul.mubr.msk.bf16.gmra.mxu0 %vm2615_vm9, %v8144_v19  ;;  %v2706_v43 = vshll.u32 %v8144_v19, 16  ;;  %v3609_v34 = vrot.slane %v8144_v19, 2  ;;  %v2710_v48 = vshrl.u32 %v8144_v19, 16  ;;  %v3114_v47 = vsel %vm808_vm3, %v3112_v23, %v3113_v62 }
 0x45f   :  { %v2606_v50 = vpop.f32.mrf.mxu1  ;;  %3072 = vmatprep.mubr.bf16.mxu0 %v9346_v3  ;;  %v2640_v59 = vld [vmem:[#allocation2 + $0x50] sm:$0xff]  ;;  %v3360_v37 = vsel %vm1170_vm2, %v3355_v54, %v3359_v15  ;;  %v3692_v30 = vsel %vm2805_vm7, %v5392_v41, 0 }
 0x460   :  { %2628 = vst.msk [vmem:[#allocation2 + $0x60] sm:$0xff] %vm2615_vm9, %v2606_v50  ;;  %v2708_v42 = vrot.slane %v2706_v43, 1  ;;  %3222 = vmatpush1.bf16.msra.mxu1 %v5944_v20  ;;  %v8165_v17 = vsel %vm1564_vm4, %v3607_v39, %v3609_v34  ;;  %v3363_v20 = vor.u32 %v3362_v44, %v3361_v1  ;;  %v3365_v58 = vrot.slane %v2710_v48, 1 }
 0x461   :  { %v2608_v2 = vpop.f32.mrf.mxu1  ;;  %5394 = vmatprep.subr.msk.bf16.mxu1 %vm2805_vm7, %v5393_v7  ;;  %v5951_v7 = vld [vmem:[%s9070_s5 + $0x1a4] ss:$8 sps:$4 sm:$0xff]   ;;  %v3366_v60 = vrot.slane %v2706_v43, 2  ;;  %v3115_v50 = vrot.slane %v8069_v24, 1  ;;  %v5955_v24 = vld [vmem:[%s9070_s5 + $0x180] ss:$8 sps:$4 sm:$0xff]  }
 0x462   :  { %v2709_v27 = vsel %vm152_vm1, %v2704_v5, %v2708_v42  ;;  %v2712_v56 = vor.u32 %v2710_v48, %v2708_v42  ;;  %v3364_v57 = vsel %vm1170_vm2, %v3359_v15, %v3363_v20  ;;  %v5952_v5 = vld [vmem:[%s9070_s5 + $0x190] ss:$8 sps:$4 sm:$0xff]   ;;  %v5957_v43 = vld [vmem:[%s9070_s5 + $0x184] ss:$8 sps:$4 sm:$0xff]  }
 0x463   :  { %v2611_v35 = vpop.f32.mrf.mxu1  ;;  %5285 = vmatmul.mubr.msk.bf16.gmra.mxu1 %vm2615_vm9, %v2709_v27  ;;  %v2641_v26 = vld [vmem:[#allocation2 + $0x58] sm:$0xff]  ;;  %v3367_v42 = vor.u32 %v3366_v60, %v3365_v58  ;;  %v3116_v2 = vsel %vm808_vm3, %v3113_v62, %v3115_v50 }
 0x464   :  { %2629 = vst.msk [vmem:[#allocation2 + $0x68] sm:$0xff] %vm2615_vm9, %v2611_v35  ;;  %v8170_v11 = vpack.c.bf16 %v2641_v26, %v2640_v59  ;;  %2884 = vmatprep.mubr.bf16.mxu1 %v9346_v3  ;;  %v5960_v26 = vld [vmem:[%s9070_s5 + $0x174] ss:$8 sps:$4 sm:$0xff]   ;;  %v5958_v48 = vld [vmem:[%s9070_s5 + $0x170] ss:$8 sps:$4 sm:$0xff]  }
 0x465   :  { %v2613_v51 = vpop.f32.mrf.mxu1  ;;  %v3368_v27 = vsel %vm1170_vm2, %v3363_v20, %v3367_v42 }
 0x466   :  { %5307 = vmatmul.mubr.msk.bf16.gmra.mxu0 %vm2615_vm9, %v8170_v11  ;;  %v2714_v4 = vshll.u32 %v8170_v11, 16  ;;  %v3611_v28 = vrot.slane %v8170_v11, 2  ;;  %v2718_v25 = vshrl.u32 %v8170_v11, 16  ;;  %v3117_v51 = vrot.slane %v8107_v55, 1  ;;  %v5961_v55 = vld [vmem:[%s9070_s5 + $0x160] ss:$8 sps:$4 sm:$0xff]  }
 0x467   :  { %3082 = vmatprep.mubr.bf16.mxu0 %v9346_v3  ;;  %v2642_v6 = vld [vmem:[#allocation2 + $0x60] sm:$0xff] }
 0x468   :  { %v2716_v22 = vrot.slane %v2714_v4, 1  ;;  %v8182_v18 = vsel %vm1564_vm4, %v3609_v34, %v3611_v28  ;;  %v5954_v34 = vld [vmem:[%s9070_s5 + $0x194] ss:$8 sps:$4 sm:$0xff]   ;;  %v3369_v35 = vrot.slane %v2718_v25, 1  ;;  %v3370_v59 = vrot.slane %v2714_v4, 2 }
 0x469   :  { %v5963_v4 = vld [vmem:[%s9070_s5 + $0x164] ss:$8 sps:$4 sm:$0xff]  }
 0x46a   :  { %v2717_v14 = vsel %vm152_vm1, %v2712_v56, %v2716_v22  ;;  %v2720_v12 = vor.u32 %v2718_v25, %v2716_v22  ;;  %v3118_v56 = vsel %vm808_vm3, %v3115_v50, %v3117_v51 }
 0x46b   :  { %5286 = vmatmul.mubr.msk.bf16.gmra.mxu1 %vm2615_vm9, %v2717_v14  ;;  %v2643_v49 = vld [vmem:[#allocation2 + $0x68] sm:$0xff] }
 0x46c   :  { %v8186_v38 = vpack.c.bf16 %v2643_v49, %v2642_v6  ;;  %2894 = vmatprep.mubr.bf16.mxu1 %v9346_v3  ;;  %v3119_v49 = vrot.slane %v8144_v19, 1 }
 0x46e   :  { %5308 = vmatmul.mubr.msk.bf16.gmra.mxu0 %vm2615_vm9, %v8186_v38  ;;  %v2722_v33 = vshll.u32 %v8186_v38, 16  ;;  %v3613_v10 = vrot.slane %v8186_v38, 2  ;;  %v2726_v9 = vshrl.u32 %v8186_v38, 16  ;;  %v3120_v52 = vsel %vm808_vm3, %v3117_v51, %v3119_v49 }
 0x46f   :  { %3491 = vmatprep.mubr.bf16.mxu0 %v9346_v3  ;;  %v3123_v63 = vrot.slane %v8186_v38, 1 }
 0x470   :  { %v2724_v40 = vrot.slane %v2722_v33, 1  ;;  %v8208_v39 = vsel %vm1564_vm4, %v3611_v28, %v3613_v10  ;;  %v3371_v28 = vor.u32 %v3370_v59, %v3369_v35  ;;  %v3373_v14 = vrot.slane %v2726_v9, 1 }
 0x471   :  { %v3374_v6 = vrot.slane %v2722_v33, 2  ;;  %v3121_v33 = vrot.slane %v8170_v11, 1 }
 0x472   :  { %v2725_v31 = vsel %vm152_vm1, %v2720_v12, %v2724_v40  ;;  %v2728_v32 = vor.u32 %v2726_v9, %v2724_v40  ;;  %v3372_v22 = vsel %vm1170_vm2, %v3367_v42, %v3371_v28 }
 0x473   :  { %5287 = vmatmul.mubr.msk.bf16.gmra.mxu1 %vm2615_vm9, %v2725_v31  ;;  %v3375_v21 = vor.u32 %v3374_v6, %v3373_v14  ;;  %v3122_v19 = vsel %vm808_vm3, %v3119_v49, %v3121_v33  ;;  %v3124_v45 = vsel %vm808_vm3, %v3121_v33, %v3123_v63 }
 0x474   :  { %2904 = vmatprep.mubr.bf16.mxu1 %v9346_v3 }
 0x475   :  { %v3376_v25 = vsel %vm1170_vm2, %v3371_v28, %v3375_v21 }
 0x476   :  { %5364 = vmatmul.mubr.msk.bf16.vlgmr.msra.gmra.mxu0 %vm2615_vm9, %v3356_v16 }
 0x477   :  { %3501 = vmatprep.mubr.bf16.mxu0 %v9346_v3 }
 0x47b   :  { %5288 = vmatmul.mubr.msk.bf16.gmra.mxu1 %vm2615_vm9, %v2728_v32 }
 0x47c   :  { %3239 = vmatprep.mubr.bf16.mxu1 %v9346_v3 }
 0x47e   :  { %5365 = vmatmul.mubr.msk.bf16.gmra.mxu0 %vm2615_vm9, %v3360_v37 }
 0x47f   :  { %3511 = vmatprep.mubr.bf16.mxu0 %v9346_v3 }
 0x483   :  { %5333 = vmatmul.mubr.msk.bf16.vlgmr.msra.gmra.mxu1 %vm2615_vm9, %v3114_v47 }
 0x484   :  { %3249 = vmatprep.mubr.bf16.mxu1 %v9346_v3  ;;  %3702 = vmatpush1.bf16.msra.mxu1 %v3692_v30 }
 0x485   :  { %3703 = vmatprep.subr.bf16.mxu1 %v5951_v7 }
 0x486   :  { %5366 = vmatmul.mubr.msk.bf16.gmra.mxu0 %vm2615_vm9, %v3364_v57 }
 0x487   :  { %3521 = vmatprep.mubr.bf16.mxu0 %v9346_v3 }
 0x488   :  { %3704 = vmatpush1.bf16.msra.mxu1 %v5949_v36 }
 0x489   :  { %3705 = vmatprep.subr.bf16.mxu1 %v5954_v34 }
 0x48b   :  { %5334 = vmatmul.mubr.msk.bf16.gmra.mxu1 %vm2615_vm9, %v3116_v2 }
 0x48c   :  { %3259 = vmatprep.mubr.bf16.mxu1 %v9346_v3  ;;  %3706 = vmatpush1.bf16.msra.mxu1 %v5952_v5 }
 0x48d   :  { %3707 = vmatprep.subr.bf16.mxu1 %v5957_v43 }
 0x48e   :  { %5367 = vmatmul.mubr.msk.bf16.gmra.mxu0 %vm2615_vm9, %v3368_v27 }
 0x48f   :  { %3531 = vmatprep.mubr.bf16.mxu0 %v9346_v3 }
 0x490   :  { %3708 = vmatpush1.bf16.msra.mxu1 %v5955_v24 }
 0x491   :  { %3709 = vmatprep.subr.bf16.mxu1 %v5960_v26 }
 0x493   :  { %5335 = vmatmul.mubr.msk.bf16.gmra.mxu1 %vm2615_vm9, %v3118_v56 }
 0x494   :  { %3269 = vmatprep.mubr.bf16.mxu1 %v9346_v3  ;;  %3710 = vmatpush1.bf16.msra.mxu1 %v5958_v48 }
 0x495   :  { %3711 = vmatprep.subr.bf16.mxu1 %v5963_v4 }
 0x496   :  { %5368 = vmatmul.mubr.msk.bf16.gmra.mxu0 %vm2615_vm9, %v3372_v22 }
 0x497   :  { %3541 = vmatprep.mubr.bf16.mxu0 %v9346_v3 }
 0x498   :  { %3712 = vmatpush1.bf16.msra.mxu1 %v5961_v55 }
 0x499   :  { %5596 = vmatprep.subr.mxu1 %v9088_v61 }
 0x49b   :  { %5336 = vmatmul.mubr.msk.bf16.gmra.mxu1 %vm2615_vm9, %v3120_v52 }
 0x49c   :  { %3279 = vmatprep.mubr.bf16.mxu1 %v9346_v3 }
 0x49e   :  { %5369 = vmatmul.mubr.msk.bf16.gmra.mxu0 %vm2615_vm9, %v3376_v25 }
 0x49f   :  { %3551 = vmatprep.mubr.bf16.mxu0 %v9346_v3 }
 0x4a3   :  { %5337 = vmatmul.mubr.msk.bf16.gmra.mxu1 %vm2615_vm9, %v3122_v19 }
 0x4a4   :  { %3289 = vmatprep.mubr.bf16.mxu1 %v9346_v3 }
 0x4a6   :  { %5370 = vmatmul.mubr.msk.bf16.gmra.mxu0 %vm2615_vm9, %v3375_v21 }
 0x4a7   :  { %4043 = vmatprep.mubr.f32.mxu0 %v9088_v61 }
 0x4ab   :  { %5338 = vmatmul.mubr.msk.bf16.gmra.mxu1 %vm2615_vm9, %v3124_v45 }
 0x4ac   :  { %3299 = vmatprep.mubr.bf16.mxu1 %v9346_v3 }
 0x4b3   :  { %5339 = vmatmul.mubr.msk.bf16.gmra.mxu1 %vm2615_vm9, %v3123_v63 }
 0x4b4   :  { %3729 = vmatprep.mubr.bf16.mxu1 %v9346_v3 }
 0x4bb   :  { %5395 = vmatmul.mubr.msk.bf16.vlgmr.msra.gmra.mxu1 %vm2615_vm9, %v8061_v0 }
 0x4bc   :  { %3739 = vmatprep.mubr.bf16.mxu1 %v9346_v3 }
 0x4c3   :  { %5396 = vmatmul.mubr.msk.bf16.gmra.mxu1 %vm2615_vm9, %v8102_v29 }
 0x4c4   :  { %3749 = vmatprep.mubr.bf16.mxu1 %v9346_v3 }
 0x4cb   :  { %5397 = vmatmul.mubr.msk.bf16.gmra.mxu1 %vm2615_vm9, %v8134_v46 }
 0x4cc   :  { %3759 = vmatprep.mubr.bf16.mxu1 %v9346_v3 }
 0x4d3   :  { %5398 = vmatmul.mubr.msk.bf16.gmra.mxu1 %vm2615_vm9, %v8165_v17 }
 0x4d4   :  { %3769 = vmatprep.mubr.bf16.mxu1 %v9346_v3 }
 0x4db   :  { %5399 = vmatmul.mubr.msk.bf16.gmra.mxu1 %vm2615_vm9, %v8182_v18 }
 0x4dc   :  { %3779 = vmatprep.mubr.bf16.mxu1 %v9346_v3 }
 0x4e3   :  { %5400 = vmatmul.mubr.msk.bf16.gmra.mxu1 %vm2615_vm9, %v8208_v39 }
 0x4e4   :  { %3789 = vmatprep.mubr.bf16.mxu1 %v9346_v3 }
 0x4eb   :  { %5401 = vmatmul.mubr.msk.bf16.gmra.mxu1 %vm2615_vm9, %v3613_v10 }
 0x4fe   :  { %v3024_v0 = vpop.f32.mrf.mxu0 }
 0x500   :  { %v8332_v29 = vpop.f32.mrf.mxu0 }
 0x502   :  { %v3028_v46 = vpop.f32.mrf.mxu0 }
 0x504   :  { %v8334_v17 = vpop.f32.mrf.mxu0 }
 0x506   :  { %v3034_v11 = vpop.f32.mrf.mxu0 }
 0x508   :  { %v3036_v12 = vpop.f32.mrf.mxu0 }
 0x50a   :  { %v3038_v18 = vpop.f32.mrf.mxu0 }
 0x50b   :  { %v2846_v40 = vpop.f32.mrf.mxu1 }
 0x50c   :  { %v8336_v54 = vadd.f32 %v3024_v0, %v2846_v40  ;;  %v3040_v31 = vpop.f32.mrf.mxu0 }
 0x50d   :  { %v8338_v39 = vpop.f32.mrf.mxu1 }
 0x50e   :  { %v3044_v3 = vpop.f32.mrf.mxu0 }
 0x50f   :  { %v2850_v8 = vpop.f32.mrf.mxu1 }
 0x510   :  { %v8340_v38 = vadd.f32 %v3028_v46, %v2850_v8  ;;  %v3046_v10 = vpop.f32.mrf.mxu0 }
 0x511   :  { %v8342_v16 = vpop.f32.mrf.mxu1 }
 0x512   :  { %v3048_v53 = vpop.f32.mrf.mxu0 }
 0x513   :  { %v2856_v13 = vpop.f32.mrf.mxu1 }
 0x514   :  { %v8344_v9 = vadd.f32 %v3034_v11, %v2856_v13  ;;  %v3050_v32 = vpop.f32.mrf.mxu0 }
 0x515   :  { %v2858_v15 = vpop.f32.mrf.mxu1 }
 0x516   :  { %v8346_v37 = vadd.f32 %v3036_v12, %v2858_v15  ;;  %v3054_v1 = vpop.f32.mrf.mxu0 }
 0x517   :  { %v2860_v44 = vpop.f32.mrf.mxu1 }
 0x518   :  { %v8348_v41 = vadd.f32 %v3038_v18, %v2860_v44  ;;  %v3056_v62 = vpop.f32.mrf.mxu0 }
 0x519   :  { %v2862_v23 = vpop.f32.mrf.mxu1 }
 0x51a   :  { %v8350_v20 = vadd.f32 %v3040_v31, %v2862_v23  ;;  %v3058_v30 = vpop.f32.mrf.mxu0 }
 0x51b   :  { %v2866_v7 = vpop.f32.mrf.mxu1 }
 0x51c   :  { %v8352_v47 = vadd.f32 %v3044_v3, %v2866_v7  ;;  %v3060_v36 = vpop.f32.mrf.mxu0  ;;  %v3027_v7 = vadd.f32 %v8332_v29, %v8338_v39 }
 0x51d   :  { %v2868_v57 = vpop.f32.mrf.mxu1 }
 0x51e   :  { %v8354_v58 = vadd.f32 %v3046_v10, %v2868_v57  ;;  %v3064_v60 = vpop.f32.mrf.mxu0 }
 0x51f   :  { %v2870_v34 = vpop.f32.mrf.mxu1 }
 0x520   :  { %v8356_v50 = vadd.f32 %v3048_v53, %v2870_v34  ;;  %v3066_v5 = vpop.f32.mrf.mxu0 }
 0x521   :  { %v2872_v42 = vpop.f32.mrf.mxu1 }
 0x522   :  { %v8358_v43 = vadd.f32 %v3050_v32, %v2872_v42  ;;  %v3068_v2 = vpop.f32.mrf.mxu0 }
 0x523   :  { %v2876_v24 = vpop.f32.mrf.mxu1 }
 0x524   :  { %v8360_v27 = vadd.f32 %v3054_v1, %v2876_v24  ;;  %v3070_v35 = vpop.f32.mrf.mxu0 }
 0x525   :  { %v2878_v59 = vpop.f32.mrf.mxu1 }
 0x526   :  { %v8362_v26 = vadd.f32 %v3056_v62, %v2878_v59  ;;  %v3074_v51 = vpop.f32.mrf.mxu0 }
 0x527   :  { %v2880_v48 = vpop.f32.mrf.mxu1 }
 0x528   :  { %v8364_v28 = vadd.f32 %v3058_v30, %v2880_v48  ;;  %v3076_v4 = vpop.f32.mrf.mxu0 }
 0x529   :  { %v2882_v56 = vpop.f32.mrf.mxu1 }
 0x52a   :  { %v8366_v55 = vadd.f32 %v3060_v36, %v2882_v56  ;;  %v3078_v22 = vpop.f32.mrf.mxu0 }
 0x52b   :  { %v2886_v14 = vpop.f32.mrf.mxu1 }
 0x52c   :  { %v8368_v6 = vadd.f32 %v3064_v60, %v2886_v14  ;;  %v3080_v49 = vpop.f32.mrf.mxu0 }
 0x52d   :  { %v2888_v21 = vpop.f32.mrf.mxu1 }
 0x52e   :  { %v8370_v52 = vadd.f32 %v3066_v5, %v2888_v21  ;;  %v8372_v25 = vpop.f32.mrf.mxu0 }
 0x52f   :  { %v2890_v33 = vpop.f32.mrf.mxu1 }
 0x530   :  { %v8374_v19 = vadd.f32 %v3068_v2, %v2890_v33  ;;  %v8376_v63 = vpop.f32.mrf.mxu0  ;;  %v3031_v2 = vadd.f32 %v8334_v17, %v8342_v16 }
 0x531   :  { %v2892_v45 = vpop.f32.mrf.mxu1 }
 0x532   :  { %v8378_v0 = vadd.f32 %v3070_v35, %v2892_v45  ;;  %v8380_v46 = vpop.f32.mrf.mxu0 }
 0x533   :  { %v2896_v11 = vpop.f32.mrf.mxu1 }
 0x534   :  { %v8382_v12 = vadd.f32 %v3074_v51, %v2896_v11  ;;  %v8386_v31 = vpop.f32.mrf.mxu0 }
 0x535   :  { %v2898_v18 = vpop.f32.mrf.mxu1 }
 0x536   :  { %v8384_v40 = vadd.f32 %v3076_v4, %v2898_v18  ;;  %v3493_v13 = vpop.f32.mrf.mxu0 }
 0x537   :  { %v2900_v3 = vpop.f32.mrf.mxu1 }
 0x538   :  { %v8388_v8 = vadd.f32 %v3078_v22, %v2900_v3  ;;  %v3495_v1 = vpop.f32.mrf.mxu0 }
 0x539   :  { %v2902_v10 = vpop.f32.mrf.mxu1 }
 0x53a   :  { %v8390_v53 = vadd.f32 %v3080_v49, %v2902_v10  ;;  %v3497_v23 = vpop.f32.mrf.mxu0 }
 0x53b   :  { %v8392_v32 = vpop.f32.mrf.mxu1 }
 0x53c   :  { %v3499_v5 = vpop.f32.mrf.mxu0 }
 0x53d   :  { %v8394_v15 = vpop.f32.mrf.mxu1 }
 0x53e   :  { %v3503_v29 = vpop.f32.mrf.mxu0 }
 0x53f   :  { %v8396_v44 = vpop.f32.mrf.mxu1 }
 0x540   :  { %v3505_v17 = vpop.f32.mrf.mxu0 }
 0x541   :  { %v8398_v62 = vpop.f32.mrf.mxu1 }
 0x543   :  { %v3241_v30 = vpop.f32.mrf.mxu1 }
 0x544   :  { %v3310_v36 = vadd.f32 %v3241_v30, %v8336_v54 }
 0x545   :  { %v3243_v57 = vpop.f32.mrf.mxu1 }
 0x546   :  { %v3311_v60 = vadd.f32 %v3243_v57, %v3027_v7  ;;  %v8403_v34 = vadd.f32 %v3493_v13, %v3310_v36  ;;  %v8436_v13 = vpop.f32.mrf.mxu0 }
 0x547   :  { %v3245_v42 = vpop.f32.mrf.mxu1 }
 0x548   :  { %v3312_v24 = vadd.f32 %v3245_v42, %v8340_v38  ;;  %v8408_v35 = vadd.f32 %v3495_v1, %v3311_v60 }
 0x549   :  { %v3247_v59 = vpop.f32.mrf.mxu1 }
 0x54a   :  { %v3313_v51 = vadd.f32 %v3247_v59, %v3031_v2  ;;  %v8410_v48 = vadd.f32 %v3497_v23, %v3312_v24 }
 0x54b   :  { %v3251_v39 = vpop.f32.mrf.mxu1 }
 0x54c   :  { %v3314_v54 = vadd.f32 %v3251_v39, %v8344_v9  ;;  %v8413_v4 = vadd.f32 %v3499_v5, %v3313_v51 }
 0x54d   :  { %v3253_v56 = vpop.f32.mrf.mxu1 }
 0x54e   :  { %v3315_v22 = vadd.f32 %v3253_v56, %v8346_v37  ;;  %v8416_v14 = vadd.f32 %v3503_v29, %v3314_v54 }
 0x54f   :  { %v3255_v16 = vpop.f32.mrf.mxu1 }
 0x550   :  { %v8419_v38 = vadd.f32 %v3255_v16, %v8348_v41  ;;  %v3567_v49 = vadd.f32 %v3505_v17, %v3315_v22 }
 0x551   :  { %v3257_v21 = vpop.f32.mrf.mxu1 }
 0x552   :  { %v8422_v33 = vadd.f32 %v3257_v21, %v8350_v20 }
 0x553   :  { %v3261_v45 = vpop.f32.mrf.mxu1 }
 0x554   :  { %v8425_v9 = vadd.f32 %v3261_v45, %v8352_v47 }
 0x555   :  { %v3263_v11 = vpop.f32.mrf.mxu1 }
 0x556   :  { %v8428_v18 = vadd.f32 %v3263_v11, %v8354_v58  ;;  %v8444_v58 = vpop.f32.mrf.mxu0 }
 0x557   :  { %v3265_v37 = vpop.f32.mrf.mxu1 }
 0x558   :  { %v8431_v3 = vadd.f32 %v3265_v37, %v8356_v50  ;;  %v8452_v36 = vpop.f32.mrf.mxu0 }
 0x559   :  { %v3267_v10 = vpop.f32.mrf.mxu1 }
 0x55a   :  { %v8434_v41 = vadd.f32 %v3267_v10, %v8358_v43  ;;  %v8460_v5 = vpop.f32.mrf.mxu0 }
 0x55b   :  { %v3271_v20 = vpop.f32.mrf.mxu1 }
 0x55c   :  { %v8439_v1 = vadd.f32 %v3271_v20, %v8360_v27  ;;  %v8468_v24 = vpop.f32.mrf.mxu0 }
 0x55d   :  { %v3273_v47 = vpop.f32.mrf.mxu1 }
 0x55e   :  { %v8442_v23 = vadd.f32 %v3273_v47, %v8362_v26  ;;  %v8476_v29 = vpop.f32.mrf.mxu0 }
 0x55f   :  { %v3275_v30 = vpop.f32.mrf.mxu1 }
 0x560   :  { %v8447_v50 = vadd.f32 %v3275_v30, %v8364_v28  ;;  %v8484_v56 = vpop.f32.mrf.mxu0 }
 0x561   :  { %v3277_v7 = vpop.f32.mrf.mxu1 }
 0x562   :  { %v8450_v43 = vadd.f32 %v3277_v7, %v8366_v55 }
 0x563   :  { %v3281_v57 = vpop.f32.mrf.mxu1 }
 0x564   :  { %v8455_v27 = vadd.f32 %v3281_v57, %v8368_v6 }
 0x565   :  { %v3283_v60 = vpop.f32.mrf.mxu1 }
 0x566   :  { %v8458_v26 = vadd.f32 %v3283_v60, %v8370_v52 }
 0x567   :  { %v3285_v42 = vpop.f32.mrf.mxu1 }
 0x568   :  { %v8463_v28 = vadd.f32 %v3285_v42, %v8374_v19 }
 0x569   :  { %v3287_v2 = vpop.f32.mrf.mxu1 }
 0x56a   :  { %v8466_v55 = vadd.f32 %v3287_v2, %v8378_v0 }
 0x56b   :  { %v3291_v59 = vpop.f32.mrf.mxu1 }
 0x56c   :  { %v8471_v6 = vadd.f32 %v3291_v59, %v8382_v12  ;;  %v8486_v12 = vpop.f32.mrf.mxu0 }
 0x56d   :  { %v3293_v51 = vpop.f32.mrf.mxu1 }
 0x56e   :  { %v8474_v52 = vadd.f32 %v3293_v51, %v8384_v40  ;;  %v8488_v40 = vpop.f32.mrf.mxu0 }
 0x56f   :  { %v3295_v39 = vpop.f32.mrf.mxu1 }
 0x570   :  { %v8479_v19 = vadd.f32 %v3295_v39, %v8388_v8 }
 0x571   :  { %v3297_v54 = vpop.f32.mrf.mxu1 }
 0x572   :  { %v8482_v0 = vadd.f32 %v3297_v54, %v8390_v53  ;;  %v8496_v53 = vpop.f32.mrf.mxu0 }
 0x573   :  { %v3301_v22 = vpop.f32.mrf.mxu1 }
 0x574   :  { %v8504_v7 = vpop.f32.mrf.mxu0 }
 0x575   :  { %v3303_v17 = vpop.f32.mrf.mxu1 }
 0x577   :  { %v3305_v16 = vpop.f32.mrf.mxu1 }
 0x579   :  { %v3307_v21 = vpop.f32.mrf.mxu1 }
 0x57b   :  { %v3731_v45 = vpop.f32.mrf.mxu1 }
 0x57c   :  { %v8491_v11 = vadd.f32 %v3731_v45, %v8403_v34 }
 0x57d   :  { %v3733_v8 = vpop.f32.mrf.mxu1 }
 0x57e   :  { %9347 = vst [vmem:[#allocation67_spill] sm:$0xff] %v8491_v11  ;;  %v8494_v37 = vadd.f32 %v3733_v8, %v8408_v35  ;;  %v3535_v35 = vpop.f32.mrf.mxu0 }
 0x57f   :  { %v3735_v10 = vpop.f32.mrf.mxu1 }
 0x580   :  { %9348 = vst [vmem:[#allocation64_spill] sm:$0xff] %v8494_v37  ;;  %v8499_v20 = vadd.f32 %v3735_v10, %v8410_v48  ;;  %v8515_v48 = vpop.f32.mrf.mxu0 }
 0x581   :  { %v3737_v47 = vpop.f32.mrf.mxu1 }
 0x582   :  { %9349 = vst [vmem:[#allocation74_spill] sm:$0xff] %v8499_v20  ;;  %v8502_v30 = vadd.f32 %v3737_v47, %v8413_v4  ;;  %v3539_v39 = vpop.f32.mrf.mxu0 }
 0x583   :  { %v3741_v57 = vpop.f32.mrf.mxu1 }
 0x584   :  { %9350 = vst [vmem:[#allocation71_spill] sm:$0xff] %v8502_v30  ;;  %v8507_v34 = vadd.f32 %v3741_v57, %v8416_v14  ;;  %v3543_v14 = vpop.f32.mrf.mxu0 }
 0x585   :  { %v3743_v60 = vpop.f32.mrf.mxu1 }
 0x586   :  { %9351 = vst [vmem:[#allocation69_spill] sm:$0xff] %v8507_v34  ;;  %v8509_v42 = vadd.f32 %v3743_v60, %v3567_v49  ;;  %v3545_v10 = vpop.f32.mrf.mxu0 }
 0x587   :  { %v8511_v2 = vpop.f32.mrf.mxu1 }
 0x588   :  { %9352 = vst [vmem:[#allocation65_spill] sm:$0xff] %v8509_v42  ;;  %9353 = vst [vmem:[#allocation73_spill] sm:$0xff] %v8511_v2  ;;  %v3547_v60 = vpop.f32.mrf.mxu0  ;;  %v3085_v2 = vadd.f32 %v8372_v25, %v8392_v32 }
 0x589   :  { %v8513_v59 = vpop.f32.mrf.mxu1 }
 0x58a   :  { %9354 = vst [vmem:[#allocation70_spill] sm:$0xff] %v8513_v59  ;;  %v3549_v37 = vpop.f32.mrf.mxu0 }
 0x58b   :  { %v8517_v51 = vpop.f32.mrf.mxu1 }
 0x58c   :  { %9355 = vst [vmem:[#allocation66_spill] sm:$0xff] %v8517_v51  ;;  %v3553_v34 = vpop.f32.mrf.mxu0  ;;  %v3087_v51 = vadd.f32 %v8376_v63, %v8394_v15 }
 0x58d   :  { %v8519_v4 = vpop.f32.mrf.mxu1 }
 0x58e   :  { %9356 = vst [vmem:[#allocation72_spill] sm:$0xff] %v8519_v4  ;;  %v3828_v4 = vld [vmem:[%s9071_s6] sm:$0x3] }
 0x58f   :  { %v8521_v54 = vpop.f32.mrf.mxu1 }
 0x590   :  { %9357 = vst [vmem:[#allocation68_spill] sm:$0xff] %v8521_v54  ;;  %v3555_v54 = vpop.f32.mrf.mxu0 }
 0x591   :  { %v8523_v45 = vpop.f32.mrf.mxu1 }
 0x592   :  { %9358 = vst [vmem:[#allocation77_spill] sm:$0xff] %v8523_v45  ;;  %v3334_v45 = vadd.f32 %v3301_v22, %v3085_v2  ;;  %v8558_v22 = vadd.f32 %v8436_v13, %v8419_v38  ;;  %v8578_v38 = vadd.f32 %v8476_v29, %v8434_v41  ;;  %v3577_v29 = vadd.f32 %v8496_v53, %v8450_v43 }
 0x593   :  { %v8525_v8 = vpop.f32.mrf.mxu1  ;;  %v3580_v43 = vadd.f32 %v8515_v48, %v8463_v28 }
 0x594   :  { %9359 = vst [vmem:[#allocation75_spill] sm:$0xff] %v8525_v8 }
 0x595   :  { %v8527_v49 = vpop.f32.mrf.mxu1 }
 0x596   :  { %9360 = vst [vmem:[#allocation76_spill] sm:$0xff] %v8527_v49  ;;  %v3335_v49 = vadd.f32 %v3303_v17, %v3087_v51  ;;  %v8562_v17 = vadd.f32 %v8444_v58, %v8422_v33  ;;  %v3586_v33 = vadd.f32 %v3553_v34, %v3334_v45 }
 0x597   :  { %v8529_v47 = vpop.f32.mrf.mxu1 }
 0x598   :  { %9361 = vst [vmem:[#allocation79_spill] sm:$0xff] %v8529_v47  ;;  %v3089_v47 = vadd.f32 %v8380_v46, %v8396_v44  ;;  %v8566_v46 = vadd.f32 %v8452_v36, %v8425_v9  ;;  %v3557_v44 = vpop.f32.mrf.mxu0  ;;  %v3574_v9 = vadd.f32 %v8484_v56, %v8439_v1  ;;  %v3585_v36 = vadd.f32 %v3549_v37, %v8482_v0 }
 0x599   :  { %v8531_v57 = vpop.f32.mrf.mxu1  ;;  %v3579_v0 = vadd.f32 %v3535_v35, %v8458_v26  ;;  %v3582_v37 = vadd.f32 %v3543_v14, %v8471_v6 }
 0x59a   :  { %9362 = vst [vmem:[#allocation97_spill] sm:$0xff] %v8531_v57  ;;  %v3559_v56 = vpop.f32.mrf.mxu0 }
 0x59b   :  { %v8533_v61 = vpop.f32.mrf.mxu1 }
 0x59c   :  { %9363 = vst [vmem:[#allocation61_spill] sm:$0xff] %v8533_v61  ;;  %v3091_v61 = vadd.f32 %v8386_v31, %v8398_v62  ;;  %v8570_v31 = vadd.f32 %v8460_v5, %v8428_v18  ;;  %v3336_v62 = vadd.f32 %v3305_v16, %v3089_v47  ;;  %v3587_v18 = vadd.f32 %v3555_v54, %v3335_v49 }
 0x59d   :  { %v8535_v11 = vpop.f32.mrf.mxu1  ;;  %v3575_v5 = vadd.f32 %v8486_v12, %v8442_v23 }
 0x59e   :  { %9364 = vst [vmem:[#allocation96_spill] sm:$0xff] %v8535_v11  ;;  %v9365_v11 = vld [vmem:[#allocation100_spill] sm:$0xff]  ;;  %v3337_v58 = vadd.f32 %v3307_v21, %v3091_v61  ;;  %v3583_v61 = vadd.f32 %v3545_v10, %v8474_v52  ;;  %v3588_v12 = vadd.f32 %v3557_v44, %v3336_v62 }
 0x59f   :  { %v3775_v20 = vpop.f32.mrf.mxu1  ;;  %v9366_v25 = vsub.s32 0, %v9365_v11  ;;  %v9367_v63 = vsub.s32 1, %v9365_v11  ;;  %v8574_v11 = vadd.f32 %v8468_v24, %v8431_v3  ;;  %v3576_v3 = vadd.f32 %v8488_v40, %v8447_v50 }
 0x5a0   :  { %v3584_v24 = vadd.f32 %v3547_v60, %v8479_v19  ;;  %v3581_v50 = vadd.f32 %v3539_v39, %v8466_v55  ;;  %v3589_v2 = vadd.f32 %v3559_v56, %v3337_v58  ;;  %v3578_v55 = vadd.f32 %v8504_v7, %v8455_v27 }
 0x5a1   :  { %v3777_v30 = vpop.f32.mrf.mxu1  ;;  %v8550_v32 = vrot.slane %v3828_v4, %v9366_v25  ;;  %v8554_v15 = vrot.slane %v3828_v4, %v9367_v63  ;;  %v9368_v14 = vld [vmem:[#allocation97_spill] sm:$0xff]  ;;  %v9371_v25 = vld [vmem:[#allocation79_spill] sm:$0xff] }
 0x5a2   :  { %v3819_v26 = vadd.f32 %v3777_v30, %v3581_v50  ;;  %v3815_v28 = vadd.f32 %v9368_v14, %v3577_v29  ;;  %v3814_v63 = vadd.f32 %v9371_v25, %v3576_v3  ;;  %v9374_v29 = vld [vmem:[#allocation77_spill] sm:$0xff] }
 0x5a3   :  { %v3781_v42 = vpop.f32.mrf.mxu1  ;;  %v9370_v49 = vld [vmem:[#allocation61_spill] sm:$0xff] }
 0x5a4   :  { %v3820_v52 = vadd.f32 %v3781_v42, %v3582_v37  ;;  %v3816_v10 = vadd.f32 %v9370_v49, %v3578_v55  ;;  %v3859_v27 = vadd.f32 %v8554_v15, %v3819_v26  ;;  %v3855_v3 = vadd.f32 %v8554_v15, %v3815_v28  ;;  %v9382_v49 = vld [vmem:[#allocation71_spill] sm:$0xff] }
 0x5a5   :  { %v3783_v59 = vpop.f32.mrf.mxu1  ;;  %v9369_v42 = vld [vmem:[#allocation96_spill] sm:$0xff]  ;;  %v3854_v56 = vadd.f32 %v8550_v32, %v3814_v63 }
 0x5a6   :  { %v3821_v19 = vadd.f32 %v3783_v59, %v3583_v61  ;;  %v3818_v59 = vadd.f32 %v3775_v20, %v3580_v43  ;;  %v3817_v48 = vadd.f32 %v9369_v42, %v3579_v0  ;;  %v3860_v47 = vadd.f32 %v8550_v32, %v3820_v52  ;;  %v9381_v42 = vld [vmem:[#allocation69_spill] sm:$0xff] }
 0x5a7   :  { %v3785_v8 = vpop.f32.mrf.mxu1  ;;  %v3811_v61 = vadd.f32 %v9374_v29, %v8578_v38  ;;  %v9377_v38 = vld [vmem:[#allocation66_spill] sm:$0xff]  ;;  %v3883_v43 = vmul.f32 0.6666667, %v3855_v3 }
 0x5a8   :  { %v3822_v23 = vadd.f32 %v3785_v8, %v3584_v24  ;;  %v3861_v8 = vadd.f32 %v8554_v15, %v3821_v19  ;;  %v3858_v44 = vadd.f32 %v8550_v32, %v3818_v59  ;;  %v3857_v58 = vadd.f32 %v8554_v15, %v3817_v48 }
 0x5a9   :  { %v3787_v57 = vpop.f32.mrf.mxu1  ;;  %v3844_v48 = vadd.f32 %v8550_v32, %v9381_v42 }
 0x5aa   :  { %v3823_v21 = vadd.f32 %v3787_v57, %v3585_v36  ;;  %v3862_v39 = vadd.f32 %v8550_v32, %v3822_v23  ;;  %v3889_v36 = vmul.f32 0.6666667, %v3861_v8  ;;  %v3886_v0 = vmul.f32 0.6666667, %v3858_v44  ;;  %v9384_v44 = vld [vmem:[#allocation64_spill] sm:$0xff] }
 0x5ab   :  { %v3791_v13 = vpop.f32.mrf.mxu1 }
 0x5ac   :  { %v3824_v16 = vadd.f32 %v3791_v13, %v3586_v33  ;;  %v3863_v6 = vadd.f32 %v8554_v15, %v3823_v21  ;;  %v3890_v62 = vmul.f32 0.6666667, %v3862_v39  ;;  %v9372_v33 = vld [vmem:[#allocation76_spill] sm:$0xff]  ;;  %v3887_v21 = vmul.f32 0.6666667, %v3859_v27  ;;  %v9380_v39 = vld [vmem:[#allocation65_spill] sm:$0xff] }
 0x5ad   :  { %v3793_v41 = vpop.f32.mrf.mxu1  ;;  %v3813_v13 = vadd.f32 %v9372_v33, %v3575_v5  ;;  %v9383_v27 = vld [vmem:[#allocation74_spill] sm:$0xff] }
 0x5ae   :  { %v3825_v1 = vadd.f32 %v3793_v41, %v3587_v18  ;;  %v3864_v53 = vadd.f32 %v8550_v32, %v3824_v16  ;;  %v3891_v20 = vmul.f32 0.6666667, %v3863_v6  ;;  %v9373_v18 = vld [vmem:[#allocation75_spill] sm:$0xff]  ;;  %v3856_v16 = vadd.f32 %v8550_v32, %v3816_v10 }
 0x5af   :  { %v3795_v34 = vpop.f32.mrf.mxu1  ;;  %v3812_v24 = vadd.f32 %v9373_v18, %v3574_v9  ;;  %v3888_v41 = vmul.f32 0.6666667, %v3860_v47  ;;  %v9376_v9 = vld [vmem:[#allocation72_spill] sm:$0xff]  ;;  %v3853_v23 = vadd.f32 %v8554_v15, %v3813_v13  ;;  %v3843_v10 = vadd.f32 %v8554_v15, %v9382_v49 }
 0x5b0   :  { %v3865_v40 = vadd.f32 %v8554_v15, %v3825_v1  ;;  %v3826_v51 = vadd.f32 %v3795_v34, %v3588_v12  ;;  %v3892_v57 = vmul.f32 0.6666667, %v3864_v53  ;;  %v9375_v1 = vld [vmem:[#allocation68_spill] sm:$0xff]  ;;  %v3809_v37 = vadd.f32 %v9376_v9, %v8570_v31  ;;  %v9379_v31 = vld [vmem:[#allocation73_spill] sm:$0xff] }
 0x5b1   :  { %v3797_v4 = vpop.f32.mrf.mxu1  ;;  %v3810_v5 = vadd.f32 %v9375_v1, %v8574_v11  ;;  %v3885_v12 = vmul.f32 0.6666667, %v3857_v58  ;;  %v3808_v34 = vadd.f32 %v9377_v38, %v8566_v46  ;;  %v3852_v50 = vadd.f32 %v8550_v32, %v3812_v24  ;;  %v9378_v11 = vld [vmem:[#allocation70_spill] sm:$0xff] }
 0x5b2   :  { %v3893_v35 = vmul.f32 0.6666667, %v3865_v40  ;;  %v3827_v54 = vadd.f32 %v3797_v4, %v3589_v2  ;;  %v3866_v45 = vadd.f32 %v8550_v32, %v3826_v51  ;;  %v3884_v19 = vmul.f32 0.6666667, %v3856_v16 }
 0x5b3   :  { %v3807_v40 = vadd.f32 %v9378_v11, %v8562_v17  ;;  %v3851_v2 = vadd.f32 %v8554_v15, %v3811_v61  ;;  %v3806_v52 = vadd.f32 %v9379_v31, %v8558_v22  ;;  %v3850_v53 = vadd.f32 %v8550_v32, %v3810_v5 }
 0x5b4   :  { %v3867_v30 = vadd.f32 %v8554_v15, %v3827_v54  ;;  %v3894_v60 = vmul.f32 0.6666667, %v3866_v45  ;;  %6092 = vtanh.f32 %v3893_v35  ;;  %v3882_v51 = vmul.f32 0.6666667, %v3854_v56 }
 0x5b5   :  { %v3849_v46 = vadd.f32 %v8554_v15, %v3809_v37  ;;  %v3881_v4 = vmul.f32 0.6666667, %v3853_v23  ;;  %v3848_v26 = vadd.f32 %v8550_v32, %v3808_v34  ;;  %v3880_v6 = vmul.f32 0.6666667, %v3852_v50 }
 0x5b6   :  { %v3895_v7 = vmul.f32 0.6666667, %v3867_v30  ;;  %6094 = vtanh.f32 %v3894_v60  ;;  %v3847_v17 = vadd.f32 %v8554_v15, %v3807_v40  ;;  %v3879_v35 = vmul.f32 0.6666667, %v3851_v2 }
 0x5b7   :  { %v3846_v55 = vadd.f32 %v8550_v32, %v3806_v52  ;;  %v3878_v22 = vmul.f32 0.6666667, %v3850_v53  ;;  %v3845_v45 = vadd.f32 %v8554_v15, %v9380_v39  ;;  %v3877_v14 = vmul.f32 0.6666667, %v3849_v46 }
 0x5b8   :  { %6096 = vtanh.f32 %v3895_v7  ;;  %v3876_v8 = vmul.f32 0.6666667, %v3848_v26  ;;  %v3875_v47 = vmul.f32 0.6666667, %v3847_v17  ;;  %v3872_v24 = vmul.f32 0.6666667, %v3844_v48 }
 0x5b9   :  { %6098 = vtanh.f32 %v3892_v57  ;;  %v3874_v7 = vmul.f32 0.6666667, %v3846_v55  ;;  %v3873_v33 = vmul.f32 0.6666667, %v3845_v45  ;;  %v3871_v29 = vmul.f32 0.6666667, %v3843_v10 }
 0x5ba   :  { %6100 = vtanh.f32 %v3891_v20  ;;  %v3842_v20 = vadd.f32 %v8550_v32, %v9383_v27  ;;  %v4089_v27 = vld [vmem:[#allocation6 + $0x78] sm:$0xff] }
 0x5bb   :  { %6102 = vtanh.f32 %v3890_v62  ;;  %v3841_v62 = vadd.f32 %v8554_v15, %v9384_v44  ;;  %v4086_v44 = vld [vmem:[#allocation6 + $0x60] sm:$0xff] }
 0x5bc   :  { %6104 = vtanh.f32 %v3889_v36  ;;  %v9385_v36 = vld [vmem:[#allocation67_spill] sm:$0xff]  ;;  %v3870_v3 = vmul.f32 0.6666667, %v3842_v20  ;;  %v9386_v20 = vmov 0.0  }
 0x5bd   :  { %6106 = vtanh.f32 %v3888_v41  ;;  %v3840_v18 = vadd.f32 %v8550_v32, %v9385_v36  ;;  %v3869_v5 = vmul.f32 0.6666667, %v3841_v62  ;;  %v3954_v62 = vld [vmem:[#allocation4 + $0x10] sm:$0xff]  ;;  %5616 = vmatprep.mubr.msk.f32.mxu1 %vm6223_vm11, %v9386_v20 }
 0x5be   :  { %6108 = vtanh.f32 %v3887_v21  ;;  %v4083_v36 = vld [vmem:[#allocation6 + $0x48] sm:$0xff] }
 0x5bf   :  { %6110 = vtanh.f32 %v3886_v0  ;;  %v3868_v0 = vmul.f32 0.6666667, %v3840_v18  ;;  %v4082_v18 = vld [vmem:[#allocation6 + $0x40] sm:$0xff] }
 0x5c0   :  { %6112 = vtanh.f32 %v3885_v12 }
 0x5c1   :  { %6114 = vtanh.f32 %v3884_v19  ;;  %v6093_v54 = vpop.eup %6092 }
 0x5c2   :  { %6116 = vtanh.f32 %v3883_v43  ;;  %v3949_v13 = vmul.f32 1.7159, %v6093_v54 }
 0x5c3   :  { %6118 = vtanh.f32 %v3882_v51  ;;  %v6095_v59 = vpop.eup %6094 }
 0x5c4   :  { %6120 = vtanh.f32 %v3881_v4  ;;  %v3950_v25 = vmul.f32 1.7159, %v6095_v59 }
 0x5c5   :  { %v6097_v28 = vpop.eup %6096  ;;  %6122 = vtanh.f32 %v3880_v6 }
 0x5c6   :  { %v6099_v30 = vpop.eup %6098  ;;  %6124 = vtanh.f32 %v3879_v35  ;;  %v3951_v57 = vmul.f32 1.7159, %v6097_v28 }
 0x5c7   :  { %v6101_v60 = vpop.eup %6100  ;;  %6126 = vtanh.f32 %v3878_v22  ;;  %v3948_v16 = vmul.f32 1.7159, %v6099_v30 }
 0x5c8   :  { %v6103_v63 = vpop.eup %6102  ;;  %6128 = vtanh.f32 %v3877_v14  ;;  %5402 = vmatprep.subr.msk.mxu0 %vm2260_vm6, %v3951_v57  ;;  %v3947_v61 = vmul.f32 1.7159, %v6101_v60  ;;  %v3952_v60 = vld [vmem:[#allocation4] sm:$0xff] }
 0x5c9   :  { %v6105_v58 = vpop.eup %6104  ;;  %6130 = vtanh.f32 %v3876_v8  ;;  %5403 = vmatpush1.msk.msra.mxu0 %vm2260_vm6, %v3950_v25  ;;  %v3946_v21 = vmul.f32 1.7159, %v6103_v63  ;;  %v3953_v25 = vld [vmem:[#allocation4 + $0x8] sm:$0xff]  ;;  %v4087_v63 = vld [vmem:[#allocation6 + $0x68] sm:$0xff] }
 0x5ca   :  { %v6107_v41 = vpop.eup %6106  ;;  %6132 = vtanh.f32 %v3875_v47  ;;  %3985 = vmatprep.subr.mxu0 %v3949_v13  ;;  %v3945_v32 = vmul.f32 1.7159, %v6105_v58  ;;  %v4084_v13 = vld [vmem:[#allocation6 + $0x50] sm:$0xff] }
 0x5cb   :  { %v6109_v15 = vpop.eup %6108  ;;  %6134 = vtanh.f32 %v3874_v7  ;;  %3986 = vmatpush1.msra.mxu0 %v3948_v16  ;;  %v3944_v9 = vmul.f32 1.7159, %v6107_v41  ;;  %v4088_v7 = vld [vmem:[#allocation6 + $0x70] sm:$0xff]  ;;  %v4081_v16 = vld [vmem:[#allocation6 + $0x38] sm:$0xff] }
 0x5cc   :  { %v6111_v1 = vpop.eup %6110  ;;  %6136 = vtanh.f32 %v3873_v33  ;;  %3987 = vmatprep.subr.mxu0 %v3947_v61  ;;  %v3943_v23 = vmul.f32 1.7159, %v6109_v15  ;;  %v4085_v33 = vld [vmem:[#allocation6 + $0x58] sm:$0xff]  ;;  %v3955_v58 = vld [vmem:[#allocation4 + $0x18] sm:$0xff]  ;;  %v4078_v61 = vld [vmem:[#allocation6 + $0x20] sm:$0xff] }
 0x5cd   :  { %v6113_v56 = vpop.eup %6112  ;;  %6138 = vtanh.f32 %v3872_v24  ;;  %3988 = vmatpush1.msra.mxu0 %v3946_v21  ;;  %v3942_v38 = vmul.f32 1.7159, %v6111_v1  ;;  %v3956_v24 = vld [vmem:[#allocation4 + $0x20] sm:$0xff]  ;;  %v4080_v41 = vld [vmem:[#allocation6 + $0x30] sm:$0xff]  ;;  %v4075_v21 = vld [vmem:[#allocation6 + $0x8] sm:$0xff] }
 0x5ce   :  { %v6115_v37 = vpop.eup %6114  ;;  %6140 = vtanh.f32 %v3871_v29  ;;  %3989 = vmatprep.subr.mxu0 %v3945_v32  ;;  %v3941_v50 = vmul.f32 1.7159, %v6113_v56  ;;  %v4079_v29 = vld [vmem:[#allocation6 + $0x28] sm:$0xff]  ;;  %v4077_v15 = vld [vmem:[#allocation6 + $0x18] sm:$0xff]  ;;  %v4074_v1 = vld [vmem:[#allocation6] sm:$0xff] }
 0x5cf   :  { %v6117_v12 = vpop.eup %6116  ;;  %6142 = vtanh.f32 %v3870_v3  ;;  %3990 = vmatpush1.msra.mxu0 %v3944_v9  ;;  %v3940_v11 = vmul.f32 1.7159, %v6115_v37  ;;  %v4076_v3 = vld [vmem:[#allocation6 + $0x10] sm:$0xff]  ;;  %v4091_v56 = vld [vmem:[#allocation6 + $0x88] sm:$0xff]  ;;  %v5423_v9 = vld [vmem:[%s9074_s9 + $0x98] sm:$0xff] }
 0x5d0   :  { %v6119_v34 = vpop.eup %6118  ;;  %6144 = vtanh.f32 %v3869_v5  ;;  %3991 = vmatprep.subr.mxu0 %v3943_v23  ;;  %v3939_v2 = vmul.f32 1.7159, %v6117_v12  ;;  %v4093_v5 = vld [vmem:[#allocation6 + $0x98] sm:$0xff]  ;;  %v4092_v32 = vld [vmem:[#allocation6 + $0x90] sm:$0xff]  ;;  %5597 = vmatpush3.msra.mxu1 %v5423_v9  ;;  %v5421_v23 = vld [vmem:[%s9074_s9 + $0x88] sm:$0xff] }
 0x5d1   :  { %v6121_v19 = vpop.eup %6120  ;;  %6146 = vtanh.f32 %v3868_v0  ;;  %3992 = vmatpush1.msra.mxu0 %v3942_v38  ;;  %v3938_v31 = vmul.f32 1.7159, %v6119_v34  ;;  %v4090_v0 = vld [vmem:[#allocation6 + $0x80] sm:$0xff]  ;;  %v5422_v37 = vld [vmem:[%s9074_s9 + $0x90] sm:$0xff]  ;;  %5598 = vmatprep.subr.mxu1 %v9386_v20  ;;  %v4219_v34 = vld [vmem:[%s9074_s9 + $0x48] sm:$0xff] }
 0x5d2   :  { %v6123_v40 = vpop.eup %6122  ;;  %3993 = vmatprep.subr.mxu0 %v3941_v50  ;;  %v3937_v53 = vmul.f32 1.7159, %v6121_v19  ;;  %5599 = vmatpush3.msra.mxu1 %v5422_v37  ;;  %v4218_v19 = vld [vmem:[%s9074_s9 + $0x40] sm:$0xff]  ;;  %v5437_v9 = vld [vmem:[%s9074_s9 + $0xb8] sm:$0xff] }
 0x5d3   :  { %v6125_v43 = vpop.eup %6124  ;;  %3994 = vmatpush1.msra.mxu0 %v3940_v11  ;;  %v3936_v46 = vmul.f32 1.7159, %v6123_v40  ;;  %5600 = vmatprep.subr.mxu1 %v9386_v20  ;;  %v4217_v40 = vld [vmem:[%s9074_s9 + $0x38] sm:$0xff] }
 0x5d4   :  { %v6127_v52 = vpop.eup %6126  ;;  %3995 = vmatprep.subr.mxu0 %v3939_v2  ;;  %v3935_v26 = vmul.f32 1.7159, %v6125_v43  ;;  %5601 = vmatpush3.msra.mxu1 %v5421_v23  ;;  %v4216_v43 = vld [vmem:[%s9074_s9 + $0x30] sm:$0xff]  ;;  %v5450_v37 = vld [vmem:[%s9074_s9 + $0xf8] sm:$0xff] }
 0x5d5   :  { %v6129_v51 = vpop.eup %6128  ;;  %3996 = vmatpush1.msra.mxu0 %v3938_v31  ;;  %v3934_v17 = vmul.f32 1.7159, %v6127_v52  ;;  %5602 = vmatprep.subr.mxu1 %v9386_v20  ;;  %v4215_v52 = vld [vmem:[%s9074_s9 + $0x28] sm:$0xff]  ;;  %v5436_v23 = vld [vmem:[%s9074_s9 + $0xb0] sm:$0xff] }
 0x5d6   :  { %v6131_v4 = vpop.eup %6130  ;;  %3997 = vmatprep.subr.mxu0 %v3937_v53  ;;  %v3933_v54 = vmul.f32 1.7159, %v6129_v51 }
 0x5d7   :  { %v6133_v6 = vpop.eup %6132  ;;  %3998 = vmatpush1.msra.mxu0 %v3936_v46  ;;  %v3932_v22 = vmul.f32 1.7159, %v6131_v4 }
 0x5d8   :  { %v6135_v35 = vpop.eup %6134  ;;  %3999 = vmatprep.subr.mxu0 %v3935_v26  ;;  %v3931_v39 = vmul.f32 1.7159, %v6133_v6  ;;  %v5420_v26 = vld [vmem:[%s9074_s9 + $0x80] sm:$0xff] }
 0x5d9   :  { %v6137_v55 = vpop.eup %6136  ;;  %4000 = vmatpush1.msra.mxu0 %v3934_v17  ;;  %v3930_v14 = vmul.f32 1.7159, %v6135_v35  ;;  %v4214_v6 = vld [vmem:[%s9074_s9 + $0x20] sm:$0xff]  ;;  %5603 = vmatpush3.msra.mxu1 %v5420_v26  ;;  %v5419_v17 = vld [vmem:[%s9074_s9 + $0x78] sm:$0xff] }
 0x5da   :  { %v6139_v59 = vpop.eup %6138  ;;  %4001 = vmatprep.subr.mxu0 %v3933_v54  ;;  %v3929_v42 = vmul.f32 1.7159, %v6137_v55  ;;  %5604 = vmatprep.subr.mxu1 %v9386_v20  ;;  %v4213_v35 = vld [vmem:[%s9074_s9 + $0x18] sm:$0xff]  ;;  %v5418_v54 = vld [vmem:[%s9074_s9 + $0x70] sm:$0xff] }
 0x5db   :  { %v6141_v45 = vpop.eup %6140  ;;  %4002 = vmatpush1.msra.mxu0 %v3932_v22  ;;  %v3928_v8 = vmul.f32 1.7159, %v6139_v59  ;;  %5605 = vmatpush3.msra.mxu1 %v5419_v17  ;;  %v4212_v55 = vld [vmem:[%s9074_s9 + $0x10] sm:$0xff]  ;;  %v5417_v22 = vld [vmem:[%s9074_s9 + $0x68] sm:$0xff] }
 0x5dc   :  { %v6143_v28 = vpop.eup %6142  ;;  %4003 = vmatprep.subr.mxu0 %v3931_v39  ;;  %v3927_v49 = vmul.f32 1.7159, %v6141_v45  ;;  %5606 = vmatprep.subr.mxu1 %v9386_v20  ;;  %v4211_v59 = vld [vmem:[%s9074_s9 + $0x8] sm:$0xff]  ;;  %v5416_v39 = vld [vmem:[%s9074_s9 + $0x60] sm:$0xff] }
 0x5dd   :  { %v6145_v48 = vpop.eup %6144  ;;  %4004 = vmatpush1.msra.mxu0 %v3930_v14  ;;  %v3926_v10 = vmul.f32 1.7159, %v6143_v28  ;;  %5607 = vmatpush3.msra.mxu1 %v5418_v54  ;;  %v4210_v45 = vld [vmem:[%s9074_s9] sm:$0xff]  ;;  %v5415_v14 = vld [vmem:[%s9074_s9 + $0x58] sm:$0xff]  ;;  %v5414_v28 = vld [vmem:[%s9074_s9 + $0x50] sm:$0xff] }
 0x5de   :  { %v6147_v30 = vpop.eup %6146  ;;  %4005 = vmatprep.subr.mxu0 %v3929_v42  ;;  %v3925_v47 = vmul.f32 1.7159, %v6145_v48  ;;  %5608 = vmatprep.subr.mxu1 %v9386_v20 }
 0x5df   :  { %4006 = vmatpush1.msra.mxu0 %v3928_v8  ;;  %v3924_v57 = vmul.f32 1.7159, %v6147_v30  ;;  %5609 = vmatpush3.msra.mxu1 %v5417_v22  ;;  %v5465_v22 = vld [vmem:[%s9074_s9 + $0x148] sm:$0xff] }
 0x5e0   :  { %4007 = vmatprep.subr.mxu0 %v3927_v49  ;;  %5610 = vmatprep.subr.mxu1 %v9386_v20  ;;  %v5458_v49 = vld [vmem:[%s9074_s9 + $0x138] sm:$0xff] }
 0x5e1   :  { %4008 = vmatpush1.msra.mxu0 %v3926_v10  ;;  %5611 = vmatpush3.msra.mxu1 %v5416_v39  ;;  %v5464_v39 = vld [vmem:[%s9074_s9 + $0x140] sm:$0xff] }
 0x5e2   :  { %4009 = vmatprep.subr.mxu0 %v3925_v47  ;;  %5612 = vmatprep.subr.mxu1 %v9386_v20 }
 0x5e3   :  { %4010 = vmatpush1.msra.mxu0 %v3924_v57  ;;  %5613 = vmatpush3.msra.mxu1 %v5415_v14  ;;  %v5457_v57 = vld [vmem:[%s9074_s9 + $0x130] sm:$0xff] }
 0x5e4   :  { %5404 = vmatmul.mubr.msk.f32.vlgmr.msra.gmra.mxu0 %vm3957_vm10, %v3952_v60  ;;  %4109 = vmatprep.subr.mxu0 %v9386_v20 }
 0x5e5   :  { %4049 = vmatprep.mubr.f32.mxu0 %v9386_v20  ;;  %4110 = vmatpush1.msra.mxu0 %v4089_v27  ;;  %v5443_v27 = vld [vmem:[%s9074_s9 + $0xe8] sm:$0xff] }
 0x5e6   :  { %4111 = vmatprep.subr.mxu0 %v9386_v20  ;;  %5614 = vmatprep.subr.mxu1 %v9386_v20 }
 0x5e7   :  { %4112 = vmatpush1.msra.mxu0 %v4088_v7  ;;  %5615 = vmatpush3.msra.mxu1 %v5414_v28 }
 0x5e8   :  { %5405 = vmatmul.mubr.msk.f32.gmra.mxu0 %vm3957_vm10, %v3953_v25  ;;  %4113 = vmatprep.subr.mxu0 %v9386_v20 }
 0x5e9   :  { %4055 = vmatprep.mubr.f32.mxu0 %v9386_v20  ;;  %4114 = vmatpush1.msra.mxu0 %v4087_v63 }
 0x5ea   :  { %4115 = vmatprep.subr.mxu0 %v9386_v20  ;;  %5666 = vmatprep.subr.mxu1 %v9386_v20 }
 0x5eb   :  { %4116 = vmatpush1.msra.mxu0 %v4086_v44  ;;  %v5456_v44 = vld [vmem:[%s9074_s9 + $0x128] sm:$0xff] }
 0x5ec   :  { %5406 = vmatmul.mubr.msk.f32.gmra.mxu0 %vm3957_vm10, %v3954_v62  ;;  %4117 = vmatprep.subr.mxu0 %v9386_v20 }
 0x5ed   :  { %4061 = vmatprep.mubr.f32.mxu0 %v9386_v20  ;;  %4118 = vmatpush1.msra.mxu0 %v4085_v33  ;;  %v5442_v33 = vld [vmem:[%s9074_s9 + $0xe0] sm:$0xff] }
 0x5ee   :  { %4119 = vmatprep.subr.mxu0 %v9386_v20 }
 0x5ef   :  { %4120 = vmatpush1.msra.mxu0 %v4084_v13  ;;  %v5455_v13 = vld [vmem:[%s9074_s9 + $0x120] sm:$0xff] }
 0x5f0   :  { %5407 = vmatmul.mubr.msk.f32.gmra.mxu0 %vm3957_vm10, %v3955_v58  ;;  %4121 = vmatprep.subr.mxu0 %v9386_v20 }
 0x5f1   :  { %4067 = vmatprep.mubr.f32.mxu0 %v9386_v20  ;;  %4122 = vmatpush1.msra.mxu0 %v4083_v36 }
 0x5f2   :  { %4123 = vmatprep.subr.mxu0 %v9386_v20 }
 0x5f3   :  { %4124 = vmatpush1.msra.mxu0 %v4082_v18 }
 0x5f4   :  { %5408 = vmatmul.mubr.msk.f32.gmra.mxu0 %vm3957_vm10, %v3956_v24  ;;  %4125 = vmatprep.subr.mxu0 %v9386_v20  ;;  %v5441_v24 = vld [vmem:[%s9074_s9 + $0xd8] sm:$0xff] }
 0x5f5   :  { %4126 = vmatpush1.msra.mxu0 %v4081_v16  ;;  %v5454_v16 = vld [vmem:[%s9074_s9 + $0x118] sm:$0xff] }
 0x5f6   :  { %4127 = vmatprep.subr.mxu0 %v9386_v20 }
 0x5f7   :  { %4128 = vmatpush1.msra.mxu0 %v4080_v41 }
 0x5f8   :  { %4129 = vmatprep.subr.mxu0 %v9386_v20 }
 0x5f9   :  { %4130 = vmatpush1.msra.mxu0 %v4079_v29  ;;  %v5440_v29 = vld [vmem:[%s9074_s9 + $0xd0] sm:$0xff] }
 0x5fa   :  { %4131 = vmatprep.subr.mxu0 %v9386_v20 }
 0x5fb   :  { %4132 = vmatpush1.msra.mxu0 %v4078_v61  ;;  %v5453_v61 = vld [vmem:[%s9074_s9 + $0x110] sm:$0xff] }
 0x5fc   :  { %4133 = vmatprep.subr.mxu0 %v9386_v20 }
 0x5fd   :  { %4134 = vmatpush1.msra.mxu0 %v4077_v15 }
 0x5fe   :  { %4135 = vmatprep.subr.mxu0 %v9386_v20 }
 0x5ff   :  { %4136 = vmatpush1.msra.mxu0 %v4076_v3 }
 0x600   :  { %4137 = vmatprep.subr.mxu0 %v9386_v20 }
 0x601   :  { %4138 = vmatpush1.msra.mxu0 %v4075_v21  ;;  %v5439_v21 = vld [vmem:[%s9074_s9 + $0xc8] sm:$0xff] }
 0x602   :  { %4139 = vmatprep.subr.mxu0 %v9386_v20 }
 0x603   :  { %4140 = vmatpush1.msra.mxu0 %v4074_v1  ;;  %v5452_v1 = vld [vmem:[%s9074_s9 + $0x108] sm:$0xff] }
 0x604   :  { %4165 = vmatprep.subr.mxu0 %v9386_v20 }
 0x605   :  { %4166 = vmatpush2.msra.mxu0 %v4093_v5  ;;  %v5438_v5 = vld [vmem:[%s9074_s9 + $0xc0] sm:$0xff] }
 0x606   :  { %4167 = vmatprep.subr.mxu0 %v9386_v20 }
 0x607   :  { %4168 = vmatpush2.msra.mxu0 %v4092_v32  ;;  %v5451_v32 = vld [vmem:[%s9074_s9 + $0x100] sm:$0xff] }
 0x608   :  { %4169 = vmatprep.subr.mxu0 %v9386_v20 }
 0x609   :  { %4170 = vmatpush2.msra.mxu0 %v4091_v56 }
 0x60a   :  { %4171 = vmatprep.subr.mxu0 %v9386_v20 }
 0x60b   :  { %4172 = vmatpush2.msra.mxu0 %v4090_v0 }
 0x60c   :  { %5631 = vmatprep.subr.mxu0 %v9386_v20 }
 0x6a4   :  { %v4045_v12 = vpop.f32.mrf.mxu0 }
 0x6a6   :  { %v4047_v38 = vpop.f32.mrf.mxu0 }
 0x6a7   :  { %5409 = vmatprep.mubr.msk.f32.mxu0 %vm300_vm0, %v4047_v38 }
 0x6a8   :  { %v4051_v50 = vpop.f32.mrf.mxu0  ;;  %4174 = vmatmul.mubr.f32.vlgmr.msra.gmra.mxu0 %v4045_v12  ;;  %v5449_v12 = vld [vmem:[%s9074_s9 + $0xf0] sm:$0xff] }
 0x6a9   :  { %5632 = vmatpush3.msra.mxu0 %v4219_v34  ;;  %v5435_v34 = vld [vmem:[%s9074_s9 + $0xa8] sm:$0xff] }
 0x6aa   :  { %v4053_v11 = vpop.f32.mrf.mxu0  ;;  %5633 = vmatprep.subr.mxu0 %v9386_v20 }
 0x6ab   :  { %5410 = vmatprep.mubr.msk.f32.mxu0 %vm300_vm0, %v4053_v11  ;;  %5634 = vmatpush3.msra.mxu0 %v4218_v19  ;;  %v5434_v19 = vld [vmem:[%s9074_s9 + $0xa0] sm:$0xff] }
 0x6ac   :  { %v4057_v2 = vpop.f32.mrf.mxu0  ;;  %4179 = vmatmul.mubr.f32.gmra.mxu0 %v4051_v50  ;;  %5635 = vmatprep.subr.mxu0 %v9386_v20 }
 0x6ad   :  { %5636 = vmatpush3.msra.mxu0 %v4217_v40 }
 0x6ae   :  { %v4059_v31 = vpop.f32.mrf.mxu0  ;;  %5637 = vmatprep.subr.mxu0 %v9386_v20 }
 0x6af   :  { %5411 = vmatprep.mubr.msk.f32.mxu0 %vm300_vm0, %v4059_v31  ;;  %5638 = vmatpush3.msra.mxu0 %v4216_v43  ;;  %v5472_v43 = vld [vmem:[%s9074_s9 + $0x180] sm:$0xff] }
 0x6b0   :  { %v4063_v53 = vpop.f32.mrf.mxu0  ;;  %4184 = vmatmul.mubr.f32.gmra.mxu0 %v4057_v2  ;;  %5639 = vmatprep.subr.mxu0 %v9386_v20  ;;  %v5473_v2 = vld [vmem:[%s9074_s9 + $0x188] sm:$0xff] }
 0x6b1   :  { %5640 = vmatpush3.msra.mxu0 %v4215_v52  ;;  %v5471_v52 = vld [vmem:[%s9074_s9 + $0x178] sm:$0xff] }
 0x6b2   :  { %v4065_v51 = vpop.f32.mrf.mxu0  ;;  %5641 = vmatprep.subr.mxu0 %v9386_v20 }
 0x6b3   :  { %5412 = vmatprep.mubr.msk.f32.mxu0 %vm300_vm0, %v4065_v51  ;;  %5642 = vmatpush3.msra.mxu0 %v4214_v6  ;;  %v5470_v51 = vld [vmem:[%s9074_s9 + $0x170] sm:$0xff]  ;;  %v5468_v6 = vld [vmem:[%s9074_s9 + $0x160] sm:$0xff] }
 0x6b4   :  { %v4069_v46 = vpop.f32.mrf.mxu0  ;;  %4189 = vmatmul.mubr.f32.gmra.mxu0 %v4063_v53  ;;  %5643 = vmatprep.subr.mxu0 %v9386_v20 }
 0x6b5   :  { %5644 = vmatpush3.msra.mxu0 %v4213_v35  ;;  %v5467_v35 = vld [vmem:[%s9074_s9 + $0x158] sm:$0xff] }
 0x6b6   :  { %v4071_v4 = vpop.f32.mrf.mxu0  ;;  %5645 = vmatprep.subr.mxu0 %v9386_v20 }
 0x6b7   :  { %5413 = vmatprep.mubr.msk.f32.mxu0 %vm300_vm0, %v4071_v4  ;;  %5646 = vmatpush3.msra.mxu0 %v4212_v55  ;;  %v5469_v4 = vld [vmem:[%s9074_s9 + $0x168] sm:$0xff]  ;;  %v5466_v55 = vld [vmem:[%s9074_s9 + $0x150] sm:$0xff] }
 0x6b8   :  { %4194 = vmatmul.mubr.f32.gmra.mxu0 %v4069_v46  ;;  %5647 = vmatprep.subr.mxu0 %v9386_v20 }
 0x6b9   :  { %5648 = vmatpush3.msra.mxu0 %v4211_v59  ;;  %5651 = vmatprep.mubr.msk.f32.mxu0 %vm6223_vm11, %v9386_v20 }
 0x6ba   :  { %5649 = vmatprep.subr.mxu0 %v9386_v20 }
 0x6bb   :  { %5650 = vmatpush3.msra.mxu0 %v4210_v45 }
 0x6bc   :  { %5701 = vmatprep.subr.mxu0 %v9386_v20 }
 0x768   :  { %v4175_v42 = vpop.f32.mrf.mxu0 }
 0x769   :  { %4200 = vst.msk [vmem:[#allocation3] sm:$0xff] %vm4199_vm12, %v4175_v42 }
 0x76a   :  { %v4177_v48 = vpop.f32.mrf.mxu0 }
 0x76c   :  { %v4180_v8 = vpop.f32.mrf.mxu0 }
 0x76d   :  { %4201 = vst.msk [vmem:[#allocation3 + $0x8] sm:$0xff] %vm4199_vm12, %v4180_v8  ;;  %v4926_v8 = vld [vmem:[%s9077_s12 + $0x70] sm:$0xff] }
 0x76e   :  { %v4182_v30 = vpop.f32.mrf.mxu0 }
 0x76f   :  { %v4925_v30 = vld [vmem:[%s9077_s12 + $0x68] sm:$0xff] }
 0x770   :  { %v4185_v10 = vpop.f32.mrf.mxu0  ;;  %v4205_v47 = vld [vmem:[#allocation3] sm:$0xff] }
 0x771   :  { %4202 = vst.msk [vmem:[#allocation3 + $0x10] sm:$0xff] %vm4199_vm12, %v4185_v10  ;;  %5652 = vmatmul.mubr.msk.f32.vlgmr.msra.gmra.mxu0 %vm4199_vm12, %v4205_v47  ;;  %v4923_v10 = vld [vmem:[%s9077_s12 + $0x58] sm:$0xff] }
 0x772   :  { %v4187_v60 = vpop.f32.mrf.mxu0  ;;  %5702 = vmatpush3.msra.mxu0 %v5458_v49  ;;  %5654 = vmatprep.mubr.msk.f32.mxu0 %vm6223_vm11, %v9386_v20  ;;  %v4924_v49 = vld [vmem:[%s9077_s12 + $0x60] sm:$0xff] }
 0x773   :  { %5703 = vmatprep.subr.mxu0 %v9386_v20 }
 0x774   :  { %v4190_v7 = vpop.f32.mrf.mxu0  ;;  %5704 = vmatpush3.msra.mxu0 %v5457_v57  ;;  %v4220_v25 = vld [vmem:[#allocation3 + $0x1] sm:$0xff] }
 0x775   :  { %v4206_v63 = vld [vmem:[#allocation3 + $0x8] sm:$0xff]  ;;  %4203 = vst.msk [vmem:[#allocation3 + $0x18] sm:$0xff] %vm4199_vm12, %v4190_v7  ;;  %5617 = vmatmul.mubr.msk.f32.vlgmr.msra.gmra.mxu1 %vm4199_vm12, %v4220_v25  ;;  %5705 = vmatprep.subr.mxu0 %v9386_v20 }
 0x776   :  { %5655 = vmatmul.mubr.msk.f32.gmra.mxu0 %vm4199_vm12, %v4206_v63  ;;  %v4192_v62 = vpop.f32.mrf.mxu0  ;;  %5667 = vmatpush3.msra.mxu1 %v5443_v27  ;;  %v4572_v50 = vld [vmem:[#allocation3 + $0x3] sm:$0xff] }
 0x777   :  { %5706 = vmatpush3.msra.mxu0 %v5456_v44  ;;  %5668 = vmatprep.subr.mxu1 %v9386_v20  ;;  %v4446_v11 = vld [vmem:[#allocation3 + $0x2] sm:$0xff] }
 0x778   :  { %5707 = vmatprep.subr.mxu0 %v9386_v20  ;;  %v4195_v58 = vpop.f32.mrf.mxu0  ;;  %5619 = vmatprep.mubr.msk.f32.mxu1 %vm6223_vm11, %v9386_v20  ;;  %v4221_v36 = vld [vmem:[#allocation3 + $0x9] sm:$0xff] }
 0x779   :  { %v4207_v18 = vld [vmem:[#allocation3 + $0x10] sm:$0xff]  ;;  %4204 = vst.msk [vmem:[#allocation3 + $0x20] sm:$0xff] %vm4199_vm12, %v4195_v58  ;;  %5657 = vmatprep.mubr.msk.f32.mxu0 %vm6223_vm11, %v9386_v20  ;;  %5669 = vmatpush3.msra.mxu1 %v5442_v33  ;;  %v4698_v45 = vld [vmem:[#allocation3 + $0x4] sm:$0xff] }
 0x77a   :  { %5708 = vmatpush3.msra.mxu0 %v5455_v13  ;;  %5620 = vmatmul.mubr.msk.f32.gmra.mxu1 %vm4199_vm12, %v4221_v36  ;;  %v4197_v41 = vpop.f32.mrf.mxu0  ;;  %v4573_v40 = vld [vmem:[#allocation3 + $0xb] sm:$0xff] }
 0x77b   :  { %5658 = vmatmul.mubr.msk.f32.gmra.mxu0 %vm4199_vm12, %v4207_v18  ;;  %5670 = vmatprep.subr.mxu1 %v9386_v20  ;;  %v4447_v53 = vld [vmem:[#allocation3 + $0xa] sm:$0xff] }
 0x77c   :  { %5709 = vmatprep.subr.mxu0 %v9386_v20  ;;  %5671 = vmatpush3.msra.mxu1 %v5441_v24  ;;  %v4222_v15 = vld [vmem:[#allocation3 + $0x11] sm:$0xff] }
 0x77d   :  { %5710 = vmatpush3.msra.mxu0 %v5454_v16  ;;  %5672 = vmatprep.subr.mxu1 %v9386_v20  ;;  %v4208_v3 = vld [vmem:[#allocation3 + $0x18] sm:$0xff]  ;;  %v4699_v14 = vld [vmem:[#allocation3 + $0xc] sm:$0xff] }
 0x77e   :  { %5711 = vmatprep.subr.mxu0 %v9386_v20  ;;  %5622 = vmatprep.mubr.msk.f32.mxu1 %vm6223_vm11, %v9386_v20  ;;  %v4574_v31 = vld [vmem:[#allocation3 + $0x13] sm:$0xff] }
 0x77f   :  { %5660 = vmatprep.mubr.msk.f32.mxu0 %vm6223_vm11, %v9386_v20  ;;  %5673 = vmatpush3.msra.mxu1 %v5440_v29  ;;  %v4448_v26 = vld [vmem:[#allocation3 + $0x12] sm:$0xff] }
 0x780   :  { %5712 = vmatpush3.msra.mxu0 %v5453_v61  ;;  %5623 = vmatmul.mubr.msk.f32.gmra.mxu1 %vm4199_vm12, %v4222_v15  ;;  %v4223_v56 = vld [vmem:[#allocation3 + $0x19] sm:$0xff]  ;;  %v4224_v38 = vld [vmem:[#allocation3 + $0x21] sm:$0xf] }
 0x781   :  { %5661 = vmatmul.mubr.msk.f32.gmra.mxu0 %vm4199_vm12, %v4208_v3  ;;  %5674 = vmatprep.subr.mxu1 %v9386_v20  ;;  %v4209_v0 = vld [vmem:[#allocation3 + $0x20] sm:$0xf]  ;;  %v4700_v28 = vld [vmem:[#allocation3 + $0x14] sm:$0xff]  ;;  %v4702_v48 = vld [vmem:[#allocation3 + $0x24] sm:$0xf] }
 0x782   :  { %5713 = vmatprep.subr.mxu0 %v9386_v20  ;;  %5675 = vmatpush3.msra.mxu1 %v5439_v21  ;;  %v4575_v46 = vld [vmem:[#allocation3 + $0x1b] sm:$0xff]  ;;  %v4576_v17 = vld [vmem:[#allocation3 + $0x23] sm:$0xf] }
 0x783   :  { %5714 = vmatpush3.msra.mxu0 %v5452_v1  ;;  %5676 = vmatprep.subr.mxu1 %v9386_v20  ;;  %v4449_v54 = vld [vmem:[#allocation3 + $0x1a] sm:$0xff]  ;;  %v4450_v59 = vld [vmem:[#allocation3 + $0x22] sm:$0xf] }
 0x784   :  { %5715 = vmatprep.subr.mxu0 %v9386_v20  ;;  %5625 = vmatprep.mubr.msk.f32.mxu1 %vm6223_vm11, %v9386_v20  ;;  %v4701_v42 = vld [vmem:[#allocation3 + $0x1c] sm:$0xff] }
 0x785   :  { %5663 = vmatprep.mubr.msk.f32.mxu0 %vm6223_vm11, %v9386_v20  ;;  %5677 = vmatpush3.msra.mxu1 %v5438_v5 }
 0x786   :  { %5716 = vmatpush3.msra.mxu0 %v5451_v32  ;;  %5626 = vmatmul.mubr.msk.f32.gmra.mxu1 %vm4199_vm12, %v4223_v56 }
 0x787   :  { %5664 = vmatmul.mubr.msk.f32.gmra.mxu0 %vm4199_vm12, %v4209_v0  ;;  %5678 = vmatprep.subr.mxu1 %v9386_v20 }
 0x788   :  { %5717 = vmatprep.subr.mxu0 %v9386_v20  ;;  %5679 = vmatpush3.msra.mxu1 %v5437_v9 }
 0x789   :  { %5718 = vmatpush3.msra.mxu0 %v5450_v37  ;;  %5680 = vmatprep.subr.mxu1 %v9386_v20 }
 0x78a   :  { %5719 = vmatprep.subr.mxu0 %v9386_v20  ;;  %5628 = vmatprep.mubr.msk.f32.mxu1 %vm6223_vm11, %v9386_v20 }
 0x78b   :  { %5681 = vmatpush3.msra.mxu1 %v5436_v23  ;;  %5720 = vmatpush3.msra.mxu0 %v5449_v12 }
 0x78c   :  { %5721 = vmatprep.mubr.msk.f32.mxu0 %vm6223_vm11, %v9386_v20  ;;  %5629 = vmatmul.mubr.msk.f32.gmra.mxu1 %vm4199_vm12, %v4224_v38 }
 0x78d   :  { %5682 = vmatprep.subr.mxu1 %v9386_v20  ;;  %5722 = vmatmul.mubr.msk.f32.vlgmr.msra.gmra.mxu0 %vm4199_vm12, %v4572_v50 }
 0x78e   :  { %5683 = vmatpush3.msra.mxu1 %v5435_v34  ;;  %5686 = vmatprep.mubr.msk.f32.mxu1 %vm6223_vm11, %v9386_v20 }
 0x78f   :  { %5684 = vmatprep.subr.mxu1 %v9386_v20  ;;  %5724 = vmatprep.mubr.msk.f32.mxu0 %vm6223_vm11, %v9386_v20 }
 0x790   :  { %5685 = vmatpush3.msra.mxu1 %v5434_v19  ;;  %5771 = vmatprep.subr.mxu0 %v9386_v20 }
 0x791   :  { %5687 = vmatmul.mubr.msk.f32.vlgmr.msra.gmra.mxu1 %vm4199_vm12, %v4446_v11  ;;  %5725 = vmatmul.mubr.msk.f32.gmra.mxu0 %vm4199_vm12, %v4573_v40 }
 0x792   :  { %5736 = vmatprep.subr.mxu1 %v9386_v20  ;;  %5689 = vmatprep.mubr.msk.f32.mxu1 %vm6223_vm11, %v9386_v20 }
 0x793   :  { %5737 = vmatpush3.msra.mxu1 %v5473_v2  ;;  %5727 = vmatprep.mubr.msk.f32.mxu0 %vm6223_vm11, %v9386_v20 }
 0x794   :  { %5738 = vmatprep.subr.mxu1 %v9386_v20 }
 0x795   :  { %5739 = vmatpush3.msra.mxu1 %v5472_v43  ;;  %5728 = vmatmul.mubr.msk.f32.gmra.mxu0 %vm4199_vm12, %v4574_v31 }
 0x796   :  { %5690 = vmatmul.mubr.msk.f32.gmra.mxu1 %vm4199_vm12, %v4447_v53  ;;  %5740 = vmatprep.subr.mxu1 %v9386_v20 }
 0x797   :  { %5741 = vmatpush3.msra.mxu1 %v5471_v52  ;;  %5692 = vmatprep.mubr.msk.f32.mxu1 %vm6223_vm11, %v9386_v20 }
 0x798   :  { %5742 = vmatprep.subr.mxu1 %v9386_v20  ;;  %5730 = vmatprep.mubr.msk.f32.mxu0 %vm6223_vm11, %v9386_v20 }
 0x799   :  { %5743 = vmatpush3.msra.mxu1 %v5470_v51  ;;  %5731 = vmatmul.mubr.msk.f32.gmra.mxu0 %vm4199_vm12, %v4575_v46 }
 0x79a   :  { %5693 = vmatmul.mubr.msk.f32.gmra.mxu1 %vm4199_vm12, %v4448_v26  ;;  %5744 = vmatprep.subr.mxu1 %v9386_v20 }
 0x79b   :  { %5745 = vmatpush3.msra.mxu1 %v5469_v4  ;;  %5695 = vmatprep.mubr.msk.f32.mxu1 %vm6223_vm11, %v9386_v20 }
 0x79c   :  { %5746 = vmatprep.subr.mxu1 %v9386_v20  ;;  %5733 = vmatprep.mubr.msk.f32.mxu0 %vm6223_vm11, %v9386_v20 }
 0x79d   :  { %5747 = vmatpush3.msra.mxu1 %v5468_v6  ;;  %5734 = vmatmul.mubr.msk.f32.gmra.mxu0 %vm4199_vm12, %v4576_v17 }
 0x79e   :  { %5696 = vmatmul.mubr.msk.f32.gmra.mxu1 %vm4199_vm12, %v4449_v54  ;;  %5748 = vmatprep.subr.mxu1 %v9386_v20 }
 0x79f   :  { %5749 = vmatpush3.msra.mxu1 %v5467_v35  ;;  %5698 = vmatprep.mubr.msk.f32.mxu1 %vm6223_vm11, %v9386_v20 }
 0x7a0   :  { %5750 = vmatprep.subr.mxu1 %v9386_v20  ;;  %5781 = vmatprep.mubr.msk.f32.mxu0 %vm6223_vm11, %v9386_v20 }
 0x7a1   :  { %5751 = vmatpush3.msra.mxu1 %v5466_v55 }
 0x7a2   :  { %5699 = vmatmul.mubr.msk.f32.gmra.mxu1 %vm4199_vm12, %v4450_v59  ;;  %5752 = vmatprep.subr.mxu1 %v9386_v20 }
 0x7a3   :  { %5753 = vmatpush3.msra.mxu1 %v5465_v22  ;;  %5756 = vmatprep.mubr.msk.f32.mxu1 %vm6223_vm11, %v9386_v20 }
 0x7a4   :  { %5754 = vmatprep.subr.mxu1 %v9386_v20 }
 0x7a5   :  { %5755 = vmatpush3.msra.mxu1 %v5464_v39 }
 0x7a6   :  { %5757 = vmatmul.mubr.msk.f32.vlgmr.msra.gmra.mxu1 %vm4199_vm12, %v4698_v45  ;;  %5784 = vmatprep.subr.mxu1 %v9386_v20 }
 0x7a7   :  { %5759 = vmatprep.mubr.msk.f32.mxu1 %vm6223_vm11, %v9386_v20  ;;  %5785 = vmatpush3.msra.mxu1 %v4926_v8 }
 0x7a8   :  { %5786 = vmatprep.subr.mxu1 %v9386_v20 }
 0x7a9   :  { %5787 = vmatpush3.msra.mxu1 %v4925_v30 }
 0x7aa   :  { %5760 = vmatmul.mubr.msk.f32.gmra.mxu1 %vm4199_vm12, %v4699_v14  ;;  %5788 = vmatprep.subr.mxu1 %v9386_v20 }
 0x7ab   :  { %5762 = vmatprep.mubr.msk.f32.mxu1 %vm6223_vm11, %v9386_v20  ;;  %5789 = vmatpush3.msra.mxu1 %v4924_v49 }
 0x7ac   :  { %5790 = vmatprep.subr.mxu1 %v9386_v20 }
 0x7ad   :  { %5791 = vmatpush3.msra.mxu1 %v4923_v10 }
 0x7ae   :  { %5763 = vmatmul.mubr.msk.f32.gmra.mxu1 %vm4199_vm12, %v4700_v28  ;;  %5792 = vmatprep.subr.mxu1 %v9386_v20 }
 0x7af   :  { %5765 = vmatprep.mubr.msk.f32.mxu1 %vm6223_vm11, %v9386_v20 }
 0x7b2   :  { %5766 = vmatmul.mubr.msk.f32.gmra.mxu1 %vm4199_vm12, %v4701_v42 }
 0x7b3   :  { %5768 = vmatprep.mubr.msk.f32.mxu1 %vm6223_vm11, %v9386_v20 }
 0x7b6   :  { %5769 = vmatmul.mubr.msk.f32.gmra.mxu1 %vm4199_vm12, %v4702_v48 }
 0x7b7   :  { %5814 = vmatprep.mubr.msk.f32.mxu1 %vm6223_vm11, %v9386_v20 }
 0x831   :  { %v4422_v47 = vpop.f32.mrf.mxu0 }
 0x833   :  { %v5653_v57 = vpop.f32.mrf.mxu0 }
 0x835   :  { %v4317_v60 = vpop.f32.mrf.mxu1 }
 0x836   :  { %v4427_v27 = vpop.f32.mrf.mxu0  ;;  %v4423_v7 = vadd.f32 %v4422_v47, %v4317_v60 }
 0x837   :  { %v5618_v25 = vpop.f32.mrf.mxu1 }
 0x838   :  { %v5656_v63 = vpop.f32.mrf.mxu0 }
 0x83a   :  { %v4322_v44 = vpop.f32.mrf.mxu1 }
 0x83b   :  { %v4432_v62 = vpop.f32.mrf.mxu0  ;;  %v4428_v45 = vadd.f32 %v4427_v27, %v4322_v44 }
 0x83c   :  { %v5621_v33 = vpop.f32.mrf.mxu1 }
 0x83d   :  { %v5659_v13 = vpop.f32.mrf.mxu0  ;;  %v4921_v33 = vld [vmem:[%s9077_s12 + $0x48] sm:$0xff] }
 0x83e   :  { %v4920_v13 = vld [vmem:[%s9077_s12 + $0x40] sm:$0xff] }
 0x840   :  { %v4327_v58 = vpop.f32.mrf.mxu1 }
 0x841   :  { %v4437_v36 = vpop.f32.mrf.mxu0  ;;  %v4433_v22 = vadd.f32 %v4432_v62, %v4327_v58  ;;  %v4922_v62 = vld [vmem:[%s9077_s12 + $0x50] sm:$0xff]  ;;  %v4919_v58 = vld [vmem:[%s9077_s12 + $0x38] sm:$0xff] }
 0x842   :  { %v5624_v18 = vpop.f32.mrf.mxu1  ;;  %5793 = vmatpush3.msra.mxu1 %v4922_v62 }
 0x843   :  { %v5662_v24 = vpop.f32.mrf.mxu0  ;;  %5794 = vmatprep.subr.mxu1 %v9386_v20  ;;  %v4917_v18 = vld [vmem:[%s9077_s12 + $0x28] sm:$0xff] }
 0x844   :  { %5795 = vmatpush3.msra.mxu1 %v4921_v33  ;;  %v4916_v24 = vld [vmem:[%s9077_s12 + $0x20] sm:$0xff] }
 0x845   :  { %5796 = vmatprep.subr.mxu1 %v9386_v20 }
 0x846   :  { %v4332_v16 = vpop.f32.mrf.mxu1  ;;  %5797 = vmatpush3.msra.mxu1 %v4920_v13 }
 0x847   :  { %v4442_v41 = vpop.f32.mrf.mxu0  ;;  %v4438_v35 = vadd.f32 %v4437_v36, %v4332_v16  ;;  %5798 = vmatprep.subr.mxu1 %v9386_v20  ;;  %v4918_v36 = vld [vmem:[%s9077_s12 + $0x30] sm:$0xff]  ;;  %v4915_v16 = vld [vmem:[%s9077_s12 + $0x18] sm:$0xff] }
 0x848   :  { %v5627_v29 = vpop.f32.mrf.mxu1  ;;  %5799 = vmatpush3.msra.mxu1 %v4919_v58 }
 0x849   :  { %v5665_v61 = vpop.f32.mrf.mxu0  ;;  %5800 = vmatprep.subr.mxu1 %v9386_v20  ;;  %v4913_v29 = vld [vmem:[%s9077_s12 + $0x8] sm:$0xff] }
 0x84a   :  { %5801 = vmatpush3.msra.mxu1 %v4918_v36  ;;  %v4912_v61 = vld [vmem:[%s9077_s12] sm:$0xff] }
 0x84b   :  { %5802 = vmatprep.subr.mxu1 %v9386_v20 }
 0x84c   :  { %v4337_v15 = vpop.f32.mrf.mxu1  ;;  %5803 = vmatpush3.msra.mxu1 %v4917_v18 }
 0x84d   :  { %v4669_v3 = vpop.f32.mrf.mxu0  ;;  %v4443_v6 = vadd.f32 %v4442_v41, %v4337_v15  ;;  %5804 = vmatprep.subr.mxu1 %v9386_v20  ;;  %v4914_v41 = vld [vmem:[%s9077_s12 + $0x10] sm:$0xff]  ;;  %v5479_v15 = vld [vmem:[%s9076_s11] ss:$0 sm:$0xff] }
 0x84e   :  { %v5630_v21 = vpop.f32.mrf.mxu1  ;;  %5805 = vmatpush3.msra.mxu1 %v4916_v24 }
 0x84f   :  { %v5723_v1 = vpop.f32.mrf.mxu0  ;;  %5806 = vmatprep.subr.mxu1 %v9386_v20 }
 0x850   :  { %5807 = vmatpush3.msra.mxu1 %v4915_v16 }
 0x851   :  { %v4543_v5 = vpop.f32.mrf.mxu1  ;;  %v4674_v32 = vpop.f32.mrf.mxu0  ;;  %5808 = vmatprep.subr.mxu1 %v9386_v20 }
 0x852   :  { %v4567_v10 = vadd.f32 %v4543_v5, %v4423_v7  ;;  %v4824_v7 = vld [vmem:[%s9075_s10] sm:$0xff]  ;;  %5809 = vmatpush3.msra.mxu1 %v4914_v41 }
 0x853   :  { %v5688_v56 = vpop.f32.mrf.mxu1  ;;  %v5726_v0 = vpop.f32.mrf.mxu0  ;;  %5810 = vmatprep.subr.mxu1 %v9386_v20 }
 0x854   :  { %v4693_v27 = vadd.f32 %v4669_v3, %v4567_v10  ;;  %5811 = vmatpush3.msra.mxu1 %v4913_v29  ;;  %v5021_v0 = vld [vmem:[#allocation8 + $0x50] sm:$0xf] }
 0x855   :  { %v4679_v9 = vpop.f32.mrf.mxu0  ;;  %5812 = vmatprep.subr.mxu1 %v9386_v20 }
 0x856   :  { %v4548_v37 = vpop.f32.mrf.mxu1  ;;  %5813 = vmatpush3.msra.mxu1 %v4912_v61 }
 0x857   :  { %v5729_v23 = vpop.f32.mrf.mxu0  ;;  %v4568_v48 = vadd.f32 %v4548_v37, %v4428_v45  ;;  %v5019_v37 = vld [vmem:[#allocation8 + $0x40] sm:$0xff] }
 0x858   :  { %v5691_v12 = vpop.f32.mrf.mxu1  ;;  %v5018_v23 = vld [vmem:[#allocation8 + $0x38] sm:$0xff] }
 0x859   :  { %v4684_v38 = vpop.f32.mrf.mxu0  ;;  %v4694_v60 = vadd.f32 %v4674_v32, %v4568_v48  ;;  %v5017_v12 = vld [vmem:[#allocation8 + $0x30] sm:$0xff] }
 0x85a   :  { %v4553_v34 = vpop.f32.mrf.mxu1 }
 0x85b   :  { %v5732_v50 = vpop.f32.mrf.mxu0  ;;  %v4569_v14 = vadd.f32 %v4553_v34, %v4433_v22  ;;  %v5015_v34 = vld [vmem:[#allocation8 + $0x20] sm:$0xff] }
 0x85c   :  { %v5694_v19 = vpop.f32.mrf.mxu1  ;;  %v5014_v50 = vld [vmem:[#allocation8 + $0x18] sm:$0xff] }
 0x85d   :  { %v4689_v11 = vpop.f32.mrf.mxu0  ;;  %v4695_v47 = vadd.f32 %v4679_v9, %v4569_v14  ;;  %v5020_v9 = vld [vmem:[#allocation8 + $0x48] sm:$0xff]  ;;  %v5013_v19 = vld [vmem:[#allocation8 + $0x10] sm:$0xff] }
 0x85e   :  { %v4558_v40 = vpop.f32.mrf.mxu1 }
 0x85f   :  { %v5735_v2 = vpop.f32.mrf.mxu0  ;;  %v4570_v59 = vadd.f32 %v4558_v40, %v4438_v35  ;;  %v5011_v40 = vld [vmem:[#allocation8] sm:$0xff] }
 0x860   :  { %v5697_v43 = vpop.f32.mrf.mxu1  ;;  %v5482_v2 = vld [vmem:[%s9078_s13] ss:$0 sm:$0xff] }
 0x861   :  { %v4696_v8 = vadd.f32 %v4684_v38, %v4570_v59  ;;  %v5016_v38 = vld [vmem:[#allocation8 + $0x28] sm:$0xff] }
 0x862   :  { %v4563_v31 = vpop.f32.mrf.mxu1 }
 0x863   :  { %v4571_v54 = vadd.f32 %v4563_v31, %v4443_v6 }
 0x864   :  { %v5700_v52 = vpop.f32.mrf.mxu1 }
 0x865   :  { %v4697_v28 = vadd.f32 %v4689_v11, %v4571_v54  ;;  %v5012_v11 = vld [vmem:[#allocation8 + $0x8] sm:$0xff] }
 0x866   :  { %v4795_v53 = vpop.f32.mrf.mxu1 }
 0x867   :  { %v4819_v44 = vadd.f32 %v4795_v53, %v4693_v27 }
 0x868   :  { %v5758_v51 = vpop.f32.mrf.mxu1 }
 0x86a   :  { %v4800_v46 = vpop.f32.mrf.mxu1 }
 0x86b   :  { %v4820_v63 = vadd.f32 %v4800_v46, %v4694_v60 }
 0x86c   :  { %v5761_v4 = vpop.f32.mrf.mxu1 }
 0x86d   :  { %v5484_v4 = vld [vmem:[%s9080_s15] ss:$0 sm:$0xff] }
 0x86e   :  { %v4805_v26 = vpop.f32.mrf.mxu1 }
 0x86f   :  { %v4821_v25 = vadd.f32 %v4805_v26, %v4695_v47 }
 0x870   :  { %v5764_v17 = vpop.f32.mrf.mxu1 }
 0x872   :  { %v4810_v55 = vpop.f32.mrf.mxu1 }
 0x873   :  { %v4822_v57 = vadd.f32 %v4810_v55, %v4696_v8 }
 0x874   :  { %v5767_v39 = vpop.f32.mrf.mxu1 }
 0x876   :  { %v4815_v42 = vpop.f32.mrf.mxu1 }
 0x877   :  { %v4823_v30 = vadd.f32 %v4815_v42, %v4697_v28 }
 0x878   :  { %v5770_v49 = vpop.f32.mrf.mxu1 }
 0x879   :  { %5772 = vmatpush3.msk.msra.mxu0 %vm2260_vm6, %v4823_v30 }
 0x87a   :  { %5773 = vmatprep.subr.mxu0 %v9386_v20 }
 0x87b   :  { %5774 = vmatpush3.msra.mxu0 %v4822_v57 }
 0x87c   :  { %5775 = vmatprep.subr.mxu0 %v9386_v20 }
 0x87d   :  { %5776 = vmatpush3.msra.mxu0 %v4821_v25 }
 0x87e   :  { %5777 = vmatprep.subr.mxu0 %v9386_v20 }
 0x87f   :  { %5778 = vmatpush3.msra.mxu0 %v4820_v63 }
 0x880   :  { %5779 = vmatprep.subr.mxu0 %v9386_v20 }
 0x881   :  { %5780 = vmatpush3.msra.mxu0 %v4819_v44 }
 0x882   :  { %5782 = vmatmul.mubr.msk.f32.vlgmr.msra.gmra.mxu0 %vm4832_vm13, %v4824_v7  ;;  %5817 = vmatprep.subr.mxu0 %v9386_v20 }
 0x883   :  { %5839 = vmatprep.mubr.msk.f32.mxu0 %vm6223_vm11, %v9386_v20  ;;  %5818 = vmatpush3.msk.msra.mxu0 %vm2260_vm6, %v5021_v0 }
 0x884   :  { %5819 = vmatprep.subr.mxu0 %v9386_v20 }
 0x885   :  { %5820 = vmatpush3.msra.mxu0 %v5020_v9 }
 0x886   :  { %5821 = vmatprep.subr.mxu0 %v9386_v20 }
 0x887   :  { %5822 = vmatpush3.msra.mxu0 %v5019_v37 }
 0x888   :  { %5823 = vmatprep.subr.mxu0 %v9386_v20 }
 0x889   :  { %5824 = vmatpush3.msra.mxu0 %v5018_v23 }
 0x88a   :  { %5825 = vmatprep.subr.mxu0 %v9386_v20 }
 0x88b   :  { %5826 = vmatpush3.msra.mxu0 %v5017_v12 }
 0x88c   :  { %5827 = vmatprep.subr.mxu0 %v9386_v20 }
 0x88d   :  { %5828 = vmatpush3.msra.mxu0 %v5016_v38 }
 0x88e   :  { %5829 = vmatprep.subr.mxu0 %v9386_v20 }
 0x88f   :  { %5830 = vmatpush3.msra.mxu0 %v5015_v34 }
 0x890   :  { %5831 = vmatprep.subr.mxu0 %v9386_v20 }
 0x891   :  { %5832 = vmatpush3.msra.mxu0 %v5014_v50 }
 0x892   :  { %5833 = vmatprep.subr.mxu0 %v9386_v20 }
 0x893   :  { %5834 = vmatpush3.msra.mxu0 %v5013_v19 }
 0x894   :  { %5835 = vmatprep.subr.mxu0 %v9386_v20 }
 0x895   :  { %5836 = vmatpush3.msra.mxu0 %v5012_v11 }
 0x896   :  { %5837 = vmatprep.subr.mxu0 %v9386_v20 }
 0x897   :  { %5838 = vmatpush3.msra.mxu0 %v5011_v40 }
 0x942   :  { %v4905_v3 = vpop.f32.mrf.mxu0 }
 0x943   :  { %v4906_v21 = vadd.f32 %v5479_v15, %v4905_v3 }
 0x944   :  { %v5783_v1 = vpop.f32.mrf.mxu0 }
 0x945   :  { %v4909_v5 = vmul.f32 0.6666667, %v4906_v21 }
 0x947   :  { %6148 = vtanh.f32 %v4909_v5 }
 0x954   :  { %v6149_v32 = vpop.eup %6148 }
 0x955   :  { %v4911_v56 = vmul.f32 1.7159, %v6149_v32 }
 0x957   :  { %5815 = vmatmul.mubr.msk.f32.vlgmr.msra.gmra.mxu1 %vm4934_vm14, %v4911_v56 }
 0xa17   :  { %v5004_v43 = vpop.f32.mrf.mxu1 }
 0xa18   :  { %v5005_v31 = vadd.f32 %v5482_v2, %v5004_v43 }
 0xa19   :  { %v5816_v52 = vpop.f32.mrf.mxu1 }
 0xa1a   :  { %v5008_v53 = vmul.f32 0.6666667, %v5005_v31 }
 0xa1c   :  { %6150 = vtanh.f32 %v5008_v53 }
 0xa29   :  { %v6151_v51 = vpop.eup %6150 }
 0xa2a   :  { %v5010_v46 = vmul.f32 1.7159, %v6151_v51 }
 0xa2c   :  { %5840 = vmatmul.mubr.msk.f32.vlgmr.msra.gmra.mxu0 %vm2615_vm9, %v5010_v46 }
 0xaec   :  { %v5101_v20 = vpop.f32.mrf.mxu0 }
 0xaed   :  { %v5102_v26 = vadd.f32 %v5484_v4, %v5101_v20 }
 0xaee   :  { %v5841_v6 = vpop.f32.mrf.mxu0 }
 0xaef   :  { %5105 = vst [vmem:[%s9081_s16] sm:$0xff] %v5102_v26 }
 0xaf0   :  { %5110 = vsyncpa [#allocation5], 1 }
 0xaf1   :  { %5111 = vsyncpa [#allocation7], 1 }

</bundles_post_ra>
